<compile_context>
chip_gen: v5e
topology: v5e:2x2
jax: 0.10.0
libtpu: 0.0.40
codegen_flags: <defaults>
</compile_context>

<pallas_src>
import jax
import jax.numpy as jnp
import numpy as np
from jax import lax
from jax.experimental import pallas as pl
from jax.experimental.pallas import tpu as pltpu

EPS = 1e-5


def _banded_conv_weights(w, W, C):
    """PyTorch conv weight (Cout, Cin, 3, 3) -> banded blocks (3, W*C, W*C).

    Block ky multiplies the dy = ky-1 shifted activation slab.  Within each
    block: row = xin*C + ci, col = xout*C + co, nonzero iff xin == xout+kx-1,
    which encodes the kx taps and the x-direction zero padding, so the 3x3
    conv becomes three accumulating matmuls (one per dy).
    """
    wt = jnp.transpose(w, (2, 3, 1, 0)).astype(jnp.float32)      # (ky, kx, Cin, Cout)
    xo = jnp.arange(W)
    blocks = []
    for ky in range(3):
        blk = jnp.zeros((W, C, W, C), jnp.float32)
        for kx in range(3):
            band = (xo[:, None] == xo[None, :] + (kx - 1)).astype(jnp.float32)  # [xin, xout]
            blk = blk + band[:, None, :, None] * wt[ky, kx][None, :, None, :]
        blocks.append(blk.reshape(W * C, W * C))
    return jnp.stack(blocks, axis=0)                             # (3, W*C, W*C)


def _make_resblock_kernel(N, H, W, C):
    NH, WC = N * H, W * C
    inv_m = 1.0 / float(N * H * W)

    def kernel(x_ref, wb1_ref, wb2_ref, g1_ref, be1_ref, g2_ref, be2_ref, o_ref):
        x = x_ref[...]                                           # (NH, WC) slab

        # f32 0/1 row masks built from an (NH, 1) iota (shared by both convs):
        # zero the y-padding rows and the cross-batch wrap rows of the rolls.
        row_y = lax.broadcasted_iota(jnp.int32, (NH, 1), 0) % H
        m_above = (row_y != 0).astype(jnp.float32)               # y-1 exists
        m_below = (row_y != (H - 1)).astype(jnp.float32)         # y+1 exists

        def conv3x3(slab, wb_ref):
            # dy = -1 / 0 / +1 slabs: sublane rolls (XLU) + masks, then three
            # accumulating K=WC MXU dots (no (NH, 3*WC) concat materialized).
            s_m1 = pltpu.roll(slab, 1, 0) * m_above              # rows y-1
            s_p1 = pltpu.roll(slab, NH - 1, 0) * m_below         # rows y+1
            acc = jnp.dot(s_m1, wb_ref[0], preferred_element_type=jnp.float32)
            acc += jnp.dot(slab, wb_ref[1], preferred_element_type=jnp.float32)
            acc += jnp.dot(s_p1, wb_ref[2], preferred_element_type=jnp.float32)
            # TODO(synk): once rows are tiled/batched much larger, consider
            # bf16 operands (with f32 accumulation) if the accuracy budget allows.
            return acc

        def batchnorm(y, g_ref, be_ref):
            # Batch-statistics BN in one fused pass.  Row sums give per-(x, C)
            # lane sums; a log2(W)-step lane-roll butterfly (shifts are
            # multiples of C, so the channel is preserved) both sums over the
            # W x-positions and broadcasts the per-channel stats back onto
            # every (x, C) lane.  No r_mat, no extra MXU RHS swaps.
            # Conv bias is omitted upstream: exactly cancelled by this mean.
            s = jnp.concatenate(
                [jnp.sum(y, axis=0, keepdims=True),
                 jnp.sum(y * y, axis=0, keepdims=True)], axis=0)  # (2, WC)
            shift = C
            while shift < WC:                                     # W power of 2
                s = s + pltpu.roll(s, shift, 1)
                shift *= 2
            mean = s[0:1, :] * inv_m                              # (1, WC)
            var = s[1:2, :] * inv_m - mean * mean
            scale = g_ref[...] * lax.rsqrt(var + EPS)
            return y * scale + (be_ref[...] - mean * scale)

        # conv1 -> bn1 -> relu
        h = jnp.maximum(batchnorm(conv3x3(x, wb1_ref), g1_ref, be1_ref), 0.0)
        # conv2 -> bn2 -> +residual -> relu (residual is the input slab itself)
        y2 = batchnorm(conv3x3(h, wb2_ref), g2_ref, be2_ref)
        o_ref[...] = jnp.maximum(y2 + x, 0.0)                    # lane-dense store

    return kernel


def prepare_resblock_params(params, W):
    """Precompute kernel-ready constants ONCE (hoisted out of the forward).

    b1/b2 are accepted but intentionally unused: with batch-statistics
    BatchNorm right after each conv (PyTorch training-mode semantics), the
    additive per-channel conv bias is exactly cancelled by the mean
    subtraction.  Not valid for eval-mode running-stats BN.
    """
    w1, b1, g1, be1, w2, b2, g2, be2 = params
    del b1, b2
    C = w1.shape[0]
    tile_c = lambda v: jnp.tile(v.reshape(1, C).astype(jnp.float32), (1, W))
    return dict(
        wb1=_banded_conv_weights(w1, W, C),      # (3, W*C, W*C)
        wb2=_banded_conv_weights(w2, W, C),
        g1=tile_c(g1), be1=tile_c(be1),
        g2=tile_c(g2), be2=tile_c(be2),
    )


def resblock_forward(x_nchw, prepared):
    """x_nchw: (N, C, H, W) float32; prepared: output of prepare_resblock_params."""
    N, C, H, W = x_nchw.shape
    NH, WC = N * H, W * C
    assert W & (W - 1) == 0, "lane-roll butterfly BN requires W to be a power of 2"

    # NCHW -> lane-dense slab (N*H, W*C); pure layout plumbing in the wrapper.
    x_slab = jnp.transpose(x_nchw, (0, 2, 3, 1)).reshape(NH, WC).astype(jnp.float32)

    kernel = _make_resblock_kernel(N, H, W, C)
    # TODO(synk): for NH >> 256, grid over row tiles with dimension_semantics
    # ("parallel",) to use both v7x TensorCores, VMEM-resident weight BlockSpecs,
    # and a two-phase cross-tile BatchNorm reduction (sized for 64 MiB VMEM).
    # TODO(synk): on v5e, optionally ship banded weights as bf16 (or rebuild
    # them in-kernel from the raw 36 KiB conv weights) if the accuracy budget
    # allows -- the 1.5 MiB weight DMA dominates there.
    out_slab = pl.pallas_call(
        kernel,
        out_shape=jax.ShapeDtypeStruct((NH, WC), jnp.float32),
        in_specs=[pl.BlockSpec(memory_space=pltpu.MemorySpace.VMEM)] * 7,
        out_specs=pl.BlockSpec(memory_space=pltpu.MemorySpace.VMEM),
    )(x_slab, prepared["wb1"], prepared["wb2"],
      prepared["g1"], prepared["be1"], prepared["g2"], prepared["be2"])

    return jnp.transpose(out_slab.reshape(N, H, W, C), (0, 3, 1, 2))   # back to NCHW


def resblock_ref(x, params):
    """Pure-JAX reference with PyTorch ResBlock semantics (for verification)."""
    w1, b1, g1, be1, w2, b2, g2, be2 = params

    def conv(x, w, b):
        y = lax.conv_general_dilated(x, w, (1, 1), ((1, 1), (1, 1)),
                                     dimension_numbers=('NCHW', 'OIHW', 'NCHW'))
        return y + b[None, :, None, None]

    def bn(y, g, be):
        mean = jnp.mean(y, axis=(0, 2, 3), keepdims=True)
        var = jnp.mean((y - mean) ** 2, axis=(0, 2, 3), keepdims=True)
        return ((y - mean) * lax.rsqrt(var + EPS)
                * g[None, :, None, None] + be[None, :, None, None])

    h = jax.nn.relu(bn(conv(x, w1, b1), g1, be1))
    h = bn(conv(h, w2, b2), g2, be2)
    return jax.nn.relu(h + x)


if __name__ == "__main__":
    key = jax.random.PRNGKey(0)
    ks = jax.random.split(key, 9)

    # batch=16 (NH = 128 MXU rows per dot), num_hidden=32, spatial=8x8.
    N, C, H, W = 16, 32, 8, 8
    bound = 1.0 / np.sqrt(C * 9)             # PyTorch default conv init bound

    w1 = jax.random.uniform(ks[0], (C, C, 3, 3), jnp.float32, -bound, bound)
    b1 = jax.random.uniform(ks[1], (C,), jnp.float32, -bound, bound)
    g1 = 1.0 + 0.1 * jax.random.normal(ks[2], (C,), jnp.float32)
    be1 = 0.1 * jax.random.normal(ks[3], (C,), jnp.float32)
    w2 = jax.random.uniform(ks[4], (C, C, 3, 3), jnp.float32, -bound, bound)
    b2 = jax.random.uniform(ks[5], (C,), jnp.float32, -bound, bound)
    g2 = 1.0 + 0.1 * jax.random.normal(ks[6], (C,), jnp.float32)
    be2 = 0.1 * jax.random.normal(ks[7], (C,), jnp.float32)
    x = jax.random.normal(ks[8], (N, C, H, W), jnp.float32)

    params = (w1, b1, g1, be1, w2, b2, g2, be2)

    # Banded weights / tiled BN params: built once, reused across calls.
    prepared = jax.tree_util.tree_map(jax.block_until_ready,
                                      prepare_resblock_params(params, W))

    fwd = jax.jit(resblock_forward)
    out = jax.block_until_ready(fwd(x, prepared))
    ref = jax.block_until_ready(resblock_ref(x, params))
    np.testing.assert_allclose(np.asarray(out), np.asarray(ref),
                               rtol=2e-4, atol=2e-4)
    print("KERNEL_OK")
</pallas_src>

<mosaic_0001>
module attributes {stable_mosaic.version = 11 : i64} {
  func.func @kernel(%arg0: memref<128x256xf32, #tpu.memory_space<vmem>>, %arg1: memref<3x256x256xf32, #tpu.memory_space<vmem>>, %arg2: memref<3x256x256xf32, #tpu.memory_space<vmem>>, %arg3: memref<1x256xf32, #tpu.memory_space<vmem>>, %arg4: memref<1x256xf32, #tpu.memory_space<vmem>>, %arg5: memref<1x256xf32, #tpu.memory_space<vmem>>, %arg6: memref<1x256xf32, #tpu.memory_space<vmem>>, %arg7: memref<128x256xf32, #tpu.memory_space<vmem>>) attributes {dimension_semantics = [], scalar_prefetch = 0 : i64, scratch_operands = 0 : i64, tpu.core_type = #tpu.core_type<tc>} {
    %c0 = arith.constant 0 : index
    %c0_0 = arith.constant 0 : index
    %0 = vector.load %arg0[%c0, %c0_0] : memref<128x256xf32, #tpu.memory_space<vmem>>, vector<128x256xf32>
    %1 = tpu.iota {dimensions = array<i32: 0>} : vector<128x1xi32>
    %c8_i32 = arith.constant 8 : i32
    %c0_i32 = arith.constant 0 : i32
    %2 = arith.cmpi eq, %c8_i32, %c0_i32 : i32
    %c1_i32 = arith.constant 1 : i32
    %3 = arith.select %2, %c1_i32, %c8_i32 : i32
    %4 = vector.broadcast %3 : i32 to vector<128x1xi32>
    %5 = arith.remsi %1, %4 : vector<128x1xi32>
    %c0_i32_1 = arith.constant 0 : i32
    %6 = vector.broadcast %c0_i32_1 : i32 to vector<128x1xi32>
    %7 = arith.cmpi ne, %5, %6 : vector<128x1xi32>
    %c0_i32_2 = arith.constant 0 : i32
    %8 = vector.broadcast %c0_i32_2 : i32 to vector<128x1xi32>
    %9 = arith.cmpi slt, %5, %8 : vector<128x1xi32>
    %c0_i32_3 = arith.constant 0 : i32
    %10 = arith.cmpi slt, %3, %c0_i32_3 : i32
    %11 = vector.broadcast %10 : i1 to vector<128x1xi1>
    %12 = vector.broadcast %11 : vector<128x1xi1> to vector<128x1xi1>
    %13 = arith.xori %9, %12 : vector<128x1xi1>
    %14 = arith.andi %13, %7 : vector<128x1xi1>
    %15 = vector.broadcast %3 : i32 to vector<128x1xi32>
    %16 = arith.addi %5, %15 : vector<128x1xi32>
    %17 = arith.select %14, %16, %5 : vector<128x1xi1>, vector<128x1xi32>
    %c0_i32_4 = arith.constant 0 : i32
    %18 = vector.broadcast %c0_i32_4 : i32 to vector<128x1xi32>
    %19 = arith.cmpi ne, %17, %18 : vector<128x1xi32>
    %20 = arith.extui %19 : vector<128x1xi1> to vector<128x1xi32>
    %21 = arith.sitofp %20 : vector<128x1xi32> to vector<128x1xf32>
    %c7_i32 = arith.constant 7 : i32
    %22 = vector.broadcast %c7_i32 : i32 to vector<128x1xi32>
    %23 = arith.cmpi ne, %17, %22 : vector<128x1xi32>
    %24 = arith.extui %23 : vector<128x1xi1> to vector<128x1xi32>
    %25 = arith.sitofp %24 : vector<128x1xi32> to vector<128x1xf32>
    %c1_i32_5 = arith.constant 1 : i32
    %26 = tpu.dynamic_rotate %0 by %c1_i32_5 dim 0 : vector<128x256xf32>, i32 -> vector<128x256xf32>
    %27 = vector.broadcast %21 : vector<128x1xf32> to vector<128x256xf32>
    %28 = arith.mulf %26, %27 : vector<128x256xf32>
    %c127_i32 = arith.constant 127 : i32
    %29 = tpu.dynamic_rotate %0 by %c127_i32 dim 0 : vector<128x256xf32>, i32 -> vector<128x256xf32>
    %30 = vector.broadcast %25 : vector<128x1xf32> to vector<128x256xf32>
    %31 = arith.mulf %29, %30 : vector<128x256xf32>
    %c0_6 = arith.constant 0 : index
    %c0_7 = arith.constant 0 : index
    %c0_8 = arith.constant 0 : index
    %32 = vector.load %arg1[%c0_6, %c0_7, %c0_8] : memref<3x256x256xf32, #tpu.memory_space<vmem>>, vector<1x256x256xf32>
    %33 = vector.shape_cast %32 : vector<1x256x256xf32> to vector<256x256xf32>
    %cst = arith.constant dense<0.000000e+00> : vector<128x256xf32>
    %34 = tpu.matmul %28, %33, %cst {dimension_numbers = #tpu.dot_dimension_numbers<[1], [0], [0], [1], [0, 0, 1, 1], [], []>} : vector<128x256xf32>, vector<256x256xf32>, vector<128x256xf32> -> vector<128x256xf32>
    %c1 = arith.constant 1 : index
    %c0_9 = arith.constant 0 : index
    %c0_10 = arith.constant 0 : index
    %35 = vector.load %arg1[%c1, %c0_9, %c0_10] : memref<3x256x256xf32, #tpu.memory_space<vmem>>, vector<1x256x256xf32>
    %36 = vector.shape_cast %35 : vector<1x256x256xf32> to vector<256x256xf32>
    %cst_11 = arith.constant dense<0.000000e+00> : vector<128x256xf32>
    %37 = tpu.matmul %0, %36, %cst_11 {dimension_numbers = #tpu.dot_dimension_numbers<[1], [0], [0], [1], [0, 0, 1, 1], [], []>} : vector<128x256xf32>, vector<256x256xf32>, vector<128x256xf32> -> vector<128x256xf32>
    %38 = arith.addf %34, %37 : vector<128x256xf32>
    %c2 = arith.constant 2 : index
    %c0_12 = arith.constant 0 : index
    %c0_13 = arith.constant 0 : index
    %39 = vector.load %arg1[%c2, %c0_12, %c0_13] : memref<3x256x256xf32, #tpu.memory_space<vmem>>, vector<1x256x256xf32>
    %40 = vector.shape_cast %39 : vector<1x256x256xf32> to vector<256x256xf32>
    %cst_14 = arith.constant dense<0.000000e+00> : vector<128x256xf32>
    %41 = tpu.matmul %31, %40, %cst_14 {dimension_numbers = #tpu.dot_dimension_numbers<[1], [0], [0], [1], [0, 0, 1, 1], [], []>} : vector<128x256xf32>, vector<256x256xf32>, vector<128x256xf32> -> vector<128x256xf32>
    %42 = arith.addf %38, %41 : vector<128x256xf32>
    %cst_15 = arith.constant dense<0.000000e+00> : vector<256xf32>
    %43 = vector.multi_reduction <add>, %42, %cst_15 [0] : vector<128x256xf32> to vector<256xf32>
    %44 = vector.shape_cast %43 : vector<256xf32> to vector<1x256xf32>
    %45 = arith.mulf %42, %42 : vector<128x256xf32>
    %cst_16 = arith.constant dense<0.000000e+00> : vector<256xf32>
    %46 = vector.multi_reduction <add>, %45, %cst_16 [0] : vector<128x256xf32> to vector<256xf32>
    %47 = vector.shape_cast %46 : vector<256xf32> to vector<1x256xf32>
    %48 = tpu.concatenate %44, %47 in 0 : vector<1x256xf32>, vector<1x256xf32> -> vector<2x256xf32>
    %c32_i32 = arith.constant 32 : i32
    %49 = tpu.dynamic_rotate %48 by %c32_i32 dim 1 : vector<2x256xf32>, i32 -> vector<2x256xf32>
    %50 = arith.addf %48, %49 : vector<2x256xf32>
    %c64_i32 = arith.constant 64 : i32
    %51 = tpu.dynamic_rotate %50 by %c64_i32 dim 1 : vector<2x256xf32>, i32 -> vector<2x256xf32>
    %52 = arith.addf %50, %51 : vector<2x256xf32>
    %c128_i32 = arith.constant 128 : i32
    %53 = tpu.dynamic_rotate %52 by %c128_i32 dim 1 : vector<2x256xf32>, i32 -> vector<2x256xf32>
    %54 = arith.addf %52, %53 : vector<2x256xf32>
    %55 = vector.extract_strided_slice %54 {offsets = [0, 0], sizes = [1, 256], strides = [1, 1]} : vector<2x256xf32> to vector<1x256xf32>
    %cst_17 = arith.constant 9.765625E-4 : f32
    %56 = vector.broadcast %cst_17 : f32 to vector<1x256xf32>
    %57 = arith.mulf %55, %56 : vector<1x256xf32>
    %58 = vector.extract_strided_slice %54 {offsets = [1, 0], sizes = [1, 256], strides = [1, 1]} : vector<2x256xf32> to vector<1x256xf32>
    %cst_18 = arith.constant 9.765625E-4 : f32
    %59 = vector.broadcast %cst_18 : f32 to vector<1x256xf32>
    %60 = arith.mulf %58, %59 : vector<1x256xf32>
    %61 = arith.mulf %57, %57 : vector<1x256xf32>
    %62 = arith.subf %60, %61 : vector<1x256xf32>
    %c0_19 = arith.constant 0 : index
    %c0_20 = arith.constant 0 : index
    %63 = vector.load %arg3[%c0_19, %c0_20] : memref<1x256xf32, #tpu.memory_space<vmem>>, vector<1x256xf32>
    %cst_21 = arith.constant 9.99999974E-6 : f32
    %64 = vector.broadcast %cst_21 : f32 to vector<1x256xf32>
    %65 = arith.addf %62, %64 : vector<1x256xf32>
    %66 = math.rsqrt %65 : vector<1x256xf32>
    %67 = arith.mulf %63, %66 : vector<1x256xf32>
    %68 = vector.broadcast %67 : vector<1x256xf32> to vector<128x256xf32>
    %69 = arith.mulf %42, %68 : vector<128x256xf32>
    %c0_22 = arith.constant 0 : index
    %c0_23 = arith.constant 0 : index
    %70 = vector.load %arg4[%c0_22, %c0_23] : memref<1x256xf32, #tpu.memory_space<vmem>>, vector<1x256xf32>
    %71 = arith.mulf %57, %67 : vector<1x256xf32>
    %72 = arith.subf %70, %71 : vector<1x256xf32>
    %73 = vector.broadcast %72 : vector<1x256xf32> to vector<128x256xf32>
    %74 = arith.addf %69, %73 : vector<128x256xf32>
    %cst_24 = arith.constant 0.000000e+00 : f32
    %75 = vector.broadcast %cst_24 : f32 to vector<128x256xf32>
    %76 = arith.maximumf %74, %75 : vector<128x256xf32>
    %c1_i32_25 = arith.constant 1 : i32
    %77 = tpu.dynamic_rotate %76 by %c1_i32_25 dim 0 : vector<128x256xf32>, i32 -> vector<128x256xf32>
    %78 = vector.broadcast %21 : vector<128x1xf32> to vector<128x256xf32>
    %79 = arith.mulf %77, %78 : vector<128x256xf32>
    %c127_i32_26 = arith.constant 127 : i32
    %80 = tpu.dynamic_rotate %76 by %c127_i32_26 dim 0 : vector<128x256xf32>, i32 -> vector<128x256xf32>
    %81 = vector.broadcast %25 : vector<128x1xf32> to vector<128x256xf32>
    %82 = arith.mulf %80, %81 : vector<128x256xf32>
    %c0_27 = arith.constant 0 : index
    %c0_28 = arith.constant 0 : index
    %c0_29 = arith.constant 0 : index
    %83 = vector.load %arg2[%c0_27, %c0_28, %c0_29] : memref<3x256x256xf32, #tpu.memory_space<vmem>>, vector<1x256x256xf32>
    %84 = vector.shape_cast %83 : vector<1x256x256xf32> to vector<256x256xf32>
    %cst_30 = arith.constant dense<0.000000e+00> : vector<128x256xf32>
    %85 = tpu.matmul %79, %84, %cst_30 {dimension_numbers = #tpu.dot_dimension_numbers<[1], [0], [0], [1], [0, 0, 1, 1], [], []>} : vector<128x256xf32>, vector<256x256xf32>, vector<128x256xf32> -> vector<128x256xf32>
    %c1_31 = arith.constant 1 : index
    %c0_32 = arith.constant 0 : index
    %c0_33 = arith.constant 0 : index
    %86 = vector.load %arg2[%c1_31, %c0_32, %c0_33] : memref<3x256x256xf32, #tpu.memory_space<vmem>>, vector<1x256x256xf32>
    %87 = vector.shape_cast %86 : vector<1x256x256xf32> to vector<256x256xf32>
    %cst_34 = arith.constant dense<0.000000e+00> : vector<128x256xf32>
    %88 = tpu.matmul %76, %87, %cst_34 {dimension_numbers = #tpu.dot_dimension_numbers<[1], [0], [0], [1], [0, 0, 1, 1], [], []>} : vector<128x256xf32>, vector<256x256xf32>, vector<128x256xf32> -> vector<128x256xf32>
    %89 = arith.addf %85, %88 : vector<128x256xf32>
    %c2_35 = arith.constant 2 : index
    %c0_36 = arith.constant 0 : index
    %c0_37 = arith.constant 0 : index
    %90 = vector.load %arg2[%c2_35, %c0_36, %c0_37] : memref<3x256x256xf32, #tpu.memory_space<vmem>>, vector<1x256x256xf32>
    %91 = vector.shape_cast %90 : vector<1x256x256xf32> to vector<256x256xf32>
    %cst_38 = arith.constant dense<0.000000e+00> : vector<128x256xf32>
    %92 = tpu.matmul %82, %91, %cst_38 {dimension_numbers = #tpu.dot_dimension_numbers<[1], [0], [0], [1], [0, 0, 1, 1], [], []>} : vector<128x256xf32>, vector<256x256xf32>, vector<128x256xf32> -> vector<128x256xf32>
    %93 = arith.addf %89, %92 : vector<128x256xf32>
    %cst_39 = arith.constant dense<0.000000e+00> : vector<256xf32>
    %94 = vector.multi_reduction <add>, %93, %cst_39 [0] : vector<128x256xf32> to vector<256xf32>
    %95 = vector.shape_cast %94 : vector<256xf32> to vector<1x256xf32>
    %96 = arith.mulf %93, %93 : vector<128x256xf32>
    %cst_40 = arith.constant dense<0.000000e+00> : vector<256xf32>
    %97 = vector.multi_reduction <add>, %96, %cst_40 [0] : vector<128x256xf32> to vector<256xf32>
    %98 = vector.shape_cast %97 : vector<256xf32> to vector<1x256xf32>
    %99 = tpu.concatenate %95, %98 in 0 : vector<1x256xf32>, vector<1x256xf32> -> vector<2x256xf32>
    %c32_i32_41 = arith.constant 32 : i32
    %100 = tpu.dynamic_rotate %99 by %c32_i32_41 dim 1 : vector<2x256xf32>, i32 -> vector<2x256xf32>
    %101 = arith.addf %99, %100 : vector<2x256xf32>
    %c64_i32_42 = arith.constant 64 : i32
    %102 = tpu.dynamic_rotate %101 by %c64_i32_42 dim 1 : vector<2x256xf32>, i32 -> vector<2x256xf32>
    %103 = arith.addf %101, %102 : vector<2x256xf32>
    %c128_i32_43 = arith.constant 128 : i32
    %104 = tpu.dynamic_rotate %103 by %c128_i32_43 dim 1 : vector<2x256xf32>, i32 -> vector<2x256xf32>
    %105 = arith.addf %103, %104 : vector<2x256xf32>
    %106 = vector.extract_strided_slice %105 {offsets = [0, 0], sizes = [1, 256], strides = [1, 1]} : vector<2x256xf32> to vector<1x256xf32>
    %cst_44 = arith.constant 9.765625E-4 : f32
    %107 = vector.broadcast %cst_44 : f32 to vector<1x256xf32>
    %108 = arith.mulf %106, %107 : vector<1x256xf32>
    %109 = vector.extract_strided_slice %105 {offsets = [1, 0], sizes = [1, 256], strides = [1, 1]} : vector<2x256xf32> to vector<1x256xf32>
    %cst_45 = arith.constant 9.765625E-4 : f32
    %110 = vector.broadcast %cst_45 : f32 to vector<1x256xf32>
    %111 = arith.mulf %109, %110 : vector<1x256xf32>
    %112 = arith.mulf %108, %108 : vector<1x256xf32>
    %113 = arith.subf %111, %112 : vector<1x256xf32>
    %c0_46 = arith.constant 0 : index
    %c0_47 = arith.constant 0 : index
    %114 = vector.load %arg5[%c0_46, %c0_47] : memref<1x256xf32, #tpu.memory_space<vmem>>, vector<1x256xf32>
    %cst_48 = arith.constant 9.99999974E-6 : f32
    %115 = vector.broadcast %cst_48 : f32 to vector<1x256xf32>
    %116 = arith.addf %113, %115 : vector<1x256xf32>
    %117 = math.rsqrt %116 : vector<1x256xf32>
    %118 = arith.mulf %114, %117 : vector<1x256xf32>
    %119 = vector.broadcast %118 : vector<1x256xf32> to vector<128x256xf32>
    %120 = arith.mulf %93, %119 : vector<128x256xf32>
    %c0_49 = arith.constant 0 : index
    %c0_50 = arith.constant 0 : index
    %121 = vector.load %arg6[%c0_49, %c0_50] : memref<1x256xf32, #tpu.memory_space<vmem>>, vector<1x256xf32>
    %122 = arith.mulf %108, %118 : vector<1x256xf32>
    %123 = arith.subf %121, %122 : vector<1x256xf32>
    %124 = vector.broadcast %123 : vector<1x256xf32> to vector<128x256xf32>
    %125 = arith.addf %120, %124 : vector<128x256xf32>
    %126 = arith.addf %125, %0 : vector<128x256xf32>
    %cst_51 = arith.constant 0.000000e+00 : f32
    %127 = vector.broadcast %cst_51 : f32 to vector<128x256xf32>
    %128 = arith.maximumf %126, %127 : vector<128x256xf32>
    %c0_52 = arith.constant 0 : index
    %c0_53 = arith.constant 0 : index
    %129 = vector.load %arg7[%c0_52, %c0_53] : memref<128x256xf32, #tpu.memory_space<vmem>>, vector<128x256xf32>
    tpu.vector_store %arg7[%c0_52, %c0_53], %128 {strides = array<i32>} : memref<128x256xf32, #tpu.memory_space<vmem>>, vector<128x256xf32>,
    return
  }
}

</mosaic_0001>

<bundles_post_ra>
// kernel: resblock_forward.1
= control target key start
LH: loop header
LB: loop body
LE: loop exit
PB: predicated region body
PF: predicated region fallthrough
CT: control target
= control target key end

     0   :  { %12 = vsyncpa [#allocation3], 0  ;;  %s6645_s0 = inlined_call_operand.vmem [shape: f32[128,256], index: 0, kind: input, shape index: {}]   ;;  %s6646_s1 = inlined_call_operand.hbm [shape: f32[3,256,256], index: 1, kind: input, shape index: {}]   ;;  %s6647_s2 = inlined_call_operand.hbm [shape: f32[3,256,256], index: 2, kind: input, shape index: {}]   ;;  %s6648_s3 = inlined_call_operand.vmem [shape: f32[1,256], index: 3, kind: input, shape index: {}]   ;;  %s6649_s4 = inlined_call_operand.vmem [shape: f32[1,256], index: 4, kind: input, shape index: {}]   ;;  %s6650_s5 = inlined_call_operand.vmem [shape: f32[1,256], index: 5, kind: input, shape index: {}]   ;;  %s6651_s6 = inlined_call_operand.vmem [shape: f32[1,256], index: 6, kind: input, shape index: {}]   ;;  %s6652_s7 = inlined_call_operand.vmem [shape: f32[128,256], index: 7, kind: output, shape index: {}]  }
   0x1   :  { %s20_s26 = sshll.u32 %s6646_s1, 4  ;;  %s21_s26 = int_to_ptr.hbm [resolvable:$true] %s20_s26 }
   0x2   :  { %13 = vsyncpa [#allocation5], 0  ;;  %s3577_s27 = smov [#allocation2]   ;;  %s33_s8 = sshll.u32 %s6647_s2, 4  ;;  %s34_s8 = int_to_ptr.hbm [resolvable:$true] %s33_s8 }
   0x3   :  { %s22_s28 = sshll.u32 %s3577_s27, 4  ;;  %s3578_s9 = smov 256   ;;  %s23_s28 = int_to_ptr.vmem [resolvable:$true] %s22_s28 }
   0x4   :  { %s3579_s10 = smov 16   ;;  %s3580_s11 = smov [#allocation4]  }
   0x5   :  { %28 = dma.hbm_to_vmem [thread:$0]  %s21_s26, 24576, %s23_s28, [#allocation3], %s3578_s9, %s3578_s9, %s3579_s10  }
   0x6   :  { %s35_s12 = sshll.u32 %s3580_s11, 4  ;;  %s36_s12 = int_to_ptr.vmem [resolvable:$true] %s35_s12 }
   0x7   :  { %41 = dma.hbm_to_vmem [thread:$0]  %s34_s8, 24576, %s36_s12, [#allocation5], %s3578_s9, %s3578_s9, %s3579_s10  }
   0x8   :  { %3573 = dma.done.wait [#allocation3], 24576  }
   0x9   :  { %3574 = vsyncadd [#allocation3], 4294942720 }
   0xa   :  { %3575 = dma.done.wait [#allocation5], 24576  }
   0xb   :  { %3576 = vsyncadd [#allocation5], 4294942720  ;;  %v684_v0 = vld [vmem:[#allocation2 + $0x2f0] sm:$0xff]  ;;  %v685_v2 = vld [vmem:[#allocation2 + $0x2f8] sm:$0xff]  ;;  %s3582_s14 = smov 32   ;;  %s3583_s15 = smov 64  }
   0xc   :  { %v716_v1 = vld [vmem:[#allocation2 + $0x3f0] sm:$0xff]  ;;  %718 = vmatpush.msra.mxu0 %v684_v0  ;;  %v717_v3 = vld [vmem:[#allocation2 + $0x3f8] sm:$0xff]  ;;  %v682_v4 = vld [vmem:[#allocation2 + $0x2e0] sm:$0xff]  ;;  %848 = vmatpush.msra.mxu2 %v685_v2 }
   0xd   :  { %783 = vmatpush.msra.mxu1 %v716_v1  ;;  %v714_v5 = vld [vmem:[#allocation2 + $0x3e0] sm:$0xff]  ;;  %913 = vmatpush.msra.mxu3 %v717_v3  ;;  %v683_v6 = vld [vmem:[#allocation2 + $0x2e8] sm:$0xff]  ;;  %v680_v8 = vld [vmem:[#allocation2 + $0x2d0] sm:$0xff] }
   0xe   :  { %v715_v7 = vld [vmem:[#allocation2 + $0x3e8] sm:$0xff]  ;;  %719 = vmatpush.msra.mxu0 %v682_v4  ;;  %v712_v9 = vld [vmem:[#allocation2 + $0x3d0] sm:$0xff]  ;;  %v681_v10 = vld [vmem:[#allocation2 + $0x2d8] sm:$0xff]  ;;  %849 = vmatpush.msra.mxu2 %v683_v6 }
   0xf   :  { %784 = vmatpush.msra.mxu1 %v714_v5  ;;  %v713_v11 = vld [vmem:[#allocation2 + $0x3d8] sm:$0xff]  ;;  %914 = vmatpush.msra.mxu3 %v715_v7  ;;  %v678_v12 = vld [vmem:[#allocation2 + $0x2c0] sm:$0xff]  ;;  %v679_v14 = vld [vmem:[#allocation2 + $0x2c8] sm:$0xff] }
  0x10   :  { %v710_v13 = vld [vmem:[#allocation2 + $0x3c0] sm:$0xff]  ;;  %720 = vmatpush.msra.mxu0 %v680_v8  ;;  %v711_v15 = vld [vmem:[#allocation2 + $0x3c8] sm:$0xff]  ;;  %850 = vmatpush.msra.mxu2 %v681_v10  ;;  %v676_v16 = vld [vmem:[#allocation2 + $0x2b0] sm:$0xff] }
  0x11   :  { %785 = vmatpush.msra.mxu1 %v712_v9  ;;  %915 = vmatpush.msra.mxu3 %v713_v11  ;;  %v708_v17 = vld [vmem:[#allocation2 + $0x3b0] sm:$0xff]  ;;  %v677_v18 = vld [vmem:[#allocation2 + $0x2b8] sm:$0xff]  ;;  %v674_v20 = vld [vmem:[#allocation2 + $0x2a0] sm:$0xff] }
  0x12   :  { %721 = vmatpush.msra.mxu0 %v678_v12  ;;  %v709_v19 = vld [vmem:[#allocation2 + $0x3b8] sm:$0xff]  ;;  %851 = vmatpush.msra.mxu2 %v679_v14  ;;  %v706_v21 = vld [vmem:[#allocation2 + $0x3a0] sm:$0xff]  ;;  %v675_v22 = vld [vmem:[#allocation2 + $0x2a8] sm:$0xff] }
  0x13   :  { %786 = vmatpush.msra.mxu1 %v710_v13  ;;  %916 = vmatpush.msra.mxu3 %v711_v15  ;;  %v707_v23 = vld [vmem:[#allocation2 + $0x3a8] sm:$0xff]  ;;  %v672_v24 = vld [vmem:[#allocation2 + $0x290] sm:$0xff]  ;;  %v673_v26 = vld [vmem:[#allocation2 + $0x298] sm:$0xff] }
  0x14   :  { %722 = vmatpush.msra.mxu0 %v676_v16  ;;  %852 = vmatpush.msra.mxu2 %v677_v18  ;;  %v704_v25 = vld [vmem:[#allocation2 + $0x390] sm:$0xff]  ;;  %v705_v27 = vld [vmem:[#allocation2 + $0x398] sm:$0xff]  ;;  %v670_v28 = vld [vmem:[#allocation2 + $0x280] sm:$0xff] }
  0x15   :  { %787 = vmatpush.msra.mxu1 %v708_v17  ;;  %917 = vmatpush.msra.mxu3 %v709_v19  ;;  %v702_v29 = vld [vmem:[#allocation2 + $0x380] sm:$0xff]  ;;  %v671_v30 = vld [vmem:[#allocation2 + $0x288] sm:$0xff]  ;;  %v668_v32 = vld [vmem:[#allocation2 + $0x270] sm:$0xff] }
  0x16   :  { %723 = vmatpush.msra.mxu0 %v674_v20  ;;  %853 = vmatpush.msra.mxu2 %v675_v22  ;;  %v703_v31 = vld [vmem:[#allocation2 + $0x388] sm:$0xff]  ;;  %v700_v33 = vld [vmem:[#allocation2 + $0x370] sm:$0xff]  ;;  %v669_v34 = vld [vmem:[#allocation2 + $0x278] sm:$0xff] }
  0x17   :  { %788 = vmatpush.msra.mxu1 %v706_v21  ;;  %918 = vmatpush.msra.mxu3 %v707_v23  ;;  %v701_v35 = vld [vmem:[#allocation2 + $0x378] sm:$0xff]  ;;  %v666_v36 = vld [vmem:[#allocation2 + $0x260] sm:$0xff]  ;;  %v667_v38 = vld [vmem:[#allocation2 + $0x268] sm:$0xff] }
  0x18   :  { %724 = vmatpush.msra.mxu0 %v672_v24  ;;  %854 = vmatpush.msra.mxu2 %v673_v26  ;;  %v698_v37 = vld [vmem:[#allocation2 + $0x360] sm:$0xff]  ;;  %v699_v39 = vld [vmem:[#allocation2 + $0x368] sm:$0xff]  ;;  %v664_v40 = vld [vmem:[#allocation2 + $0x250] sm:$0xff] }
  0x19   :  { %789 = vmatpush.msra.mxu1 %v704_v25  ;;  %919 = vmatpush.msra.mxu3 %v705_v27  ;;  %v696_v41 = vld [vmem:[#allocation2 + $0x350] sm:$0xff]  ;;  %v665_v42 = vld [vmem:[#allocation2 + $0x258] sm:$0xff]  ;;  %v662_v44 = vld [vmem:[#allocation2 + $0x240] sm:$0xff] }
  0x1a   :  { %725 = vmatpush.msra.mxu0 %v670_v28  ;;  %855 = vmatpush.msra.mxu2 %v671_v30  ;;  %v697_v43 = vld [vmem:[#allocation2 + $0x358] sm:$0xff]  ;;  %v694_v45 = vld [vmem:[#allocation2 + $0x340] sm:$0xff]  ;;  %v663_v46 = vld [vmem:[#allocation2 + $0x248] sm:$0xff] }
  0x1b   :  { %790 = vmatpush.msra.mxu1 %v702_v29  ;;  %920 = vmatpush.msra.mxu3 %v703_v31  ;;  %v695_v47 = vld [vmem:[#allocation2 + $0x348] sm:$0xff]  ;;  %v660_v48 = vld [vmem:[#allocation2 + $0x230] sm:$0xff]  ;;  %v661_v50 = vld [vmem:[#allocation2 + $0x238] sm:$0xff] }
  0x1c   :  { %726 = vmatpush.msra.mxu0 %v668_v32  ;;  %856 = vmatpush.msra.mxu2 %v669_v34  ;;  %v692_v49 = vld [vmem:[#allocation2 + $0x330] sm:$0xff]  ;;  %v693_v51 = vld [vmem:[#allocation2 + $0x338] sm:$0xff]  ;;  %v658_v52 = vld [vmem:[#allocation2 + $0x220] sm:$0xff] }
  0x1d   :  { %791 = vmatpush.msra.mxu1 %v700_v33  ;;  %921 = vmatpush.msra.mxu3 %v701_v35  ;;  %v690_v53 = vld [vmem:[#allocation2 + $0x320] sm:$0xff]  ;;  %v659_v54 = vld [vmem:[#allocation2 + $0x228] sm:$0xff]  ;;  %v656_v56 = vld [vmem:[#allocation2 + $0x210] sm:$0xff] }
  0x1e   :  { %727 = vmatpush.msra.mxu0 %v666_v36  ;;  %857 = vmatpush.msra.mxu2 %v667_v38  ;;  %v691_v55 = vld [vmem:[#allocation2 + $0x328] sm:$0xff]  ;;  %v688_v57 = vld [vmem:[#allocation2 + $0x310] sm:$0xff]  ;;  %v657_v58 = vld [vmem:[#allocation2 + $0x218] sm:$0xff] }
  0x1f   :  { %792 = vmatpush.msra.mxu1 %v698_v37  ;;  %922 = vmatpush.msra.mxu3 %v699_v39  ;;  %v689_v59 = vld [vmem:[#allocation2 + $0x318] sm:$0xff]  ;;  %v654_v60 = vld [vmem:[#allocation2 + $0x200] sm:$0xff]  ;;  %v655_v62 = vld [vmem:[#allocation2 + $0x208] sm:$0xff] }
  0x20   :  { %728 = vmatpush.msra.mxu0 %v664_v40  ;;  %858 = vmatpush.msra.mxu2 %v665_v42  ;;  %v686_v61 = vld [vmem:[#allocation2 + $0x300] sm:$0xff]  ;;  %v687_v63 = vld [vmem:[#allocation2 + $0x308] sm:$0xff]  ;;  %v3633_v0 = vld [vmem:[%s6645_s0] sm:$0xff] }
  0x21   :  { %793 = vmatpush.msra.mxu1 %v696_v41  ;;  %923 = vmatpush.msra.mxu3 %v697_v43  ;;  %v3638_v1 = vld [vmem:[%s6645_s0 + $0x8] sm:$0xff]  ;;  %v619_v2 = vld [vmem:[#allocation2 + $0xf0] sm:$0xff]  ;;  %v620_v4 = vld [vmem:[#allocation2 + $0xf8] sm:$0xff] }
  0x22   :  { %729 = vmatpush.msra.mxu0 %v662_v44  ;;  %859 = vmatpush.msra.mxu2 %v663_v46  ;;  %v651_v3 = vld [vmem:[#allocation2 + $0x1f0] sm:$0xff]  ;;  %v652_v5 = vld [vmem:[#allocation2 + $0x1f8] sm:$0xff]  ;;  %v617_v6 = vld [vmem:[#allocation2 + $0xe0] sm:$0xff] }
  0x23   :  { %794 = vmatpush.msra.mxu1 %v694_v45  ;;  %924 = vmatpush.msra.mxu3 %v695_v47  ;;  %v649_v7 = vld [vmem:[#allocation2 + $0x1e0] sm:$0xff]  ;;  %v618_v8 = vld [vmem:[#allocation2 + $0xe8] sm:$0xff]  ;;  %v615_v10 = vld [vmem:[#allocation2 + $0xd0] sm:$0xff] }
  0x24   :  { %730 = vmatpush.msra.mxu0 %v660_v48  ;;  %860 = vmatpush.msra.mxu2 %v661_v50  ;;  %v650_v9 = vld [vmem:[#allocation2 + $0x1e8] sm:$0xff]  ;;  %v647_v11 = vld [vmem:[#allocation2 + $0x1d0] sm:$0xff]  ;;  %v616_v12 = vld [vmem:[#allocation2 + $0xd8] sm:$0xff] }
  0x25   :  { %795 = vmatpush.msra.mxu1 %v692_v49  ;;  %925 = vmatpush.msra.mxu3 %v693_v51  ;;  %v648_v13 = vld [vmem:[#allocation2 + $0x1d8] sm:$0xff]  ;;  %v3647_v14 = vld [vmem:[%s6645_s0 + $0x10] sm:$0xff]  ;;  %v3652_v15 = vld [vmem:[%s6645_s0 + $0x18] sm:$0xff] }
  0x26   :  { %731 = vmatpush.msra.mxu0 %v658_v52  ;;  %861 = vmatpush.msra.mxu2 %v659_v54  ;;  %v613_v16 = vld [vmem:[#allocation2 + $0xc0] sm:$0xff]  ;;  %v614_v18 = vld [vmem:[#allocation2 + $0xc8] sm:$0xff]  ;;  %v611_v20 = vld [vmem:[#allocation2 + $0xb0] sm:$0xff] }
  0x27   :  { %796 = vmatpush.msra.mxu1 %v690_v53  ;;  %926 = vmatpush.msra.mxu3 %v691_v55  ;;  %v645_v17 = vld [vmem:[#allocation2 + $0x1c0] sm:$0xff]  ;;  %v646_v19 = vld [vmem:[#allocation2 + $0x1c8] sm:$0xff]  ;;  %v643_v21 = vld [vmem:[#allocation2 + $0x1b0] sm:$0xff] }
  0x28   :  { %732 = vmatpush.msra.mxu0 %v656_v56  ;;  %862 = vmatpush.msra.mxu2 %v657_v58  ;;  %v612_v22 = vld [vmem:[#allocation2 + $0xb8] sm:$0xff]  ;;  %v609_v24 = vld [vmem:[#allocation2 + $0xa0] sm:$0xff]  ;;  %v610_v26 = vld [vmem:[#allocation2 + $0xa8] sm:$0xff] }
  0x29   :  { %797 = vmatpush.msra.mxu1 %v688_v57  ;;  %927 = vmatpush.msra.mxu3 %v689_v59  ;;  %v644_v23 = vld [vmem:[#allocation2 + $0x1b8] sm:$0xff]  ;;  %v641_v25 = vld [vmem:[#allocation2 + $0x1a0] sm:$0xff]  ;;  %v642_v27 = vld [vmem:[#allocation2 + $0x1a8] sm:$0xff] }
  0x2a   :  { %733 = vmatpush.msra.mxu0 %v654_v60  ;;  %863 = vmatpush.msra.mxu2 %v655_v62  ;;  %v3661_v28 = vld [vmem:[%s6645_s0 + $0x20] sm:$0xff]  ;;  %v3666_v29 = vld [vmem:[%s6645_s0 + $0x28] sm:$0xff]  ;;  %v607_v30 = vld [vmem:[#allocation2 + $0x90] sm:$0xff] }
  0x2b   :  { %798 = vmatpush.msra.mxu1 %v686_v61  ;;  %928 = vmatpush.msra.mxu3 %v687_v63  ;;  %v639_v31 = vld [vmem:[#allocation2 + $0x190] sm:$0xff]  ;;  %v608_v32 = vld [vmem:[#allocation2 + $0x98] sm:$0xff]  ;;  %v3675_v34 = vld [vmem:[%s6645_s0 + $0x30] sm:$0xff] }
  0x2c   :  { %734 = vmatmul.f32.vlgmr.msra.gmra.mxu0 %v3633_v0  ;;  %799 = vmatmul.f32.vlgmr.msra.gmra.mxu1 %v3638_v1  ;;  %v640_v33 = vld [vmem:[#allocation2 + $0x198] sm:$0xff]  ;;  %v3680_v35 = vld [vmem:[%s6645_s0 + $0x38] sm:$0xff]  ;;  %v605_v36 = vld [vmem:[#allocation2 + $0x80] sm:$0xff] }
  0x2d   :  { %864 = vmatmul.f32.vlgmr.msra.gmra.mxu2 %v3633_v0  ;;  %929 = vmatmul.f32.vlgmr.msra.gmra.mxu3 %v3638_v1  ;;  %v637_v37 = vld [vmem:[#allocation2 + $0x180] sm:$0xff]  ;;  %v606_v38 = vld [vmem:[#allocation2 + $0x88] sm:$0xff]  ;;  %v3689_v40 = vld [vmem:[%s6645_s0 + $0x40] sm:$0xff] }
  0x2e   :  { %978 = vmatpush.msrb.mxu0 %v619_v2  ;;  %1043 = vmatpush.msrb.mxu1 %v651_v3  ;;  %v638_v39 = vld [vmem:[#allocation2 + $0x188] sm:$0xff]  ;;  %v3694_v41 = vld [vmem:[%s6645_s0 + $0x48] sm:$0xff]  ;;  %v603_v42 = vld [vmem:[#allocation2 + $0x70] sm:$0xff] }
  0x2f   :  { %1108 = vmatpush.msrb.mxu2 %v620_v4  ;;  %1173 = vmatpush.msrb.mxu3 %v652_v5  ;;  %v635_v43 = vld [vmem:[#allocation2 + $0x170] sm:$0xff]  ;;  %v604_v44 = vld [vmem:[#allocation2 + $0x78] sm:$0xff]  ;;  %v3703_v46 = vld [vmem:[%s6645_s0 + $0x50] sm:$0xff] }
  0x30   :  { %979 = vmatpush.msrb.mxu0 %v617_v6  ;;  %1044 = vmatpush.msrb.mxu1 %v649_v7  ;;  %v636_v45 = vld [vmem:[#allocation2 + $0x178] sm:$0xff]  ;;  %v3708_v47 = vld [vmem:[%s6645_s0 + $0x58] sm:$0xff]  ;;  %v601_v48 = vld [vmem:[#allocation2 + $0x60] sm:$0xff] }
  0x31   :  { %1109 = vmatpush.msrb.mxu2 %v618_v8  ;;  %1174 = vmatpush.msrb.mxu3 %v650_v9  ;;  %v633_v49 = vld [vmem:[#allocation2 + $0x160] sm:$0xff]  ;;  %v602_v50 = vld [vmem:[#allocation2 + $0x68] sm:$0xff]  ;;  %v3717_v52 = vld [vmem:[%s6645_s0 + $0x60] sm:$0xff] }
  0x32   :  { %980 = vmatpush.msrb.mxu0 %v615_v10  ;;  %1045 = vmatpush.msrb.mxu1 %v647_v11  ;;  %v634_v51 = vld [vmem:[#allocation2 + $0x168] sm:$0xff]  ;;  %v3722_v53 = vld [vmem:[%s6645_s0 + $0x68] sm:$0xff]  ;;  %v599_v54 = vld [vmem:[#allocation2 + $0x50] sm:$0xff] }
  0x33   :  { %1110 = vmatpush.msrb.mxu2 %v616_v12  ;;  %1175 = vmatpush.msrb.mxu3 %v648_v13  ;;  %v631_v55 = vld [vmem:[#allocation2 + $0x150] sm:$0xff]  ;;  %v600_v56 = vld [vmem:[#allocation2 + $0x58] sm:$0xff]  ;;  %v3731_v58 = vld [vmem:[%s6645_s0 + $0x70] sm:$0xff] }
  0x34   :  { %737 = vmatmul.f32.gmra.mxu0 %v3647_v14  ;;  %802 = vmatmul.f32.gmra.mxu1 %v3652_v15  ;;  %v632_v57 = vld [vmem:[#allocation2 + $0x158] sm:$0xff]  ;;  %v3736_v59 = vld [vmem:[%s6645_s0 + $0x78] sm:$0xff]  ;;  %v597_v60 = vld [vmem:[#allocation2 + $0x40] sm:$0xff] }
  0x35   :  { %867 = vmatmul.f32.gmra.mxu2 %v3647_v14  ;;  %932 = vmatmul.f32.gmra.mxu3 %v3652_v15  ;;  %v629_v61 = vld [vmem:[#allocation2 + $0x140] sm:$0xff]  ;;  %v598_v62 = vld [vmem:[#allocation2 + $0x48] sm:$0xff]  ;;  %v3745_v2 = vld [vmem:[%s6645_s0 + $0x80] sm:$0xff] }
  0x36   :  { %981 = vmatpush.msrb.mxu0 %v613_v16  ;;  %1046 = vmatpush.msrb.mxu1 %v645_v17  ;;  %v630_v63 = vld [vmem:[#allocation2 + $0x148] sm:$0xff]  ;;  %v3750_v3 = vld [vmem:[%s6645_s0 + $0x88] sm:$0xff]  ;;  %v595_v4 = vld [vmem:[#allocation2 + $0x30] sm:$0xff] }
  0x37   :  { %1111 = vmatpush.msrb.mxu2 %v614_v18  ;;  %1176 = vmatpush.msrb.mxu3 %v646_v19  ;;  %v627_v5 = vld [vmem:[#allocation2 + $0x130] sm:$0xff]  ;;  %v596_v6 = vld [vmem:[#allocation2 + $0x38] sm:$0xff]  ;;  %v3759_v8 = vld [vmem:[%s6645_s0 + $0x90] sm:$0xff] }
  0x38   :  { %982 = vmatpush.msrb.mxu0 %v611_v20  ;;  %1047 = vmatpush.msrb.mxu1 %v643_v21  ;;  %v628_v7 = vld [vmem:[#allocation2 + $0x138] sm:$0xff]  ;;  %v3764_v9 = vld [vmem:[%s6645_s0 + $0x98] sm:$0xff]  ;;  %v593_v10 = vld [vmem:[#allocation2 + $0x20] sm:$0xff] }
  0x39   :  { %1112 = vmatpush.msrb.mxu2 %v612_v22  ;;  %1177 = vmatpush.msrb.mxu3 %v644_v23  ;;  %v625_v11 = vld [vmem:[#allocation2 + $0x120] sm:$0xff]  ;;  %v594_v12 = vld [vmem:[#allocation2 + $0x28] sm:$0xff]  ;;  %v3773_v16 = vld [vmem:[%s6645_s0 + $0xa0] sm:$0xff] }
  0x3a   :  { %983 = vmatpush.msrb.mxu0 %v609_v24  ;;  %1048 = vmatpush.msrb.mxu1 %v641_v25  ;;  %v626_v13 = vld [vmem:[#allocation2 + $0x128] sm:$0xff]  ;;  %v3778_v17 = vld [vmem:[%s6645_s0 + $0xa8] sm:$0xff]  ;;  %v591_v18 = vld [vmem:[#allocation2 + $0x10] sm:$0xff] }
  0x3b   :  { %1113 = vmatpush.msrb.mxu2 %v610_v26  ;;  %1178 = vmatpush.msrb.mxu3 %v642_v27  ;;  %v623_v19 = vld [vmem:[#allocation2 + $0x110] sm:$0xff]  ;;  %v592_v20 = vld [vmem:[#allocation2 + $0x18] sm:$0xff]  ;;  %v3787_v22 = vld [vmem:[%s6645_s0 + $0xb0] sm:$0xff] }
  0x3c   :  { %740 = vmatmul.f32.gmra.mxu0 %v3661_v28  ;;  %805 = vmatmul.f32.gmra.mxu1 %v3666_v29  ;;  %v624_v21 = vld [vmem:[#allocation2 + $0x118] sm:$0xff]  ;;  %v3792_v23 = vld [vmem:[%s6645_s0 + $0xb8] sm:$0xff]  ;;  %v589_v24 = vld [vmem:[#allocation2] sm:$0xff] }
  0x3d   :  { %870 = vmatmul.f32.gmra.mxu2 %v3661_v28  ;;  %935 = vmatmul.f32.gmra.mxu3 %v3666_v29  ;;  %v621_v25 = vld [vmem:[#allocation2 + $0x100] sm:$0xff]  ;;  %v590_v26 = vld [vmem:[#allocation2 + $0x8] sm:$0xff] }
  0x3e   :  { %984 = vmatpush.msrb.mxu0 %v607_v30  ;;  %1049 = vmatpush.msrb.mxu1 %v639_v31  ;;  %v622_v27 = vld [vmem:[#allocation2 + $0x108] sm:$0xff]  ;;  %v3801_v30 = vld [vmem:[%s6645_s0 + $0xc0] sm:$0xff]  ;;  %v3806_v31 = vld [vmem:[%s6645_s0 + $0xc8] sm:$0xff] }
  0x3f   :  { %1114 = vmatpush.msrb.mxu2 %v608_v32  ;;  %1179 = vmatpush.msrb.mxu3 %v640_v33  ;;  %v1269_v32 = vld [vmem:[#allocation2 + $0x4f0] sm:$0xff] }
  0x40   :  { %985 = vmatpush.msrb.mxu0 %v605_v36  ;;  %1050 = vmatpush.msrb.mxu1 %v637_v37  ;;  %v1301_v33 = vld [vmem:[#allocation2 + $0x5f0] sm:$0xff]  ;;  %v1270_v36 = vld [vmem:[#allocation2 + $0x4f8] sm:$0xff] }
  0x41   :  { %1115 = vmatpush.msrb.mxu2 %v606_v38  ;;  %1180 = vmatpush.msrb.mxu3 %v638_v39  ;;  %v1302_v37 = vld [vmem:[#allocation2 + $0x5f8] sm:$0xff]  ;;  %v3815_v38 = vld [vmem:[%s6645_s0 + $0xd0] sm:$0xff]  ;;  %v3820_v39 = vld [vmem:[%s6645_s0 + $0xd8] sm:$0xff] }
  0x42   :  { %986 = vmatpush.msrb.mxu0 %v603_v42  ;;  %1051 = vmatpush.msrb.mxu1 %v635_v43  ;;  %v1267_v42 = vld [vmem:[#allocation2 + $0x4e0] sm:$0xff] }
  0x43   :  { %1116 = vmatpush.msrb.mxu2 %v604_v44  ;;  %1181 = vmatpush.msrb.mxu3 %v636_v45  ;;  %v1299_v43 = vld [vmem:[#allocation2 + $0x5e0] sm:$0xff]  ;;  %v1268_v44 = vld [vmem:[#allocation2 + $0x4e8] sm:$0xff]  ;;  %v6653_v45 = vlaneseq }
  0x44   :  { %743 = vmatmul.f32.gmra.mxu0 %v3675_v34  ;;  %808 = vmatmul.f32.gmra.mxu1 %v3680_v35 }
  0x45   :  { %873 = vmatmul.f32.gmra.mxu2 %v3675_v34  ;;  %938 = vmatmul.f32.gmra.mxu3 %v3680_v35 }
  0x46   :  { %987 = vmatpush.msrb.mxu0 %v601_v48  ;;  %1052 = vmatpush.msrb.mxu1 %v633_v49  ;;  %v1300_v48 = vld [vmem:[#allocation2 + $0x5e8] sm:$0xff]  ;;  %v3829_v49 = vld [vmem:[%s6645_s0 + $0xe0] sm:$0xff] }
  0x47   :  { %1117 = vmatpush.msrb.mxu2 %v602_v50  ;;  %1182 = vmatpush.msrb.mxu3 %v634_v51  ;;  %v3834_v50 = vld [vmem:[%s6645_s0 + $0xe8] sm:$0xff]  ;;  %v3837_v51 = vshrl.u32 %v6653_v45, 7 }
  0x48   :  { %988 = vmatpush.msrb.mxu0 %v599_v54  ;;  %1053 = vmatpush.msrb.mxu1 %v631_v55  ;;  %v1265_v54 = vld [vmem:[#allocation2 + $0x4d0] sm:$0xff] }
  0x49   :  { %1118 = vmatpush.msrb.mxu2 %v600_v56  ;;  %1183 = vmatpush.msrb.mxu3 %v632_v57  ;;  %6760 = vst [vmem:[#allocation8_spill] sm:$0xff] %v3837_v51  ;;  %v1297_v55 = vld [vmem:[#allocation2 + $0x5d0] sm:$0xff]  ;;  %v1266_v56 = vld [vmem:[#allocation2 + $0x4d8] sm:$0xff]  ;;  %v6658_v57 = vand.u32 7, %v3837_v51  ;;  %vm427_vm1 = vcmp.lt.s32.totalorder %v3837_v51, 1 }
  0x4a   :  { %989 = vmatpush.msrb.mxu0 %v597_v60  ;;  %1054 = vmatpush.msrb.mxu1 %v629_v61  ;;  %v1298_v60 = vld [vmem:[#allocation2 + $0x5d8] sm:$0xff]  ;;  %v3847_v61 = vld [vmem:[%s6645_s0 + $0xf0] sm:$0xff] }
  0x4b   :  { %1119 = vmatpush.msrb.mxu2 %v598_v62  ;;  %1184 = vmatpush.msrb.mxu3 %v630_v63  ;;  %v3852_v62 = vld [vmem:[%s6645_s0 + $0xf8] sm:$0xff]  ;;  %v395_v63 = vrot.slane %v3633_v0, 7  ;;  %vm299_vm0 = vcmp.ne.s32.totalorder %v6658_v57, 0  ;;  %v6662_v0 = vmov 0.0   ;;  %v405_v57 = vrot.slane %v3703_v46, 7 }
  0x4c   :  { %746 = vmatmul.f32.gmra.mxu0 %v3689_v40  ;;  %811 = vmatmul.f32.gmra.mxu1 %v3694_v41 }
  0x4d   :  { %876 = vmatmul.f32.gmra.mxu2 %v3689_v40  ;;  %941 = vmatmul.f32.gmra.mxu3 %v3694_v41 }
  0x4e   :  { %990 = vmatpush.msrb.mxu0 %v595_v4  ;;  %1055 = vmatpush.msrb.mxu1 %v627_v5  ;;  %v6661_v4 = vrot.slane %v3847_v61, 7  ;;  %v396_v5 = vrot.slane %v3638_v1, 7  ;;  %v3869_v1 = vsel %vm299_vm0, 1.0, %v6662_v0 }
  0x4f   :  { %1120 = vmatpush.msrb.mxu2 %v596_v6  ;;  %1185 = vmatpush.msrb.mxu3 %v628_v7  ;;  %v6660_v6 = vrot.slane %v3852_v62, 7  ;;  %v3862_v7 = vadd.s32 8, %v3837_v51  ;;  %6761 = vst [vmem:[#allocation9_spill] sm:$0xff] %v3869_v1 }
  0x50   :  { %991 = vmatpush.msrb.mxu0 %v593_v10  ;;  %1056 = vmatpush.msrb.mxu1 %v625_v11  ;;  %v458_v10 = vsel %vm427_vm1, %v6661_v4, %v395_v63 }
  0x51   :  { %1121 = vmatpush.msrb.mxu2 %v594_v12  ;;  %1186 = vmatpush.msrb.mxu3 %v626_v13  ;;  %v459_v11 = vsel %vm427_vm1, %v6660_v6, %v396_v5  ;;  %v1263_v12 = vld [vmem:[#allocation2 + $0x4c0] sm:$0xff] }
  0x52   :  { %992 = vmatpush.msrb.mxu0 %v591_v18  ;;  %1057 = vmatpush.msrb.mxu1 %v623_v19  ;;  %v1295_v13 = vld [vmem:[#allocation2 + $0x5c0] sm:$0xff]  ;;  %v1264_v18 = vld [vmem:[#allocation2 + $0x4c8] sm:$0xff]  ;;  %v6657_v19 = vand.u32 7, %v3862_v7 }
  0x53   :  { %1122 = vmatpush.msrb.mxu2 %v592_v20  ;;  %1187 = vmatpush.msrb.mxu3 %v624_v21  ;;  %v1296_v20 = vld [vmem:[#allocation2 + $0x5c8] sm:$0xff]  ;;  %v460_v21 = vmul.f32 %v3869_v1, %v458_v10 }
  0x54   :  { %749 = vmatmul.f32.gmra.mxu0 %v3703_v46  ;;  %814 = vmatmul.f32.gmra.mxu1 %v3708_v47  ;;  %vm300_vm2 = vcmp.ne.s32.totalorder %v6657_v19, 0 }
  0x55   :  { %879 = vmatmul.f32.gmra.mxu2 %v3703_v46  ;;  %944 = vmatmul.f32.gmra.mxu3 %v3708_v47 }
  0x56   :  { %993 = vmatpush.msrb.mxu0 %v589_v24  ;;  %1058 = vmatpush.msrb.mxu1 %v621_v25  ;;  %v461_v24 = vmul.f32 %v3869_v1, %v459_v11  ;;  %v399_v11 = vrot.slane %v3661_v28, 7  ;;  %v411_v1 = vrot.slane %v3745_v2, 7 }
  0x57   :  { %1123 = vmatpush.msrb.mxu2 %v590_v26  ;;  %1188 = vmatpush.msrb.mxu3 %v622_v27  ;;  %v397_v27 = vrot.slane %v3647_v14, 7 }
  0x58   :  { %1303 = vmatpush.msra.mxu0 %v1269_v32  ;;  %1368 = vmatpush.msra.mxu1 %v1301_v33  ;;  %v398_v32 = vrot.slane %v3652_v15, 7  ;;  %v3891_v33 = vadd.s32 16, %v3837_v51  ;;  %v1261_v15 = vld [vmem:[#allocation2 + $0x4b0] sm:$0xff] }
  0x59   :  { %1433 = vmatpush.msra.mxu2 %v1270_v36  ;;  %1498 = vmatpush.msra.mxu3 %v1302_v37  ;;  %v3894_v36 = vsel %vm300_vm2, 1.0, %v6662_v0  ;;  %v456_v37 = vsel %vm427_vm1, %v395_v63, %v397_v27 }
  0x5a   :  { %1304 = vmatpush.msra.mxu0 %v1267_v42  ;;  %1369 = vmatpush.msra.mxu1 %v1299_v43  ;;  %6762 = vst [vmem:[#allocation10_spill] sm:$0xff] %v3894_v36  ;;  %v457_v14 = vsel %vm427_vm1, %v396_v5, %v398_v32  ;;  %v1293_v42 = vld [vmem:[#allocation2 + $0x5b0] sm:$0xff]  ;;  %v1262_v43 = vld [vmem:[#allocation2 + $0x4b8] sm:$0xff] }
  0x5b   :  { %1434 = vmatpush.msra.mxu2 %v1268_v44  ;;  %1499 = vmatpush.msra.mxu3 %v1300_v48  ;;  %v6656_v44 = vand.u32 7, %v3891_v33  ;;  %v1294_v48 = vld [vmem:[#allocation2 + $0x5b8] sm:$0xff] }
  0x5c   :  { %752 = vmatmul.f32.gmra.mxu0 %v3717_v52  ;;  %817 = vmatmul.f32.gmra.mxu1 %v3722_v53 }
  0x5d   :  { %882 = vmatmul.f32.gmra.mxu2 %v3717_v52  ;;  %947 = vmatmul.f32.gmra.mxu3 %v3722_v53  ;;  %vm301_vm3 = vcmp.ne.s32.totalorder %v6656_v44, 0 }
  0x5e   :  { %1305 = vmatpush.msra.mxu0 %v1265_v54  ;;  %1370 = vmatpush.msra.mxu1 %v1297_v55 }
  0x5f   :  { %1435 = vmatpush.msra.mxu2 %v1266_v56  ;;  %1500 = vmatpush.msra.mxu3 %v1298_v60  ;;  %v462_v56 = vmul.f32 %v3894_v36, %v456_v37  ;;  %v463_v60 = vmul.f32 %v3894_v36, %v457_v14  ;;  %v1292_v14 = vld [vmem:[#allocation2 + $0x5a8] sm:$0xff] }
  0x60   :  { %1306 = vmatpush.msra.mxu0 %v1263_v12  ;;  %1371 = vmatpush.msra.mxu1 %v1295_v13  ;;  %v400_v12 = vrot.slane %v3666_v29, 7  ;;  %v3914_v13 = vadd.s32 24, %v3837_v51  ;;  %v1259_v29 = vld [vmem:[#allocation2 + $0x4a0] sm:$0xff] }
  0x61   :  { %1436 = vmatpush.msra.mxu2 %v1264_v18  ;;  %1501 = vmatpush.msra.mxu3 %v1296_v20  ;;  %v3917_v18 = vsel %vm301_vm3, 1.0, %v6662_v0  ;;  %v454_v20 = vsel %vm427_vm1, %v397_v27, %v399_v11  ;;  %vm524_vm3 = vcmp.lt.s32.totalorder %v3837_v51, 7 }
  0x62   :  { %1307 = vmatpush.msra.mxu0 %v1261_v15  ;;  %1372 = vmatpush.msra.mxu1 %v1293_v42  ;;  %6763 = vst [vmem:[#allocation11_spill] sm:$0xff] %v3917_v18  ;;  %v455_v28 = vsel %vm427_vm1, %v398_v32, %v400_v12  ;;  %v6654_v37 = vand.u32 7, %v3914_v13 }
  0x63   :  { %1437 = vmatpush.msra.mxu2 %v1262_v43  ;;  %1502 = vmatpush.msra.mxu3 %v1294_v48  ;;  %v464_v43 = vmul.f32 %v3917_v18, %v454_v20  ;;  %v465_v48 = vmul.f32 %v3917_v18, %v455_v28  ;;  %v409_v18 = vrot.slane %v3731_v58, 7 }
  0x64   :  { %755 = vmatmul.f32.gmra.mxu0 %v3731_v58  ;;  %820 = vmatmul.f32.gmra.mxu1 %v3736_v59  ;;  %vm302_vm4 = vcmp.ne.s32.totalorder %v6654_v37, 0  ;;  %v403_v37 = vrot.slane %v3689_v40, 7 }
  0x65   :  { %885 = vmatmul.f32.gmra.mxu2 %v3731_v58  ;;  %950 = vmatmul.f32.gmra.mxu3 %v3736_v59  ;;  %v3940_v20 = vsel %vm302_vm4, 1.0, %v6662_v0 }
  0x66   :  { %1308 = vmatpush.msra.mxu0 %v1259_v29  ;;  %1503 = vmatpush.msra.mxu3 %v1292_v14  ;;  %6764 = vst [vmem:[#allocation12_spill] sm:$0xff] %v3940_v20  ;;  %v1289_v29 = vld [vmem:[#allocation2 + $0x590] sm:$0xff]  ;;  %v1290_v14 = vld [vmem:[#allocation2 + $0x598] sm:$0xff] }
  0x68   :  { %1504 = vmatpush.msra.mxu3 %v1290_v14  ;;  %v1256_v14 = vld [vmem:[#allocation2 + $0x488] sm:$0xff] }
  0x6c   :  { %758 = vmatmul.f32.gmra.mxu0 %v3745_v2  ;;  %823 = vmatmul.f32.gmra.mxu1 %v3750_v3 }
  0x6d   :  { %888 = vmatmul.f32.gmra.mxu2 %v3745_v2  ;;  %953 = vmatmul.f32.gmra.mxu3 %v3750_v3 }
  0x74   :  { %761 = vmatmul.f32.gmra.mxu0 %v3759_v8  ;;  %826 = vmatmul.f32.gmra.mxu1 %v3764_v9 }
  0x75   :  { %891 = vmatmul.f32.gmra.mxu2 %v3759_v8  ;;  %956 = vmatmul.f32.gmra.mxu3 %v3764_v9 }
  0x7c   :  { %764 = vmatmul.f32.gmra.mxu0 %v3773_v16  ;;  %829 = vmatmul.f32.gmra.mxu1 %v3778_v17 }
  0x7d   :  { %894 = vmatmul.f32.gmra.mxu2 %v3773_v16  ;;  %959 = vmatmul.f32.gmra.mxu3 %v3778_v17 }
  0x84   :  { %767 = vmatmul.f32.gmra.mxu0 %v3787_v22  ;;  %832 = vmatmul.f32.gmra.mxu1 %v3792_v23 }
  0x85   :  { %897 = vmatmul.f32.gmra.mxu2 %v3787_v22  ;;  %962 = vmatmul.f32.gmra.mxu3 %v3792_v23 }
  0x8c   :  { %770 = vmatmul.f32.gmra.mxu0 %v3801_v30  ;;  %835 = vmatmul.f32.gmra.mxu1 %v3806_v31 }
  0x8d   :  { %900 = vmatmul.f32.gmra.mxu2 %v3801_v30  ;;  %965 = vmatmul.f32.gmra.mxu3 %v3806_v31 }
  0x94   :  { %773 = vmatmul.f32.gmra.mxu0 %v3815_v38  ;;  %838 = vmatmul.f32.gmra.mxu1 %v3820_v39 }
  0x95   :  { %903 = vmatmul.f32.gmra.mxu2 %v3815_v38  ;;  %968 = vmatmul.f32.gmra.mxu3 %v3820_v39 }
  0x9c   :  { %776 = vmatmul.f32.gmra.mxu0 %v3829_v49  ;;  %841 = vmatmul.f32.gmra.mxu1 %v3834_v50 }
  0x9d   :  { %906 = vmatmul.f32.gmra.mxu2 %v3829_v49  ;;  %971 = vmatmul.f32.gmra.mxu3 %v3834_v50 }
  0xa4   :  { %779 = vmatmul.f32.gmra.mxu0 %v3847_v61  ;;  %844 = vmatmul.f32.gmra.mxu1 %v3852_v62 }
  0xa5   :  { %909 = vmatmul.f32.gmra.mxu2 %v3847_v61  ;;  %974 = vmatmul.f32.gmra.mxu3 %v3852_v62 }
  0xa9   :  { %v3882_v25 = vpop.f32.mrf.mxu0  ;;  %v3884_v26 = vpop.f32.mrf.mxu1 }
  0xac   :  { %994 = vmatmul.f32.vlgmr.msrb.gmra.mxu0 %v460_v21  ;;  %1059 = vmatmul.f32.vlgmr.msrb.gmra.mxu1 %v461_v24 }
  0xad   :  { %1124 = vmatmul.f32.vlgmr.msrb.gmra.mxu2 %v460_v21  ;;  %1189 = vmatmul.f32.vlgmr.msrb.gmra.mxu3 %v461_v24  ;;  %v1291_v21 = vld [vmem:[#allocation2 + $0x5a0] sm:$0xff]  ;;  %v1260_v24 = vld [vmem:[#allocation2 + $0x4a8] sm:$0xff] }
  0xae   :  { %1373 = vmatpush.msra.mxu1 %v1291_v21  ;;  %1438 = vmatpush.msra.mxu2 %v1260_v24  ;;  %v1258_v21 = vld [vmem:[#allocation2 + $0x498] sm:$0xff] }
  0xb0   :  { %v865_v54 = vpop.f32.mrf.mxu2  ;;  %v930_v55 = vpop.f32.mrf.mxu3  ;;  %1374 = vmatpush.msra.mxu1 %v1289_v29  ;;  %1439 = vmatpush.msra.mxu2 %v1258_v21  ;;  %v3960_v29 = vadd.s32 40, %v3837_v51  ;;  %v1287_v21 = vld [vmem:[#allocation2 + $0x580] sm:$0xff] }
  0xb1   :  { %v3903_v63 = vadd.f32 %v930_v55, %v865_v54  ;;  %v3905_v10 = vpop.f32.mrf.mxu0  ;;  %v3907_v5 = vpop.f32.mrf.mxu1  ;;  %v401_v55 = vrot.slane %v3675_v34, 7 }
  0xb2   :  { %1375 = vmatpush.msra.mxu1 %v1287_v21  ;;  %1440 = vmatpush.msra.mxu2 %v1256_v14  ;;  %v3983_v21 = vadd.s32 48, %v3837_v51  ;;  %v1285_v14 = vld [vmem:[#allocation2 + $0x570] sm:$0xff] }
  0xb3   :  { %v452_v28 = vsel %vm427_vm1, %v399_v11, %v401_v55 }
  0xb4   :  { %997 = vmatmul.f32.gmra.mxu0 %v462_v56  ;;  %1062 = vmatmul.f32.gmra.mxu1 %v463_v60 }
  0xb5   :  { %1127 = vmatmul.f32.gmra.mxu2 %v462_v56  ;;  %1192 = vmatmul.f32.gmra.mxu3 %v463_v60  ;;  %v402_v56 = vrot.slane %v3680_v35, 7  ;;  %v3937_v60 = vadd.s32 32, %v3837_v51  ;;  %v1257_v35 = vld [vmem:[#allocation2 + $0x490] sm:$0xff] }
  0xb6   :  { %1309 = vmatpush.msra.mxu0 %v1257_v35  ;;  %v404_v35 = vrot.slane %v3694_v41, 7  ;;  %v1255_v41 = vld [vmem:[#allocation2 + $0x480] sm:$0xff]  ;;  %1376 = vmatpush.msra.mxu1 %v1285_v14  ;;  %v4006_v14 = vadd.s32 56, %v3837_v51 }
  0xb7   :  { %v453_v34 = vsel %vm427_vm1, %v400_v12, %v402_v56  ;;  %v6655_v24 = vand.u32 7, %v3937_v60 }
  0xb8   :  { %v868_v15 = vpop.f32.mrf.mxu2  ;;  %v933_v42 = vpop.f32.mrf.mxu3  ;;  %v451_v40 = vsel %vm427_vm1, %v402_v56, %v404_v35  ;;  %1310 = vmatpush.msra.mxu0 %v1255_v41  ;;  %v406_v41 = vrot.slane %v3708_v47, 7  ;;  %v1253_v47 = vld [vmem:[#allocation2 + $0x470] sm:$0xff] }
  0xb9   :  { %v3926_v27 = vadd.f32 %v933_v42, %v868_v15  ;;  %v3928_v54 = vpop.f32.mrf.mxu0  ;;  %v3930_v32 = vpop.f32.mrf.mxu1  ;;  %vm303_vm5 = vcmp.ne.s32.totalorder %v6655_v24, 0 }
  0xba   :  { %v449_v46 = vsel %vm427_vm1, %v404_v35, %v406_v41  ;;  %1311 = vmatpush.msra.mxu0 %v1253_v47  ;;  %v408_v47 = vrot.slane %v3722_v53, 7  ;;  %v1251_v53 = vld [vmem:[#allocation2 + $0x460] sm:$0xff] }
  0xbc   :  { %1000 = vmatmul.f32.gmra.mxu0 %v464_v43  ;;  %1065 = vmatmul.f32.gmra.mxu1 %v465_v48 }
  0xbd   :  { %1130 = vmatmul.f32.gmra.mxu2 %v464_v43  ;;  %1195 = vmatmul.f32.gmra.mxu3 %v465_v48  ;;  %v466_v43 = vmul.f32 %v3940_v20, %v452_v28  ;;  %v467_v48 = vmul.f32 %v3940_v20, %v453_v34  ;;  %v3963_v28 = vsel %vm303_vm5, 1.0, %v6662_v0  ;;  %v450_v34 = vsel %vm427_vm1, %v401_v55, %v403_v37 }
  0xbe   :  { %6765 = vst [vmem:[#allocation13_spill] sm:$0xff] %v3963_v28  ;;  %v468_v24 = vmul.f32 %v3963_v28, %v450_v34  ;;  %v469_v44 = vmul.f32 %v3963_v28, %v451_v40  ;;  %v448_v40 = vsel %vm427_vm1, %v403_v37, %v405_v57  ;;  %1312 = vmatpush.msra.mxu0 %v1251_v53  ;;  %v410_v53 = vrot.slane %v3736_v59, 7  ;;  %v1249_v59 = vld [vmem:[#allocation2 + $0x450] sm:$0xff] }
  0xc0   :  { %v871_v15 = vpop.f32.mrf.mxu2  ;;  %v936_v42 = vpop.f32.mrf.mxu3  ;;  %v445_v58 = vsel %vm427_vm1, %v408_v47, %v410_v53  ;;  %1313 = vmatpush.msra.mxu0 %v1249_v59  ;;  %v412_v59 = vrot.slane %v3750_v3, 7  ;;  %v1247_v3 = vld [vmem:[#allocation2 + $0x440] sm:$0xff] }
  0xc1   :  { %v3949_v11 = vadd.f32 %v936_v42, %v871_v15  ;;  %v3951_v45 = vpop.f32.mrf.mxu0  ;;  %v3953_v12 = vpop.f32.mrf.mxu1  ;;  %v6659_v15 = vand.u32 7, %v3960_v29  ;;  %v1288_v42 = vld [vmem:[#allocation2 + $0x588] sm:$0xff] }
  0xc2   :  { %1505 = vmatpush.msra.mxu3 %v1288_v42  ;;  %v1254_v42 = vld [vmem:[#allocation2 + $0x478] sm:$0xff]  ;;  %v443_v2 = vsel %vm427_vm1, %v410_v53, %v412_v59  ;;  %1314 = vmatpush.msra.mxu0 %v1247_v3  ;;  %v414_v3 = vrot.slane %v3764_v9, 7  ;;  %v1245_v9 = vld [vmem:[#allocation2 + $0x430] sm:$0xff] }
  0xc3   :  { %vm304_vm6 = vcmp.ne.s32.totalorder %v6659_v15, 0  ;;  %1441 = vmatpush.msra.mxu2 %v1254_v42 }
  0xc4   :  { %1003 = vmatmul.f32.gmra.mxu0 %v466_v43  ;;  %1068 = vmatmul.f32.gmra.mxu1 %v467_v48  ;;  %v3986_v34 = vsel %vm304_vm6, 1.0, %v6662_v0  ;;  %v407_v0 = vrot.slane %v3717_v52, 7  ;;  %v447_v52 = vsel %vm427_vm1, %v406_v41, %v408_v47 }
  0xc5   :  { %1133 = vmatmul.f32.gmra.mxu2 %v466_v43  ;;  %1198 = vmatmul.f32.gmra.mxu3 %v467_v48  ;;  %6766 = vst [vmem:[#allocation14_spill] sm:$0xff] %v3986_v34  ;;  %v470_v15 = vmul.f32 %v3986_v34, %v448_v40  ;;  %v471_v6 = vmul.f32 %v3986_v34, %v449_v46  ;;  %v6767_v40 = vmov 0.0  }
  0xc6   :  { %v446_v42 = vsel %vm427_vm1, %v405_v57, %v407_v0  ;;  %1315 = vmatpush.msra.mxu0 %v1245_v9  ;;  %v416_v9 = vrot.slane %v3778_v17, 7  ;;  %v1243_v17 = vld [vmem:[#allocation2 + $0x420] sm:$0xff] }
  0xc8   :  { %v874_v43 = vpop.f32.mrf.mxu2  ;;  %v939_v48 = vpop.f32.mrf.mxu3  ;;  %1316 = vmatpush.msra.mxu0 %v1243_v17  ;;  %v418_v17 = vrot.slane %v3792_v23, 7  ;;  %v1241_v23 = vld [vmem:[#allocation2 + $0x410] sm:$0xff] }
  0xc9   :  { %v3972_v55 = vadd.f32 %v939_v48, %v874_v43  ;;  %v3974_v19 = vpop.f32.mrf.mxu0  ;;  %v3976_v56 = vpop.f32.mrf.mxu1  ;;  %v6664_v43 = vand.u32 7, %v3983_v21  ;;  %v1286_v48 = vld [vmem:[#allocation2 + $0x578] sm:$0xff] }
  0xca   :  { %1506 = vmatpush.msra.mxu3 %v1286_v48  ;;  %v1283_v48 = vld [vmem:[#allocation2 + $0x560] sm:$0xff]  ;;  %1317 = vmatpush.msra.mxu0 %v1241_v23  ;;  %v420_v23 = vrot.slane %v3806_v31, 7 }
  0xcb   :  { %vm305_vm7 = vcmp.ne.s32.totalorder %v6664_v43, 0  ;;  %1377 = vmatpush.msra.mxu1 %v1283_v48  ;;  %v1284_v43 = vld [vmem:[#allocation2 + $0x568] sm:$0xff]  ;;  %v1281_v48 = vld [vmem:[#allocation2 + $0x550] sm:$0xff]  ;;  %v1239_v31 = vld [vmem:[#allocation2 + $0x400] sm:$0xff] }
  0xcc   :  { %1006 = vmatmul.f32.gmra.mxu0 %v468_v24  ;;  %1071 = vmatmul.f32.gmra.mxu1 %v469_v44  ;;  %v4009_v46 = vsel %vm305_vm7, 1.0, %v6767_v40 }
  0xcd   :  { %1136 = vmatmul.f32.gmra.mxu2 %v468_v24  ;;  %1201 = vmatmul.f32.gmra.mxu3 %v469_v44  ;;  %6768 = vst [vmem:[#allocation15_spill] sm:$0xff] %v4009_v46  ;;  %v472_v34 = vmul.f32 %v4009_v46, %v446_v42  ;;  %v473_v28 = vmul.f32 %v4009_v46, %v447_v52 }
  0xce   :  { %1507 = vmatpush.msra.mxu3 %v1284_v43  ;;  %v4029_v43 = vadd.s32 64, %v3837_v51  ;;  %v444_v52 = vsel %vm427_vm1, %v407_v0, %v409_v18  ;;  %1378 = vmatpush.msra.mxu1 %v1281_v48  ;;  %v4052_v48 = vadd.s32 72, %v3837_v51 }
  0xcf   :  { %1318 = vmatpush.msra.mxu0 %v1239_v31  ;;  %v422_v31 = vrot.slane %v3820_v39, 7 }
  0xd0   :  { %v877_v44 = vpop.f32.mrf.mxu2  ;;  %v942_v24 = vpop.f32.mrf.mxu3 }
  0xd1   :  { %v3995_v37 = vadd.f32 %v942_v24, %v877_v44  ;;  %v3997_v4 = vpop.f32.mrf.mxu0  ;;  %v3999_v35 = vpop.f32.mrf.mxu1  ;;  %v1252_v44 = vld [vmem:[#allocation2 + $0x468] sm:$0xff]  ;;  %v6673_v24 = vand.u32 7, %v4006_v14 }
  0xd2   :  { %1442 = vmatpush.msra.mxu2 %v1252_v44  ;;  %v1250_v44 = vld [vmem:[#allocation2 + $0x458] sm:$0xff] }
  0xd3   :  { %vm306_vm8 = vcmp.ne.s32.totalorder %v6673_v24, 0 }
  0xd4   :  { %1009 = vmatmul.f32.gmra.mxu0 %v470_v15  ;;  %1074 = vmatmul.f32.gmra.mxu1 %v471_v6  ;;  %v4032_v42 = vsel %vm306_vm8, 1.0, %v6767_v40 }
  0xd5   :  { %1139 = vmatmul.f32.gmra.mxu2 %v470_v15  ;;  %1204 = vmatmul.f32.gmra.mxu3 %v471_v6  ;;  %6769 = vst [vmem:[#allocation16_spill] sm:$0xff] %v4032_v42  ;;  %v474_v24 = vmul.f32 %v4032_v42, %v444_v52  ;;  %v475_v46 = vmul.f32 %v4032_v42, %v445_v58 }
  0xd6   :  { %1443 = vmatpush.msra.mxu2 %v1250_v44  ;;  %v442_v58 = vsel %vm427_vm1, %v409_v18, %v411_v1  ;;  %v1279_v44 = vld [vmem:[#allocation2 + $0x540] sm:$0xff] }
  0xd7   :  { %1379 = vmatpush.msra.mxu1 %v1279_v44  ;;  %v4075_v44 = vadd.s32 80, %v3837_v51 }
  0xd8   :  { %v880_v6 = vpop.f32.mrf.mxu2  ;;  %v945_v15 = vpop.f32.mrf.mxu3 }
  0xd9   :  { %v4018_v57 = vadd.f32 %v945_v15, %v880_v6  ;;  %v4020_v20 = vpop.f32.mrf.mxu0  ;;  %v4022_v41 = vpop.f32.mrf.mxu1  ;;  %v6680_v6 = vand.u32 7, %v4029_v43  ;;  %v1282_v15 = vld [vmem:[#allocation2 + $0x558] sm:$0xff] }
  0xda   :  { %1508 = vmatpush.msra.mxu3 %v1282_v15  ;;  %v1248_v15 = vld [vmem:[#allocation2 + $0x448] sm:$0xff] }
  0xdb   :  { %vm307_vm9 = vcmp.ne.s32.totalorder %v6680_v6, 0  ;;  %1444 = vmatpush.msra.mxu2 %v1248_v15  ;;  %v1277_v15 = vld [vmem:[#allocation2 + $0x530] sm:$0xff] }
  0xdc   :  { %1012 = vmatmul.f32.gmra.mxu0 %v472_v34  ;;  %1077 = vmatmul.f32.gmra.mxu1 %v473_v28  ;;  %v4055_v52 = vsel %vm307_vm9, 1.0, %v6767_v40 }
  0xdd   :  { %1142 = vmatmul.f32.gmra.mxu2 %v472_v34  ;;  %1207 = vmatmul.f32.gmra.mxu3 %v473_v28  ;;  %6772 = vst [vmem:[#allocation19_spill] sm:$0xff] %v4055_v52  ;;  %v476_v6 = vmul.f32 %v4055_v52, %v442_v58  ;;  %v477_v42 = vmul.f32 %v4055_v52, %v443_v2 }
  0xde   :  { %1380 = vmatpush.msra.mxu1 %v1277_v15  ;;  %v4098_v15 = vadd.s32 88, %v3837_v51 }
  0xe0   :  { %v883_v28 = vpop.f32.mrf.mxu2  ;;  %v948_v34 = vpop.f32.mrf.mxu3 }
  0xe1   :  { %v4041_v0 = vadd.f32 %v948_v34, %v883_v28  ;;  %v4043_v36 = vpop.f32.mrf.mxu0  ;;  %v4045_v47 = vpop.f32.mrf.mxu1  ;;  %v6683_v28 = vand.u32 7, %v4052_v48  ;;  %v1280_v34 = vld [vmem:[#allocation2 + $0x548] sm:$0xff] }
  0xe2   :  { %6770 = vst [vmem:[#allocation17_spill] sm:$0xff] %v4043_v36  ;;  %1509 = vmatpush.msra.mxu3 %v1280_v34  ;;  %v413_v36 = vrot.slane %v3759_v8, 7  ;;  %v441_v8 = vsel %vm427_vm1, %v412_v59, %v414_v3  ;;  %v1246_v34 = vld [vmem:[#allocation2 + $0x438] sm:$0xff] }
  0xe3   :  { %6771 = vst [vmem:[#allocation18_spill] sm:$0xff] %v4045_v47  ;;  %vm308_vm10 = vcmp.ne.s32.totalorder %v6683_v28, 0  ;;  %1445 = vmatpush.msra.mxu2 %v1246_v34  ;;  %v1275_v34 = vld [vmem:[#allocation2 + $0x520] sm:$0xff] }
  0xe4   :  { %1015 = vmatmul.f32.gmra.mxu0 %v474_v24  ;;  %1080 = vmatmul.f32.gmra.mxu1 %v475_v46  ;;  %v4078_v58 = vsel %vm308_vm10, 1.0, %v6767_v40  ;;  %v440_v2 = vsel %vm427_vm1, %v411_v1, %v413_v36 }
  0xe5   :  { %1145 = vmatmul.f32.gmra.mxu2 %v474_v24  ;;  %1210 = vmatmul.f32.gmra.mxu3 %v475_v46  ;;  %6775 = vst [vmem:[#allocation22_spill] sm:$0xff] %v4078_v58  ;;  %v478_v28 = vmul.f32 %v4078_v58, %v440_v2  ;;  %v479_v52 = vmul.f32 %v4078_v58, %v441_v8 }
  0xe6   :  { %1381 = vmatpush.msra.mxu1 %v1275_v34  ;;  %v4121_v34 = vadd.s32 96, %v3837_v51 }
  0xe8   :  { %v886_v46 = vpop.f32.mrf.mxu2  ;;  %v951_v24 = vpop.f32.mrf.mxu3 }
  0xe9   :  { %v4064_v18 = vadd.f32 %v951_v24, %v886_v46  ;;  %v4066_v47 = vpop.f32.mrf.mxu0  ;;  %v4068_v53 = vpop.f32.mrf.mxu1  ;;  %v6686_v46 = vand.u32 7, %v4075_v44  ;;  %v1278_v24 = vld [vmem:[#allocation2 + $0x538] sm:$0xff] }
  0xea   :  { %6773 = vst [vmem:[#allocation20_spill] sm:$0xff] %v4066_v47  ;;  %1510 = vmatpush.msra.mxu3 %v1278_v24  ;;  %v415_v47 = vrot.slane %v3773_v16, 7  ;;  %v439_v16 = vsel %vm427_vm1, %v414_v3, %v416_v9  ;;  %v1244_v24 = vld [vmem:[#allocation2 + $0x428] sm:$0xff] }
  0xeb   :  { %6774 = vst [vmem:[#allocation21_spill] sm:$0xff] %v4068_v53  ;;  %vm309_vm11 = vcmp.ne.s32.totalorder %v6686_v46, 0  ;;  %1446 = vmatpush.msra.mxu2 %v1244_v24  ;;  %v1273_v24 = vld [vmem:[#allocation2 + $0x510] sm:$0xff] }
  0xec   :  { %1018 = vmatmul.f32.gmra.mxu0 %v476_v6  ;;  %1083 = vmatmul.f32.gmra.mxu1 %v477_v42  ;;  %v4101_v2 = vsel %vm309_vm11, 1.0, %v6767_v40  ;;  %v438_v8 = vsel %vm427_vm1, %v413_v36, %v415_v47 }
  0xed   :  { %1148 = vmatmul.f32.gmra.mxu2 %v476_v6  ;;  %1213 = vmatmul.f32.gmra.mxu3 %v477_v42  ;;  %6778 = vst [vmem:[#allocation25_spill] sm:$0xff] %v4101_v2  ;;  %v480_v46 = vmul.f32 %v4101_v2, %v438_v8  ;;  %v481_v58 = vmul.f32 %v4101_v2, %v439_v16 }
  0xee   :  { %1382 = vmatpush.msra.mxu1 %v1273_v24  ;;  %v4144_v24 = vadd.s32 104, %v3837_v51 }
  0xf0   :  { %v889_v42 = vpop.f32.mrf.mxu2  ;;  %v954_v6 = vpop.f32.mrf.mxu3 }
  0xf1   :  { %v4087_v1 = vadd.f32 %v954_v6, %v889_v42  ;;  %v4089_v53 = vpop.f32.mrf.mxu0  ;;  %v4091_v59 = vpop.f32.mrf.mxu1  ;;  %v6689_v42 = vand.u32 7, %v4098_v15  ;;  %v1276_v6 = vld [vmem:[#allocation2 + $0x528] sm:$0xff] }
  0xf2   :  { %6777 = vst [vmem:[#allocation24_spill] sm:$0xff] %v4091_v59  ;;  %1511 = vmatpush.msra.mxu3 %v1276_v6  ;;  %v417_v59 = vrot.slane %v3787_v22, 7  ;;  %v437_v22 = vsel %vm427_vm1, %v416_v9, %v418_v17  ;;  %v1242_v6 = vld [vmem:[#allocation2 + $0x418] sm:$0xff] }
  0xf3   :  { %6776 = vst [vmem:[#allocation23_spill] sm:$0xff] %v4087_v1  ;;  %vm310_vm12 = vcmp.ne.s32.totalorder %v6689_v42, 0  ;;  %1447 = vmatpush.msra.mxu2 %v1242_v6  ;;  %v1271_v6 = vld [vmem:[#allocation2 + $0x500] sm:$0xff] }
  0xf4   :  { %1021 = vmatmul.f32.gmra.mxu0 %v478_v28  ;;  %1086 = vmatmul.f32.gmra.mxu1 %v479_v52  ;;  %v4124_v8 = vsel %vm310_vm12, 1.0, %v6767_v40  ;;  %v436_v16 = vsel %vm427_vm1, %v415_v47, %v417_v59 }
  0xf5   :  { %1151 = vmatmul.f32.gmra.mxu2 %v478_v28  ;;  %1216 = vmatmul.f32.gmra.mxu3 %v479_v52  ;;  %6781 = vst [vmem:[#allocation28_spill] sm:$0xff] %v4124_v8  ;;  %v482_v42 = vmul.f32 %v4124_v8, %v436_v16  ;;  %v483_v2 = vmul.f32 %v4124_v8, %v437_v22 }
  0xf6   :  { %1383 = vmatpush.msra.mxu1 %v1271_v6  ;;  %v4167_v6 = vadd.s32 112, %v3837_v51 }
  0xf8   :  { %v892_v52 = vpop.f32.mrf.mxu2  ;;  %v957_v28 = vpop.f32.mrf.mxu3  ;;  %v6698_v39 = vand.u32 7, %v4167_v6 }
  0xf9   :  { %v4110_v36 = vadd.f32 %v957_v28, %v892_v52  ;;  %v4112_v1 = vpop.f32.mrf.mxu0  ;;  %v4114_v3 = vpop.f32.mrf.mxu1  ;;  %v6692_v52 = vand.u32 7, %v4121_v34  ;;  %v1274_v28 = vld [vmem:[#allocation2 + $0x518] sm:$0xff] }
  0xfa   :  { %6780 = vst [vmem:[#allocation27_spill] sm:$0xff] %v4114_v3  ;;  %1512 = vmatpush.msra.mxu3 %v1274_v28  ;;  %v419_v3 = vrot.slane %v3801_v30, 7  ;;  %v435_v30 = vsel %vm427_vm1, %v418_v17, %v420_v23  ;;  %v1240_v28 = vld [vmem:[#allocation2 + $0x408] sm:$0xff]  ;;  %vm313_vm15 = vcmp.ne.s32.totalorder %v6698_v39, 0 }
  0xfb   :  { %6779 = vst [vmem:[#allocation26_spill] sm:$0xff] %v4110_v36  ;;  %vm311_vm13 = vcmp.ne.s32.totalorder %v6692_v52, 0  ;;  %1448 = vmatpush.msra.mxu2 %v1240_v28 }
  0xfc   :  { %1024 = vmatmul.f32.gmra.mxu0 %v480_v46  ;;  %1089 = vmatmul.f32.gmra.mxu1 %v481_v58  ;;  %v4147_v16 = vsel %vm311_vm13, 1.0, %v6767_v40  ;;  %v434_v22 = vsel %vm427_vm1, %v417_v59, %v419_v3 }
  0xfd   :  { %1154 = vmatmul.f32.gmra.mxu2 %v480_v46  ;;  %1219 = vmatmul.f32.gmra.mxu3 %v481_v58  ;;  %6784 = vst [vmem:[#allocation31_spill] sm:$0xff] %v4147_v16  ;;  %v484_v52 = vmul.f32 %v4147_v16, %v434_v22  ;;  %v485_v8 = vmul.f32 %v4147_v16, %v435_v30  ;;  %v423_v16 = vrot.slane %v3829_v49, 7 }
 0x100   :  { %v895_v58 = vpop.f32.mrf.mxu2  ;;  %v960_v46 = vpop.f32.mrf.mxu3 }
 0x101   :  { %v4133_v47 = vadd.f32 %v960_v46, %v895_v58  ;;  %v4135_v36 = vpop.f32.mrf.mxu0  ;;  %v4137_v9 = vpop.f32.mrf.mxu1  ;;  %v6695_v58 = vand.u32 7, %v4144_v24  ;;  %v1272_v46 = vld [vmem:[#allocation2 + $0x508] sm:$0xff] }
 0x102   :  { %6783 = vst [vmem:[#allocation30_spill] sm:$0xff] %v4137_v9  ;;  %1513 = vmatpush.msra.mxu3 %v1272_v46  ;;  %v421_v9 = vrot.slane %v3815_v38, 7  ;;  %v433_v38 = vsel %vm427_vm1, %v420_v23, %v422_v31  ;;  %v4190_v23 = vadd.s32 120, %v3837_v51 }
 0x103   :  { %6782 = vst [vmem:[#allocation29_spill] sm:$0xff] %v4133_v47  ;;  %vm312_vm14 = vcmp.ne.s32.totalorder %v6695_v58, 0 }
 0x104   :  { %1027 = vmatmul.f32.gmra.mxu0 %v482_v42  ;;  %1092 = vmatmul.f32.gmra.mxu1 %v483_v2  ;;  %v4170_v22 = vsel %vm312_vm14, 1.0, %v6767_v40  ;;  %v432_v30 = vsel %vm427_vm1, %v419_v3, %v421_v9  ;;  %v424_v3 = vrot.slane %v3834_v50, 7  ;;  %v6701_v50 = vand.u32 7, %v4190_v23 }
 0x105   :  { %1157 = vmatmul.f32.gmra.mxu2 %v482_v42  ;;  %1222 = vmatmul.f32.gmra.mxu3 %v483_v2  ;;  %6786 = vst [vmem:[#allocation33_spill] sm:$0xff] %v4170_v22 }
 0x106   :  { %v431_v49 = vsel %vm427_vm1, %v422_v31, %v424_v3  ;;  %vm314_vm0 = vcmp.ne.s32.totalorder %v6701_v50, 0  ;;  %v6793_v31 = vrot.slane %v3847_v61, 7 }
 0x108   :  { %v898_v2 = vpop.f32.mrf.mxu2  ;;  %v963_v42 = vpop.f32.mrf.mxu3 }
 0x109   :  { %v4156_v59 = vadd.f32 %v963_v42, %v898_v2  ;;  %v4158_v47 = vpop.f32.mrf.mxu0  ;;  %v4160_v17 = vpop.f32.mrf.mxu1  ;;  %v486_v2 = vmul.f32 %v4170_v22, %v432_v30  ;;  %v487_v42 = vmul.f32 %v4170_v22, %v433_v38  ;;  %v4193_v30 = vsel %vm313_vm15, 1.0, %v6767_v40 }
 0x10a   :  { %6788 = vst [vmem:[#allocation35_spill] sm:$0xff] %v4193_v30  ;;  %v430_v38 = vsel %vm427_vm1, %v421_v9, %v423_v16  ;;  %v489_v22 = vmul.f32 %v4193_v30, %v431_v49  ;;  %v4211_v9 = vsel %vm314_vm0, 1.0, %v6767_v40  ;;  %v6794_v49 = vrot.slane %v3852_v62, 7  ;;  %v4232_v62 = vld [vmem:[%s6645_s0 + $0x8] sm:$0xff] }
 0x10b   :  { %6785 = vst [vmem:[#allocation32_spill] sm:$0xff] %v4156_v59  ;;  %v488_v39 = vmul.f32 %v4193_v30, %v430_v38  ;;  %v428_v38 = vsel %vm427_vm1, %v423_v16, %v6793_v31  ;;  %v6706_v16 = vrot.slane %v4232_v62, 1 }
 0x10c   :  { %1030 = vmatmul.f32.gmra.mxu0 %v484_v52  ;;  %1095 = vmatmul.f32.gmra.mxu1 %v485_v8  ;;  %6792 = vst [vmem:[#allocation39_spill] sm:$0xff] %v4211_v9  ;;  %v490_v30 = vmul.f32 %v4211_v9, %v428_v38 }
 0x10d   :  { %1160 = vmatmul.f32.gmra.mxu2 %v484_v52  ;;  %1225 = vmatmul.f32.gmra.mxu3 %v485_v8 }
 0x110   :  { %v901_v28 = vpop.f32.mrf.mxu2  ;;  %v966_v46 = vpop.f32.mrf.mxu3 }
 0x111   :  { %v4179_v58 = vadd.f32 %v966_v46, %v901_v28  ;;  %v4181_v8 = vpop.f32.mrf.mxu0  ;;  %v4183_v52 = vpop.f32.mrf.mxu1 }
 0x113   :  { %6787 = vst [vmem:[#allocation34_spill] sm:$0xff] %v4179_v58 }
 0x114   :  { %1033 = vmatmul.f32.gmra.mxu0 %v486_v2  ;;  %1098 = vmatmul.f32.gmra.mxu1 %v487_v42 }
 0x115   :  { %1163 = vmatmul.f32.gmra.mxu2 %v486_v2  ;;  %1228 = vmatmul.f32.gmra.mxu3 %v487_v42 }
 0x118   :  { %v904_v28 = vpop.f32.mrf.mxu2  ;;  %v969_v46 = vpop.f32.mrf.mxu3 }
 0x119   :  { %v4202_v58 = vadd.f32 %v969_v46, %v904_v28  ;;  %v4204_v2 = vpop.f32.mrf.mxu0  ;;  %v4206_v42 = vpop.f32.mrf.mxu1  ;;  %v429_v28 = vsel %vm427_vm1, %v424_v3, %v6794_v49  ;;  %v4224_v46 = vld [vmem:[%s6645_s0] sm:$0xff]  ;;  %v3463_v3 = vld [vmem:[%s6645_s0 + $0x10] sm:$0xff]  ;;  %v3464_v49 = vld [vmem:[%s6645_s0 + $0x18] sm:$0xff] }
 0x11a   :  { %6790 = vst [vmem:[#allocation37_spill] sm:$0xff] %v4204_v2  ;;  %v491_v61 = vmul.f32 %v4211_v9, %v429_v28  ;;  %v494_v31 = vrot.slane %v3463_v3, 1 }
 0x11b   :  { %6789 = vst [vmem:[#allocation36_spill] sm:$0xff] %v4202_v58  ;;  %v6798_v58 = vand.u32 7, %v3837_v51 }
 0x11c   :  { %6791 = vst [vmem:[#allocation38_spill] sm:$0xff] %v4206_v42  ;;  %1036 = vmatmul.f32.gmra.mxu0 %v488_v39  ;;  %1101 = vmatmul.f32.gmra.mxu1 %v489_v22 }
 0x11d   :  { %1166 = vmatmul.f32.gmra.mxu2 %v488_v39  ;;  %1231 = vmatmul.f32.gmra.mxu3 %v489_v22  ;;  %v495_v22 = vrot.slane %v3464_v49, 1  ;;  %vm347_vm2 = vcmp.ne.s32.totalorder %v6798_v58, 7  ;;  %v6800_v49 = vrot.slane %v4224_v46, 1 }
 0x11e   :  { %v4251_v3 = vsel %vm347_vm2, 1.0, %v6767_v40 }
 0x11f   :  { %6799 = vst [vmem:[#allocation43_spill] sm:$0xff] %v4251_v3 }
 0x120   :  { %v907_v39 = vpop.f32.mrf.mxu2  ;;  %v972_v50 = vpop.f32.mrf.mxu3 }
 0x121   :  { %v4241_v38 = vadd.f32 %v972_v50, %v907_v39  ;;  %v4243_v28 = vpop.f32.mrf.mxu0  ;;  %v4245_v9 = vpop.f32.mrf.mxu1  ;;  %v553_v50 = vsel %vm524_vm3, %v6800_v49, %v494_v31  ;;  %v554_v39 = vsel %vm524_vm3, %v6706_v16, %v495_v22  ;;  %v3465_v49 = vld [vmem:[%s6645_s0 + $0x20] sm:$0xff]  ;;  %v3466_v16 = vld [vmem:[%s6645_s0 + $0x28] sm:$0xff] }
 0x122   :  { %6796 = vst [vmem:[#allocation41_spill] sm:$0xff] %v4243_v28  ;;  %v557_v59 = vmul.f32 %v4251_v3, %v553_v50  ;;  %v496_v42 = vrot.slane %v3465_v49, 1  ;;  %v497_v2 = vrot.slane %v3466_v16, 1  ;;  %v6803_v50 = vand.u32 7, %v3862_v7 }
 0x123   :  { %6795 = vst [vmem:[#allocation40_spill] sm:$0xff] %v4241_v38 }
 0x124   :  { %6797 = vst [vmem:[#allocation42_spill] sm:$0xff] %v4245_v9  ;;  %1039 = vmatmul.f32.gmra.mxu0 %v490_v30  ;;  %1104 = vmatmul.f32.gmra.mxu1 %v491_v61  ;;  %v558_v9 = vmul.f32 %v4251_v3, %v554_v39  ;;  %vm348_vm4 = vcmp.ne.s32.totalorder %v6803_v50, 7  ;;  %v551_v39 = vsel %vm524_vm3, %v494_v31, %v496_v42 }
 0x125   :  { %1169 = vmatmul.f32.gmra.mxu2 %v490_v30  ;;  %1234 = vmatmul.f32.gmra.mxu3 %v491_v61 }
 0x128   :  { %v910_v58 = vpop.f32.mrf.mxu2  ;;  %v975_v38 = vpop.f32.mrf.mxu3 }
 0x129   :  { %v4263_v28 = vadd.f32 %v975_v38, %v910_v58  ;;  %v4265_v30 = vpop.f32.mrf.mxu0  ;;  %v4267_v61 = vpop.f32.mrf.mxu1  ;;  %v4278_v38 = vsel %vm348_vm4, 1.0, %v6767_v40  ;;  %v552_v58 = vsel %vm524_vm3, %v495_v22, %v497_v2  ;;  %v3468_v22 = vld [vmem:[%s6645_s0 + $0x38] sm:$0xff] }
 0x12a   :  { %6802 = vst [vmem:[#allocation45_spill] sm:$0xff] %v4267_v61  ;;  %v559_v16 = vmul.f32 %v4278_v38, %v551_v39  ;;  %v560_v7 = vmul.f32 %v4278_v38, %v552_v58  ;;  %v499_v61 = vrot.slane %v3468_v22, 1  ;;  %v6805_v39 = vand.u32 7, %v3891_v33 }
 0x12b   :  { %6801 = vst [vmem:[#allocation44_spill] sm:$0xff] %v4263_v28 }
 0x12c   :  { %1319 = vmatmul.f32.vlgmr.msra.gmra.mxu0 %v557_v59  ;;  %1384 = vmatmul.f32.vlgmr.msra.gmra.mxu1 %v558_v9  ;;  %6804 = vst [vmem:[#allocation46_spill] sm:$0xff] %v4278_v38  ;;  %vm349_vm5 = vcmp.ne.s32.totalorder %v6805_v39, 7 }
 0x12d   :  { %1449 = vmatmul.f32.vlgmr.msra.gmra.mxu2 %v557_v59  ;;  %1514 = vmatmul.f32.vlgmr.msra.gmra.mxu3 %v558_v9  ;;  %v3467_v9 = vld [vmem:[%s6645_s0 + $0x30] sm:$0xff] }
 0x12e   :  { %v498_v31 = vrot.slane %v3467_v9, 1  ;;  %v550_v9 = vsel %vm524_vm3, %v497_v2, %v499_v61  ;;  %v3470_v2 = vld [vmem:[%s6645_s0 + $0x48] sm:$0xff] }
 0x130   :  { %v1125_v49 = vpop.f32.mrf.mxu2  ;;  %v1190_v3 = vpop.f32.mrf.mxu3 }
 0x131   :  { %v1126_v50 = vadd.f32 %v1125_v49, %v3903_v63  ;;  %v4287_v28 = vpop.f32.mrf.mxu0  ;;  %v4289_v59 = vpop.f32.mrf.mxu1  ;;  %v4302_v63 = vsel %vm349_vm5, 1.0, %v6767_v40  ;;  %v549_v49 = vsel %vm524_vm3, %v496_v42, %v498_v31  ;;  %vm1711_vm5 = vcmask 1040384  }
 0x132   :  { %6807 = vst [vmem:[#allocation48_spill] sm:$0xff] %v4302_v63  ;;  %v561_v33 = vmul.f32 %v4302_v63, %v549_v49  ;;  %v6808_v49 = vand.u32 7, %v3914_v13 }
 0x133   :  { %v4299_v58 = vadd.f32 %v1190_v3, %v1126_v50  ;;  %v562_v3 = vmul.f32 %v4302_v63, %v550_v9 }
 0x134   :  { %1322 = vmatmul.f32.gmra.mxu0 %v559_v16  ;;  %1387 = vmatmul.f32.gmra.mxu1 %v560_v7  ;;  %vm350_vm6 = vcmp.ne.s32.totalorder %v6808_v49, 7 }
 0x135   :  { %6806 = vst [vmem:[#allocation47_spill] sm:$0xff] %v4299_v58  ;;  %1452 = vmatmul.f32.gmra.mxu2 %v559_v16  ;;  %1517 = vmatmul.f32.gmra.mxu3 %v560_v7  ;;  %v3469_v7 = vld [vmem:[%s6645_s0 + $0x40] sm:$0xff]  ;;  %v501_v58 = vrot.slane %v3470_v2, 1 }
 0x136   :  { %v500_v42 = vrot.slane %v3469_v7, 1 }
 0x137   :  { %v548_v7 = vsel %vm524_vm3, %v499_v61, %v501_v58  ;;  %v3472_v61 = vld [vmem:[%s6645_s0 + $0x58] sm:$0xff] }
 0x138   :  { %v1128_v38 = vpop.f32.mrf.mxu2  ;;  %v1193_v22 = vpop.f32.mrf.mxu3 }
 0x139   :  { %v1129_v50 = vadd.f32 %v1128_v38, %v3926_v27  ;;  %v4311_v39 = vpop.f32.mrf.mxu0  ;;  %v4313_v16 = vpop.f32.mrf.mxu1  ;;  %v4326_v27 = vsel %vm350_vm6, 1.0, %v6767_v40  ;;  %v547_v38 = vsel %vm524_vm3, %v498_v31, %v500_v42 }
 0x13a   :  { %6810 = vst [vmem:[#allocation50_spill] sm:$0xff] %v4326_v27  ;;  %v563_v13 = vmul.f32 %v4326_v27, %v547_v38  ;;  %v6811_v38 = vand.u32 7, %v3937_v60 }
 0x13b   :  { %v4323_v9 = vadd.f32 %v1193_v22, %v1129_v50  ;;  %v564_v22 = vmul.f32 %v4326_v27, %v548_v7 }
 0x13c   :  { %1325 = vmatmul.f32.gmra.mxu0 %v561_v33  ;;  %1390 = vmatmul.f32.gmra.mxu1 %v562_v3  ;;  %vm351_vm7 = vcmp.ne.s32.totalorder %v6811_v38, 7 }
 0x13d   :  { %6809 = vst [vmem:[#allocation49_spill] sm:$0xff] %v4323_v9  ;;  %1455 = vmatmul.f32.gmra.mxu2 %v561_v33  ;;  %1520 = vmatmul.f32.gmra.mxu3 %v562_v3  ;;  %v3471_v3 = vld [vmem:[%s6645_s0 + $0x50] sm:$0xff]  ;;  %v503_v9 = vrot.slane %v3472_v61, 1 }
 0x13e   :  { %v502_v31 = vrot.slane %v3471_v3, 1 }
 0x13f   :  { %v546_v3 = vsel %vm524_vm3, %v501_v58, %v503_v9  ;;  %v3474_v58 = vld [vmem:[%s6645_s0 + $0x68] sm:$0xff] }
 0x140   :  { %v1131_v63 = vpop.f32.mrf.mxu2  ;;  %v1196_v2 = vpop.f32.mrf.mxu3 }
 0x141   :  { %v1132_v50 = vadd.f32 %v1131_v63, %v3949_v11  ;;  %v4335_v49 = vpop.f32.mrf.mxu0  ;;  %v4337_v33 = vpop.f32.mrf.mxu1  ;;  %v4350_v11 = vsel %vm351_vm7, 1.0, %v6767_v40  ;;  %v545_v63 = vsel %vm524_vm3, %v500_v42, %v502_v31 }
 0x142   :  { %6813 = vst [vmem:[#allocation52_spill] sm:$0xff] %v4350_v11  ;;  %v565_v60 = vmul.f32 %v4350_v11, %v545_v63  ;;  %v6814_v63 = vand.u32 7, %v3960_v29 }
 0x143   :  { %v4347_v7 = vadd.f32 %v1196_v2, %v1132_v50  ;;  %v566_v2 = vmul.f32 %v4350_v11, %v546_v3 }
 0x144   :  { %1328 = vmatmul.f32.gmra.mxu0 %v563_v13  ;;  %1393 = vmatmul.f32.gmra.mxu1 %v564_v22  ;;  %vm352_vm8 = vcmp.ne.s32.totalorder %v6814_v63, 7 }
 0x145   :  { %6812 = vst [vmem:[#allocation51_spill] sm:$0xff] %v4347_v7  ;;  %1458 = vmatmul.f32.gmra.mxu2 %v563_v13  ;;  %1523 = vmatmul.f32.gmra.mxu3 %v564_v22  ;;  %v3473_v22 = vld [vmem:[%s6645_s0 + $0x60] sm:$0xff]  ;;  %v505_v7 = vrot.slane %v3474_v58, 1 }
 0x146   :  { %v504_v42 = vrot.slane %v3473_v22, 1 }
 0x147   :  { %v544_v22 = vsel %vm524_vm3, %v503_v9, %v505_v7  ;;  %v3476_v9 = vld [vmem:[%s6645_s0 + $0x78] sm:$0xff] }
 0x148   :  { %v1134_v27 = vpop.f32.mrf.mxu2  ;;  %v1199_v61 = vpop.f32.mrf.mxu3 }
 0x149   :  { %v1135_v50 = vadd.f32 %v1134_v27, %v3972_v55  ;;  %v4359_v38 = vpop.f32.mrf.mxu0  ;;  %v4361_v13 = vpop.f32.mrf.mxu1  ;;  %v4374_v55 = vsel %vm352_vm8, 1.0, %v6767_v40  ;;  %v543_v27 = vsel %vm524_vm3, %v502_v31, %v504_v42 }
 0x14a   :  { %6816 = vst [vmem:[#allocation54_spill] sm:$0xff] %v4374_v55  ;;  %v567_v29 = vmul.f32 %v4374_v55, %v543_v27  ;;  %v6817_v27 = vand.u32 7, %v3983_v21 }
 0x14b   :  { %v4371_v3 = vadd.f32 %v1199_v61, %v1135_v50  ;;  %v568_v61 = vmul.f32 %v4374_v55, %v544_v22 }
 0x14c   :  { %1331 = vmatmul.f32.gmra.mxu0 %v565_v60  ;;  %1396 = vmatmul.f32.gmra.mxu1 %v566_v2  ;;  %vm353_vm9 = vcmp.ne.s32.totalorder %v6817_v27, 7 }
 0x14d   :  { %6815 = vst [vmem:[#allocation53_spill] sm:$0xff] %v4371_v3  ;;  %1461 = vmatmul.f32.gmra.mxu2 %v565_v60  ;;  %1526 = vmatmul.f32.gmra.mxu3 %v566_v2  ;;  %v3475_v2 = vld [vmem:[%s6645_s0 + $0x70] sm:$0xff]  ;;  %v507_v3 = vrot.slane %v3476_v9, 1 }
 0x14e   :  { %v506_v31 = vrot.slane %v3475_v2, 1 }
 0x14f   :  { %v542_v2 = vsel %vm524_vm3, %v505_v7, %v507_v3  ;;  %v3478_v7 = vld [vmem:[%s6645_s0 + $0x88] sm:$0xff] }
 0x150   :  { %v1137_v11 = vpop.f32.mrf.mxu2  ;;  %v1202_v58 = vpop.f32.mrf.mxu3 }
 0x151   :  { %v1138_v50 = vadd.f32 %v1137_v11, %v3995_v37  ;;  %v4383_v63 = vpop.f32.mrf.mxu0  ;;  %v4385_v60 = vpop.f32.mrf.mxu1  ;;  %v4398_v37 = vsel %vm353_vm9, 1.0, %v6767_v40  ;;  %v541_v11 = vsel %vm524_vm3, %v504_v42, %v506_v31 }
 0x152   :  { %6819 = vst [vmem:[#allocation56_spill] sm:$0xff] %v4398_v37  ;;  %v569_v21 = vmul.f32 %v4398_v37, %v541_v11  ;;  %v6820_v11 = vand.u32 7, %v4006_v14 }
 0x153   :  { %v4395_v22 = vadd.f32 %v1202_v58, %v1138_v50  ;;  %v570_v58 = vmul.f32 %v4398_v37, %v542_v2 }
 0x154   :  { %1334 = vmatmul.f32.gmra.mxu0 %v567_v29  ;;  %1399 = vmatmul.f32.gmra.mxu1 %v568_v61  ;;  %vm354_vm10 = vcmp.ne.s32.totalorder %v6820_v11, 7 }
 0x155   :  { %6818 = vst [vmem:[#allocation55_spill] sm:$0xff] %v4395_v22  ;;  %1464 = vmatmul.f32.gmra.mxu2 %v567_v29  ;;  %1529 = vmatmul.f32.gmra.mxu3 %v568_v61  ;;  %v3477_v61 = vld [vmem:[%s6645_s0 + $0x80] sm:$0xff]  ;;  %v509_v22 = vrot.slane %v3478_v7, 1 }
 0x156   :  { %v508_v42 = vrot.slane %v3477_v61, 1 }
 0x157   :  { %v540_v61 = vsel %vm524_vm3, %v507_v3, %v509_v22  ;;  %v3480_v3 = vld [vmem:[%s6645_s0 + $0x98] sm:$0xff] }
 0x158   :  { %v1140_v55 = vpop.f32.mrf.mxu2  ;;  %v1205_v9 = vpop.f32.mrf.mxu3 }
 0x159   :  { %v1141_v50 = vadd.f32 %v1140_v55, %v4018_v57  ;;  %v4407_v27 = vpop.f32.mrf.mxu0  ;;  %v4409_v29 = vpop.f32.mrf.mxu1  ;;  %v4422_v57 = vsel %vm354_vm10, 1.0, %v6767_v40  ;;  %v539_v55 = vsel %vm524_vm3, %v506_v31, %v508_v42 }
 0x15a   :  { %6822 = vst [vmem:[#allocation58_spill] sm:$0xff] %v4422_v57  ;;  %v571_v14 = vmul.f32 %v4422_v57, %v539_v55  ;;  %v6823_v55 = vand.u32 7, %v4029_v43 }
 0x15b   :  { %v4419_v2 = vadd.f32 %v1205_v9, %v1141_v50  ;;  %v572_v9 = vmul.f32 %v4422_v57, %v540_v61 }
 0x15c   :  { %1337 = vmatmul.f32.gmra.mxu0 %v569_v21  ;;  %1402 = vmatmul.f32.gmra.mxu1 %v570_v58  ;;  %vm355_vm11 = vcmp.ne.s32.totalorder %v6823_v55, 7 }
 0x15d   :  { %6821 = vst [vmem:[#allocation57_spill] sm:$0xff] %v4419_v2  ;;  %1467 = vmatmul.f32.gmra.mxu2 %v569_v21  ;;  %1532 = vmatmul.f32.gmra.mxu3 %v570_v58  ;;  %v3479_v58 = vld [vmem:[%s6645_s0 + $0x90] sm:$0xff]  ;;  %v511_v2 = vrot.slane %v3480_v3, 1 }
 0x15e   :  { %v510_v31 = vrot.slane %v3479_v58, 1 }
 0x15f   :  { %v538_v58 = vsel %vm524_vm3, %v509_v22, %v511_v2  ;;  %v3482_v22 = vld [vmem:[%s6645_s0 + $0xa8] sm:$0xff] }
 0x160   :  { %v1143_v37 = vpop.f32.mrf.mxu2  ;;  %v1208_v7 = vpop.f32.mrf.mxu3 }
 0x161   :  { %v1144_v50 = vadd.f32 %v1143_v37, %v4041_v0  ;;  %v4431_v11 = vpop.f32.mrf.mxu0  ;;  %v4433_v21 = vpop.f32.mrf.mxu1  ;;  %v4446_v0 = vsel %vm355_vm11, 1.0, %v6767_v40  ;;  %v537_v37 = vsel %vm524_vm3, %v508_v42, %v510_v31 }
 0x162   :  { %6825 = vst [vmem:[#allocation60_spill] sm:$0xff] %v4446_v0  ;;  %v573_v43 = vmul.f32 %v4446_v0, %v537_v37  ;;  %v6827_v37 = vand.u32 7, %v4052_v48 }
 0x163   :  { %v4443_v61 = vadd.f32 %v1208_v7, %v1144_v50  ;;  %v574_v7 = vmul.f32 %v4446_v0, %v538_v58 }
 0x164   :  { %1340 = vmatmul.f32.gmra.mxu0 %v571_v14  ;;  %1405 = vmatmul.f32.gmra.mxu1 %v572_v9  ;;  %vm356_vm12 = vcmp.ne.s32.totalorder %v6827_v37, 7 }
 0x165   :  { %6824 = vst [vmem:[#allocation59_spill] sm:$0xff] %v4443_v61  ;;  %1470 = vmatmul.f32.gmra.mxu2 %v571_v14  ;;  %1535 = vmatmul.f32.gmra.mxu3 %v572_v9  ;;  %v3481_v9 = vld [vmem:[%s6645_s0 + $0xa0] sm:$0xff]  ;;  %v513_v61 = vrot.slane %v3482_v22, 1 }
 0x166   :  { %v512_v42 = vrot.slane %v3481_v9, 1 }
 0x167   :  { %v536_v9 = vsel %vm524_vm3, %v511_v2, %v513_v61  ;;  %v3484_v2 = vld [vmem:[%s6645_s0 + $0xb8] sm:$0xff] }
 0x168   :  { %v1146_v57 = vpop.f32.mrf.mxu2  ;;  %v1211_v3 = vpop.f32.mrf.mxu3  ;;  %v515_v37 = vrot.slane %v3484_v2, 1 }
 0x169   :  { %v1147_v50 = vadd.f32 %v1146_v57, %v4064_v18  ;;  %v4455_v55 = vpop.f32.mrf.mxu0  ;;  %v4457_v14 = vpop.f32.mrf.mxu1  ;;  %v4470_v18 = vsel %vm356_vm12, 1.0, %v6767_v40  ;;  %v535_v57 = vsel %vm524_vm3, %v510_v31, %v512_v42 }
 0x16a   :  { %6826 = vst [vmem:[#allocation61_spill] sm:$0xff] %v4457_v14  ;;  %v575_v48 = vmul.f32 %v4470_v18, %v535_v57 }
 0x16b   :  { %v4467_v58 = vadd.f32 %v1211_v3, %v1147_v50  ;;  %6829 = vst [vmem:[#allocation63_spill] sm:$0xff] %v4470_v18  ;;  %v576_v3 = vmul.f32 %v4470_v18, %v536_v9 }
 0x16c   :  { %1343 = vmatmul.f32.gmra.mxu0 %v573_v43  ;;  %1408 = vmatmul.f32.gmra.mxu1 %v574_v7 }
 0x16d   :  { %6828 = vst [vmem:[#allocation62_spill] sm:$0xff] %v4467_v58  ;;  %1473 = vmatmul.f32.gmra.mxu2 %v573_v43  ;;  %1538 = vmatmul.f32.gmra.mxu3 %v574_v7  ;;  %v3483_v7 = vld [vmem:[%s6645_s0 + $0xb0] sm:$0xff]  ;;  %v6832_v58 = vand.u32 7, %v4075_v44 }
 0x16e   :  { %v514_v31 = vrot.slane %v3483_v7, 1  ;;  %v534_v7 = vsel %vm524_vm3, %v513_v61, %v515_v37  ;;  %v3486_v61 = vld [vmem:[%s6645_s0 + $0xc8] sm:$0xff] }
 0x16f   :  { %vm357_vm13 = vcmp.ne.s32.totalorder %v6832_v58, 7 }
 0x170   :  { %v4476_v0 = vpop.f32.mrf.mxu2  ;;  %v4478_v22 = vpop.f32.mrf.mxu3  ;;  %v4495_v57 = vsel %vm357_vm13, 1.0, %v6767_v40  ;;  %v533_v9 = vsel %vm524_vm3, %v512_v42, %v514_v31 }
 0x171   :  { %6830 = vst [vmem:[#allocation64_spill] sm:$0xff] %v4478_v22  ;;  %v4482_v50 = vpop.f32.mrf.mxu0  ;;  %v4484_v43 = vpop.f32.mrf.mxu1  ;;  %v577_v44 = vmul.f32 %v4495_v57, %v533_v9  ;;  %v578_v58 = vmul.f32 %v4495_v57, %v534_v7  ;;  %v517_v22 = vrot.slane %v3486_v61, 1 }
 0x172   :  { %6831 = vst [vmem:[#allocation65_spill] sm:$0xff] %v4484_v43 }
 0x173   :  { %6833 = vst [vmem:[#allocation66_spill] sm:$0xff] %v4495_v57 }
 0x174   :  { %1346 = vmatmul.f32.gmra.mxu0 %v575_v48  ;;  %1411 = vmatmul.f32.gmra.mxu1 %v576_v3 }
 0x175   :  { %1476 = vmatmul.f32.gmra.mxu2 %v575_v48  ;;  %1541 = vmatmul.f32.gmra.mxu3 %v576_v3  ;;  %v3485_v3 = vld [vmem:[%s6645_s0 + $0xc0] sm:$0xff] }
 0x176   :  { %v516_v42 = vrot.slane %v3485_v3, 1  ;;  %v532_v3 = vsel %vm524_vm3, %v515_v37, %v517_v22  ;;  %v3488_v37 = vld [vmem:[%s6645_s0 + $0xd8] sm:$0xff] }
 0x177   :  { %v519_v14 = vrot.slane %v3488_v37, 1 }
 0x178   :  { %v4501_v18 = vpop.f32.mrf.mxu2  ;;  %v4503_v43 = vpop.f32.mrf.mxu3  ;;  %v531_v7 = vsel %vm524_vm3, %v514_v31, %v516_v42 }
 0x179   :  { %6834 = vst [vmem:[#allocation67_spill] sm:$0xff] %v4503_v43  ;;  %v4507_v2 = vpop.f32.mrf.mxu0  ;;  %v4509_v48 = vpop.f32.mrf.mxu1  ;;  %v6836_v43 = vand.u32 7, %v4098_v15 }
 0x17a   :  { %6835 = vst [vmem:[#allocation68_spill] sm:$0xff] %v4509_v48 }
 0x17b   :  { %vm358_vm14 = vcmp.ne.s32.totalorder %v6836_v43, 7 }
 0x17c   :  { %1349 = vmatmul.f32.gmra.mxu0 %v577_v44  ;;  %1414 = vmatmul.f32.gmra.mxu1 %v578_v58  ;;  %v4520_v9 = vsel %vm358_vm14, 1.0, %v6767_v40 }
 0x17d   :  { %1479 = vmatmul.f32.gmra.mxu2 %v577_v44  ;;  %1544 = vmatmul.f32.gmra.mxu3 %v578_v58  ;;  %6837 = vst [vmem:[#allocation69_spill] sm:$0xff] %v4520_v9  ;;  %v579_v15 = vmul.f32 %v4520_v9, %v531_v7  ;;  %v580_v43 = vmul.f32 %v4520_v9, %v532_v3  ;;  %v3487_v58 = vld [vmem:[%s6645_s0 + $0xd0] sm:$0xff] }
 0x17e   :  { %v518_v31 = vrot.slane %v3487_v58, 1  ;;  %v530_v58 = vsel %vm524_vm3, %v517_v22, %v519_v14  ;;  %v3490_v22 = vld [vmem:[%s6645_s0 + $0xe8] sm:$0xff] }
 0x180   :  { %v4526_v57 = vpop.f32.mrf.mxu2  ;;  %v4528_v48 = vpop.f32.mrf.mxu3  ;;  %v529_v3 = vsel %vm524_vm3, %v516_v42, %v518_v31 }
 0x181   :  { %6838 = vst [vmem:[#allocation70_spill] sm:$0xff] %v4528_v48  ;;  %v4532_v61 = vpop.f32.mrf.mxu0  ;;  %v4534_v44 = vpop.f32.mrf.mxu1  ;;  %v6840_v48 = vand.u32 7, %v4121_v34 }
 0x182   :  { %6839 = vst [vmem:[#allocation71_spill] sm:$0xff] %v4534_v44 }
 0x183   :  { %vm359_vm15 = vcmp.ne.s32.totalorder %v6840_v48, 7 }
 0x184   :  { %1352 = vmatmul.f32.gmra.mxu0 %v579_v15  ;;  %1417 = vmatmul.f32.gmra.mxu1 %v580_v43  ;;  %v4545_v7 = vsel %vm359_vm15, 1.0, %v6767_v40 }
 0x185   :  { %1482 = vmatmul.f32.gmra.mxu2 %v579_v15  ;;  %1547 = vmatmul.f32.gmra.mxu3 %v580_v43  ;;  %6841 = vst [vmem:[#allocation72_spill] sm:$0xff] %v4545_v7  ;;  %v581_v34 = vmul.f32 %v4545_v7, %v529_v3  ;;  %v582_v48 = vmul.f32 %v4545_v7, %v530_v58  ;;  %v3489_v43 = vld [vmem:[%s6645_s0 + $0xe0] sm:$0xff] }
 0x186   :  { %v520_v42 = vrot.slane %v3489_v43, 1 }
 0x188   :  { %v4551_v9 = vpop.f32.mrf.mxu2  ;;  %v4553_v44 = vpop.f32.mrf.mxu3  ;;  %v527_v58 = vsel %vm524_vm3, %v518_v31, %v520_v42 }
 0x189   :  { %6842 = vst [vmem:[#allocation73_spill] sm:$0xff] %v4551_v9  ;;  %v4557_v37 = vpop.f32.mrf.mxu0  ;;  %v4559_v15 = vpop.f32.mrf.mxu1  ;;  %v521_v9 = vrot.slane %v3490_v22, 1 }
 0x18a   :  { %6843 = vst [vmem:[#allocation74_spill] sm:$0xff] %v4553_v44  ;;  %v6845_v44 = vand.u32 7, %v4144_v24 }
 0x18b   :  { %6844 = vst [vmem:[#allocation75_spill] sm:$0xff] %v4559_v15  ;;  %v528_v43 = vsel %vm524_vm3, %v519_v14, %v521_v9  ;;  %v3492_v14 = vld [vmem:[%s6645_s0 + $0xf8] sm:$0xff] }
 0x18c   :  { %vm360_vm0 = vcmp.ne.s32.totalorder %v6845_v44, 7  ;;  %1355 = vmatmul.f32.gmra.mxu0 %v581_v34  ;;  %1420 = vmatmul.f32.gmra.mxu1 %v582_v48 }
 0x18d   :  { %1485 = vmatmul.f32.gmra.mxu2 %v581_v34  ;;  %1550 = vmatmul.f32.gmra.mxu3 %v582_v48  ;;  %v4570_v3 = vsel %vm360_vm0, 1.0, %v6767_v40  ;;  %v3491_v48 = vld [vmem:[%s6645_s0 + $0xf0] sm:$0xff] }
 0x18e   :  { %6846 = vst [vmem:[#allocation76_spill] sm:$0xff] %v4570_v3  ;;  %v583_v24 = vmul.f32 %v4570_v3, %v527_v58  ;;  %v584_v44 = vmul.f32 %v4570_v3, %v528_v43  ;;  %v522_v31 = vrot.slane %v3491_v48, 1 }
 0x190   :  { %v4576_v7 = vpop.f32.mrf.mxu2  ;;  %v4578_v15 = vpop.f32.mrf.mxu3  ;;  %v525_v43 = vsel %vm524_vm3, %v520_v42, %v522_v31  ;;  %v6858_v42 = vrot.slane %v4224_v46, 1 }
 0x191   :  { %6847 = vst [vmem:[#allocation77_spill] sm:$0xff] %v4576_v7  ;;  %v4582_v22 = vpop.f32.mrf.mxu0  ;;  %v4584_v34 = vpop.f32.mrf.mxu1  ;;  %v523_v7 = vrot.slane %v3492_v14, 1 }
 0x192   :  { %6848 = vst [vmem:[#allocation78_spill] sm:$0xff] %v4578_v15  ;;  %v6850_v15 = vand.u32 7, %v4167_v6 }
 0x193   :  { %6849 = vst [vmem:[#allocation79_spill] sm:$0xff] %v4584_v34  ;;  %v526_v48 = vsel %vm524_vm3, %v521_v9, %v523_v7 }
 0x194   :  { %vm361_vm2 = vcmp.ne.s32.totalorder %v6850_v15, 7  ;;  %1358 = vmatmul.f32.gmra.mxu0 %v583_v24  ;;  %1423 = vmatmul.f32.gmra.mxu1 %v584_v44 }
 0x195   :  { %1488 = vmatmul.f32.gmra.mxu2 %v583_v24  ;;  %1553 = vmatmul.f32.gmra.mxu3 %v584_v44  ;;  %v4595_v58 = vsel %vm361_vm2, 1.0, %v6767_v40  ;;  %v6856_v44 = vand.u32 7, %v4190_v23 }
 0x196   :  { %6851 = vst [vmem:[#allocation80_spill] sm:$0xff] %v4595_v58  ;;  %v585_v6 = vmul.f32 %v4595_v58, %v525_v43  ;;  %v586_v15 = vmul.f32 %v4595_v58, %v526_v48  ;;  %v555_v43 = vsel %vm524_vm3, %v522_v31, %v6858_v42  ;;  %v6859_v48 = vrot.slane %v4232_v62, 1 }
 0x197   :  { %vm362_vm4 = vcmp.ne.s32.totalorder %v6856_v44, 7 }
 0x198   :  { %v4601_v3 = vpop.f32.mrf.mxu2  ;;  %v4603_v34 = vpop.f32.mrf.mxu3  ;;  %v4614_v9 = vsel %vm362_vm4, 1.0, %v6767_v40  ;;  %v556_v58 = vsel %vm524_vm3, %v523_v7, %v6859_v48 }
 0x199   :  { %6852 = vst [vmem:[#allocation81_spill] sm:$0xff] %v4601_v3  ;;  %v4607_v14 = vpop.f32.mrf.mxu0  ;;  %v4609_v24 = vpop.f32.mrf.mxu1 }
 0x19a   :  { %6853 = vst [vmem:[#allocation82_spill] sm:$0xff] %v4603_v34 }
 0x19b   :  { %6854 = vst [vmem:[#allocation83_spill] sm:$0xff] %v4607_v14 }
 0x19c   :  { %6855 = vst [vmem:[#allocation84_spill] sm:$0xff] %v4609_v24  ;;  %1361 = vmatmul.f32.gmra.mxu0 %v585_v6  ;;  %1426 = vmatmul.f32.gmra.mxu1 %v586_v15 }
 0x19d   :  { %1491 = vmatmul.f32.gmra.mxu2 %v585_v6  ;;  %1556 = vmatmul.f32.gmra.mxu3 %v586_v15  ;;  %6857 = vst [vmem:[#allocation85_spill] sm:$0xff] %v4614_v9  ;;  %v587_v6 = vmul.f32 %v4614_v9, %v555_v43  ;;  %v588_v15 = vmul.f32 %v4614_v9, %v556_v58 }
 0x1a0   :  { %v4624_v24 = vpop.f32.mrf.mxu2  ;;  %v4626_v23 = vpop.f32.mrf.mxu3 }
 0x1a1   :  { %6860 = vst [vmem:[#allocation86_spill] sm:$0xff] %v4624_v24  ;;  %v4630_v40 = vpop.f32.mrf.mxu0  ;;  %v4632_v44 = vpop.f32.mrf.mxu1 }
 0x1a2   :  { %6861 = vst [vmem:[#allocation87_spill] sm:$0xff] %v4626_v23 }
 0x1a3   :  { %6862 = vst [vmem:[#allocation88_spill] sm:$0xff] %v4630_v40 }
 0x1a4   :  { %6863 = vst [vmem:[#allocation89_spill] sm:$0xff] %v4632_v44  ;;  %1364 = vmatmul.f32.gmra.mxu0 %v587_v6  ;;  %1429 = vmatmul.f32.gmra.mxu1 %v588_v15 }
 0x1a5   :  { %1494 = vmatmul.f32.gmra.mxu2 %v587_v6  ;;  %1559 = vmatmul.f32.gmra.mxu3 %v588_v15 }
 0x1a8   :  { %v4634_v46 = vpop.f32.mrf.mxu2  ;;  %v4636_v62 = vpop.f32.mrf.mxu3 }
 0x1a9   :  { %6864 = vst [vmem:[#allocation90_spill] sm:$0xff] %v4634_v46  ;;  %v4638_v7 = vpop.f32.mrf.mxu0  ;;  %v4640_v31 = vpop.f32.mrf.mxu1 }
 0x1aa   :  { %6865 = vst [vmem:[#allocation91_spill] sm:$0xff] %v4636_v62 }
 0x1b0   :  { %v4642_v42 = vpop.f32.mrf.mxu2  ;;  %v4644_v43 = vpop.f32.mrf.mxu3 }
 0x1b1   :  { %6866 = vst [vmem:[#allocation92_spill] sm:$0xff] %v4642_v42  ;;  %v4646_v58 = vpop.f32.mrf.mxu0  ;;  %v4648_v48 = vpop.f32.mrf.mxu1 }
 0x1b2   :  { %6867 = vst [vmem:[#allocation93_spill] sm:$0xff] %v4644_v43 }
 0x1b8   :  { %v4650_v9 = vpop.f32.mrf.mxu2  ;;  %v4652_v6 = vpop.f32.mrf.mxu3 }
 0x1b9   :  { %v4654_v15 = vpop.f32.mrf.mxu0  ;;  %v4656_v51 = vpop.f32.mrf.mxu1 }
 0x1c0   :  { %v4658_v62 = vpop.f32.mrf.mxu2  ;;  %v4660_v46 = vpop.f32.mrf.mxu3 }
 0x1c1   :  { %6868 = vst [vmem:[#allocation94_spill] sm:$0xff] %v4658_v62  ;;  %v4662_v44 = vpop.f32.mrf.mxu0  ;;  %v4664_v23 = vpop.f32.mrf.mxu1 }
 0x1c2   :  { %6869 = vst [vmem:[#allocation95_spill] sm:$0xff] %v4660_v46 }
 0x1c3   :  { %6870 = vst [vmem:[#allocation96_spill] sm:$0xff] %v4662_v44 }
 0x1c4   :  { %6871 = vst [vmem:[#allocation97_spill] sm:$0xff] %v4664_v23 }
 0x1c8   :  { %v4666_v34 = vpop.f32.mrf.mxu2  ;;  %v4668_v40 = vpop.f32.mrf.mxu3 }
 0x1c9   :  { %6872 = vst [vmem:[#allocation98_spill] sm:$0xff] %v4666_v34  ;;  %v4670_v24 = vpop.f32.mrf.mxu0  ;;  %v4672_v14 = vpop.f32.mrf.mxu1 }
 0x1ca   :  { %6873 = vst [vmem:[#allocation99_spill] sm:$0xff] %v4668_v40 }
 0x1cb   :  { %6874 = vst [vmem:[#allocation100_spill] sm:$0xff] %v4670_v24 }
 0x1cc   :  { %6875 = vst [vmem:[#allocation101_spill] sm:$0xff] %v4672_v14 }
 0x1d0   :  { %v4674_v43 = vpop.f32.mrf.mxu2  ;;  %v4676_v42 = vpop.f32.mrf.mxu3 }
 0x1d1   :  { %6876 = vst [vmem:[#allocation102_spill] sm:$0xff] %v4674_v43  ;;  %v4678_v3 = vpop.f32.mrf.mxu0  ;;  %v4680_v62 = vpop.f32.mrf.mxu1 }
 0x1d2   :  { %6877 = vst [vmem:[#allocation103_spill] sm:$0xff] %v4676_v42 }
 0x1d3   :  { %6878 = vst [vmem:[#allocation104_spill] sm:$0xff] %v4678_v3 }
 0x1d4   :  { %6879 = vst [vmem:[#allocation105_spill] sm:$0xff] %v4680_v62 }
 0x1d8   :  { %v4682_v46 = vpop.f32.mrf.mxu2  ;;  %v4684_v44 = vpop.f32.mrf.mxu3 }
 0x1d9   :  { %6880 = vst [vmem:[#allocation106_spill] sm:$0xff] %v4682_v46  ;;  %v4686_v23 = vpop.f32.mrf.mxu0  ;;  %v4688_v34 = vpop.f32.mrf.mxu1 }
 0x1da   :  { %6881 = vst [vmem:[#allocation107_spill] sm:$0xff] %v4684_v44 }
 0x1db   :  { %6882 = vst [vmem:[#allocation108_spill] sm:$0xff] %v4686_v23 }
 0x1dc   :  { %6883 = vst [vmem:[#allocation109_spill] sm:$0xff] %v4688_v34 }
 0x1e0   :  { %v4690_v40 = vpop.f32.mrf.mxu2  ;;  %v4692_v24 = vpop.f32.mrf.mxu3 }
 0x1e1   :  { %6884 = vst [vmem:[#allocation110_spill] sm:$0xff] %v4690_v40  ;;  %v4694_v14 = vpop.f32.mrf.mxu0  ;;  %v4696_v43 = vpop.f32.mrf.mxu1 }
 0x1e2   :  { %6885 = vst [vmem:[#allocation111_spill] sm:$0xff] %v4692_v24  ;;  %v801_v24 = vadd.f32 %v3884_v26, %v3882_v25  ;;  %v6895_v25 = vld [vmem:[#allocation18_spill] sm:$0xff] }
 0x1e8   :  { %v4698_v42 = vpop.f32.mrf.mxu2  ;;  %v4700_v3 = vpop.f32.mrf.mxu3 }
 0x1e9   :  { %6886 = vst [vmem:[#allocation112_spill] sm:$0xff] %v4698_v42  ;;  %v4702_v62 = vpop.f32.mrf.mxu0  ;;  %v4704_v46 = vpop.f32.mrf.mxu1  ;;  %v804_v42 = vadd.f32 %v3907_v5, %v3905_v10  ;;  %v6897_v10 = vld [vmem:[#allocation21_spill] sm:$0xff] }
 0x1ea   :  { %6887 = vst [vmem:[#allocation113_spill] sm:$0xff] %v4700_v3  ;;  %v807_v3 = vadd.f32 %v3930_v32, %v3928_v54  ;;  %v6898_v54 = vld [vmem:[#allocation24_spill] sm:$0xff] }
 0x1eb   :  { %6888 = vst [vmem:[#allocation114_spill] sm:$0xff] %v4702_v62  ;;  %v6896_v62 = vld [vmem:[#allocation20_spill] sm:$0xff]  ;;  %v828_v32 = vadd.f32 %v6898_v54, %v4089_v53  ;;  %v6902_v53 = vld [vmem:[#allocation38_spill] sm:$0xff] }
 0x1ec   :  { %6889 = vst [vmem:[#allocation115_spill] sm:$0xff] %v4704_v46  ;;  %v810_v46 = vadd.f32 %v3953_v12, %v3951_v45  ;;  %v825_v5 = vadd.f32 %v6897_v10, %v6896_v62  ;;  %v6899_v45 = vld [vmem:[#allocation27_spill] sm:$0xff]  ;;  %v6901_v62 = vld [vmem:[#allocation37_spill] sm:$0xff] }
 0x1ed   :  { %v831_v12 = vadd.f32 %v6899_v45, %v4112_v1 }
 0x1ee   :  { %v1005_v1 = vadd.f32 %v4335_v49, %v810_v46  ;;  %v1023_v46 = vadd.f32 %v4482_v50, %v828_v32  ;;  %v6910_v32 = vld [vmem:[#allocation32_spill] sm:$0xff] }
 0x1f0   :  { %v4706_v44 = vpop.f32.mrf.mxu2  ;;  %v4708_v23 = vpop.f32.mrf.mxu3 }
 0x1f1   :  { %6890 = vst [vmem:[#allocation116_spill] sm:$0xff] %v4706_v44  ;;  %v4710_v34 = vpop.f32.mrf.mxu0  ;;  %v4712_v40 = vpop.f32.mrf.mxu1  ;;  %v813_v44 = vadd.f32 %v3976_v56, %v3974_v19  ;;  %v6900_v19 = vld [vmem:[#allocation30_spill] sm:$0xff] }
 0x1f2   :  { %6891 = vst [vmem:[#allocation117_spill] sm:$0xff] %v4708_v23  ;;  %v816_v23 = vadd.f32 %v3999_v35, %v3997_v4  ;;  %v834_v56 = vadd.f32 %v6900_v19, %v4135_v36  ;;  %v996_v4 = vadd.f32 %v4265_v30, %v801_v24  ;;  %v840_v35 = vadd.f32 %v4183_v52, %v4181_v8 }
 0x1f3   :  { %6892 = vst [vmem:[#allocation118_spill] sm:$0xff] %v4710_v34  ;;  %v6894_v34 = vld [vmem:[#allocation17_spill] sm:$0xff]  ;;  %v1008_v10 = vadd.f32 %v4359_v38, %v813_v44 }
 0x1f4   :  { %6893 = vst [vmem:[#allocation119_spill] sm:$0xff] %v4712_v40  ;;  %v819_v40 = vadd.f32 %v4022_v41, %v4020_v20  ;;  %v822_v26 = vadd.f32 %v6895_v25, %v6894_v34  ;;  %v837_v20 = vadd.f32 %v4160_v17, %v4158_v47  ;;  %v999_v41 = vadd.f32 %v4287_v28, %v804_v42  ;;  %v6903_v47 = vld [vmem:[#allocation41_spill] sm:$0xff]  ;;  %v6904_v17 = vld [vmem:[#allocation42_spill] sm:$0xff] }
 0x1f5   :  { %v1002_v34 = vadd.f32 %v4311_v39, %v807_v3  ;;  %v843_v25 = vadd.f32 %v6902_v53, %v6901_v62  ;;  %v1011_v36 = vadd.f32 %v4383_v63, %v816_v23  ;;  %v846_v8 = vadd.f32 %v6904_v17, %v6903_v47  ;;  %v6905_v38 = vld [vmem:[#allocation45_spill] sm:$0xff]  ;;  %v6906_v63 = vld [vmem:[#allocation23_spill] sm:$0xff]  ;;  %v6907_v42 = vld [vmem:[#allocation26_spill] sm:$0xff] }
 0x1f6   :  { %v1014_v52 = vadd.f32 %v4407_v27, %v819_v40  ;;  %v1017_v28 = vadd.f32 %v4431_v11, %v822_v26  ;;  %v1020_v39 = vadd.f32 %v4455_v55, %v825_v5  ;;  %v1061_v44 = vadd.f32 %v6905_v38, %v996_v4  ;;  %v6908_v40 = vld [vmem:[#allocation29_spill] sm:$0xff]  ;;  %v6914_v4 = vld [vmem:[#allocation67_spill] sm:$0xff] }
 0x1f7   :  { %v1150_v23 = vadd.f32 %v4476_v0, %v6906_v63  ;;  %v1153_v54 = vadd.f32 %v4501_v18, %v6907_v42  ;;  %v1064_v27 = vadd.f32 %v4289_v59, %v999_v41  ;;  %v1067_v11 = vadd.f32 %v4313_v16, %v1002_v34  ;;  %v6909_v16 = vld [vmem:[#allocation61_spill] sm:$0xff]  ;;  %v6916_v41 = vld [vmem:[#allocation70_spill] sm:$0xff]  ;;  %v6923_v63 = vld [vmem:[#allocation92_spill] sm:$0xff] }
 0x1f8   :  { %v4750_v30 = vpop.f32.mrf.mxu2  ;;  %v4752_v24 = vpop.f32.mrf.mxu3  ;;  %v1026_v55 = vadd.f32 %v4507_v2, %v831_v12  ;;  %v1156_v26 = vadd.f32 %v4526_v57, %v6908_v40  ;;  %v1070_v5 = vadd.f32 %v4337_v33, %v1005_v1  ;;  %v1073_v45 = vadd.f32 %v4361_v13, %v1008_v10  ;;  %v6911_v57 = vld [vmem:[#allocation73_spill] sm:$0xff]  ;;  %v6912_v33 = vld [vmem:[#allocation64_spill] sm:$0xff]  ;;  %v6917_v1 = vld [vmem:[#allocation71_spill] sm:$0xff] }
 0x1f9   :  { %v4759_v3 = vpop.f32.mrf.mxu0  ;;  %v4761_v49 = vpop.f32.mrf.mxu1  ;;  %v4777_v0 = vadd.f32 %v4385_v60, %v1011_v36  ;;  %v1029_v50 = vadd.f32 %v4532_v61, %v834_v56  ;;  %v4781_v18 = vadd.f32 %v4409_v29, %v1014_v52  ;;  %v4784_v59 = vadd.f32 %v4433_v21, %v1017_v28  ;;  %v6913_v13 = vld [vmem:[#allocation65_spill] sm:$0xff]  ;;  %v6915_v21 = vld [vmem:[#allocation68_spill] sm:$0xff]  ;;  %v6918_v36 = vld [vmem:[#allocation34_spill] sm:$0xff] }
 0x1fa   :  { %v4787_v2 = vadd.f32 %v6909_v16, %v1020_v39  ;;  %v1159_v12 = vadd.f32 %v6911_v57, %v6910_v32  ;;  %v4792_v19 = vadd.f32 %v6912_v33, %v1150_v23  ;;  %v4795_v60 = vadd.f32 %v6913_v13, %v1023_v46  ;;  %v6919_v47 = vld [vmem:[#allocation77_spill] sm:$0xff]  ;;  %v6931_v32 = vld [vmem:[#allocation40_spill] sm:$0xff]  ;;  %v6932_v57 = vld [vmem:[#allocation86_spill] sm:$0xff] }
 0x1fb   :  { %v4798_v61 = vadd.f32 %v6914_v4, %v1153_v54  ;;  %v1389_v29 = vadd.f32 %v4648_v48, %v4646_v58  ;;  %v4803_v56 = vadd.f32 %v6915_v21, %v1026_v55  ;;  %v4806_v34 = vadd.f32 %v6916_v41, %v1156_v26  ;;  %v6922_v39 = vld [vmem:[#allocation81_spill] sm:$0xff]  ;;  %v6926_v54 = vld [vmem:[#allocation94_spill] sm:$0xff]  ;;  %v6927_v55 = vld [vmem:[#allocation95_spill] sm:$0xff] }
 0x1fc   :  { %v1032_v62 = vadd.f32 %v4557_v37, %v837_v20  ;;  %v1386_v53 = vadd.f32 %v4640_v31, %v4638_v7  ;;  %v4812_v10 = vadd.f32 %v6917_v1, %v1029_v50  ;;  %v1162_v17 = vadd.f32 %v6919_v47, %v6918_v36  ;;  %v6920_v37 = vld [vmem:[#allocation74_spill] sm:$0xff]  ;;  %v6921_v31 = vld [vmem:[#allocation36_spill] sm:$0xff]  ;;  %v6924_v23 = vld [vmem:[#allocation93_spill] sm:$0xff] }
 0x1fd   :  { %v1519_v58 = vadd.f32 %v4652_v6, %v4650_v9  ;;  %v1392_v48 = vadd.f32 %v4656_v51, %v4654_v15  ;;  %v4825_v20 = vadd.f32 %v6920_v37, %v1159_v12  ;;  %v1035_v7 = vadd.f32 %v4582_v22, %v840_v35  ;;  %v6925_v51 = vld [vmem:[#allocation83_spill] sm:$0xff]  ;;  %v6928_v26 = vld [vmem:[#allocation96_spill] sm:$0xff]  ;;  %v6929_v50 = vld [vmem:[#allocation97_spill] sm:$0xff] }
 0x1fe   :  { %v1165_v38 = vadd.f32 %v6922_v39, %v6921_v31  ;;  %v1516_v46 = vadd.f32 %v6924_v23, %v6923_v63  ;;  %v1038_v6 = vadd.f32 %v6925_v51, %v843_v25  ;;  %v4837_v15 = vadd.f32 %v1389_v29, %v1064_v27  ;;  %v6930_v35 = vld [vmem:[#allocation75_spill] sm:$0xff]  ;;  %v6933_v33 = vld [vmem:[#allocation88_spill] sm:$0xff]  ;;  %v6934_v21 = vld [vmem:[#allocation78_spill] sm:$0xff] }
 0x1ff   :  { %v1522_v40 = vadd.f32 %v6927_v55, %v6926_v54  ;;  %v1395_v22 = vadd.f32 %v6929_v50, %v6928_v26  ;;  %v4844_v16 = vadd.f32 %v6930_v35, %v1032_v62  ;;  %v1168_v12 = vadd.f32 %v6932_v57, %v6931_v32  ;;  %v6935_v27 = vld [vmem:[#allocation49_spill] sm:$0xff]  ;;  %v6936_v1 = vld [vmem:[#allocation98_spill] sm:$0xff]  ;;  %v6937_v36 = vld [vmem:[#allocation99_spill] sm:$0xff] }
 0x200   :  { %v4820_v52 = vpop.f32.mrf.mxu2  ;;  %v4822_v28 = vpop.f32.mrf.mxu3  ;;  %v1041_v13 = vadd.f32 %v6933_v33, %v846_v8  ;;  %v4849_v4 = vadd.f32 %v1386_v53, %v1061_v44  ;;  %v4852_v25 = vadd.f32 %v6934_v21, %v1162_v17  ;;  %v4855_v29 = vadd.f32 %v1519_v58, %v6935_v27  ;;  %v6938_v62 = vld [vmem:[#allocation79_spill] sm:$0xff]  ;;  %v6939_v31 = vld [vmem:[#allocation82_spill] sm:$0xff]  ;;  %v6941_v53 = vld [vmem:[#allocation100_spill] sm:$0xff] }
 0x201   :  { %v4832_v42 = vpop.f32.mrf.mxu0  ;;  %v4834_v9 = vpop.f32.mrf.mxu1  ;;  %v4857_v41 = vadd.f32 %v1392_v48, %v1067_v11  ;;  %v1525_v47 = vadd.f32 %v6937_v36, %v6936_v1  ;;  %v4862_v37 = vadd.f32 %v6938_v62, %v1035_v7  ;;  %v4865_v39 = vadd.f32 %v6939_v31, %v1165_v38  ;;  %v6940_v8 = vld [vmem:[#allocation47_spill] sm:$0xff]  ;;  %v6942_v17 = vld [vmem:[#allocation101_spill] sm:$0xff]  ;;  %v6943_v23 = vld [vmem:[#allocation84_spill] sm:$0xff] }
 0x202   :  { %v4868_v44 = vadd.f32 %v1516_v46, %v6940_v8  ;;  %v1398_v63 = vadd.f32 %v6942_v17, %v6941_v53  ;;  %v4873_v58 = vadd.f32 %v6943_v23, %v1038_v6  ;;  %v1639_v11 = vmul.f32 %v4837_v15, %v4837_v15  ;;  %v6944_v48 = vld [vmem:[#allocation51_spill] sm:$0xff]  ;;  %v6947_v55 = vld [vmem:[#allocation89_spill] sm:$0xff]  ;;  %v6948_v50 = vld [vmem:[#allocation104_spill] sm:$0xff] }
 0x203   :  { %v4878_v51 = vadd.f32 %v1522_v40, %v6944_v48  ;;  %v4880_v7 = vadd.f32 %v1395_v22, %v1070_v5  ;;  %v6946_v54 = vld [vmem:[#allocation87_spill] sm:$0xff]  ;;  %v4886_v46 = vadd.f32 %v6947_v55, %v1041_v13  ;;  %v1637_v26 = vmul.f32 %v4849_v4, %v4849_v4  ;;  %v6949_v6 = vld [vmem:[#allocation105_spill] sm:$0xff]  ;;  %v6952_v57 = vld [vmem:[#allocation102_spill] sm:$0xff] }
 0x204   :  { %v4883_v38 = vadd.f32 %v6946_v54, %v1168_v12  ;;  %v1401_v35 = vadd.f32 %v6949_v6, %v6948_v50  ;;  %v1640_v32 = vmul.f32 %v4855_v29, %v4855_v29  ;;  %v1641_v40 = vmul.f32 %v4857_v41, %v4857_v41  ;;  %v6950_v5 = vld [vmem:[#allocation53_spill] sm:$0xff]  ;;  %v6953_v12 = vld [vmem:[#allocation103_spill] sm:$0xff]  ;;  %v6955_v62 = vld [vmem:[#allocation108_spill] sm:$0xff] }
 0x205   :  { %6945 = vst [vmem:[#allocation17_spill] sm:$0xff] %v4878_v51  ;;  %v4897_v22 = vadd.f32 %v1525_v47, %v6950_v5  ;;  %v1528_v33 = vadd.f32 %v6953_v12, %v6952_v57  ;;  %v1638_v27 = vmul.f32 %v4868_v44, %v4868_v44  ;;  %v1595_v1 = vadd.f32 %v4837_v15, %v4849_v4  ;;  %v6956_v31 = vld [vmem:[#allocation109_spill] sm:$0xff]  ;;  %v6957_v54 = vld [vmem:[#allocation106_spill] sm:$0xff]  ;;  %v6958_v55 = vld [vmem:[#allocation107_spill] sm:$0xff] }
 0x206   :  { %v4909_v36 = vadd.f32 %v1398_v63, %v1073_v45  ;;  %v1404_v8 = vadd.f32 %v6956_v31, %v6955_v62  ;;  %v1669_v17 = vadd.f32 %v1639_v11, %v1637_v26  ;;  %v1642_v23 = vmul.f32 %v4878_v51, %v4878_v51  ;;  %v6960_v12 = vld [vmem:[#allocation55_spill] sm:$0xff] }
 0x207   :  { %6951 = vst [vmem:[#allocation18_spill] sm:$0xff] %v4897_v22  ;;  %v1643_v48 = vmul.f32 %v4880_v7, %v4880_v7  ;;  %v1531_v50 = vadd.f32 %v6958_v55, %v6957_v54  ;;  %v1616_v6 = vadd.f32 %v4855_v29, %v4868_v44  ;;  %v1596_v45 = vadd.f32 %v1595_v1, %v4857_v41 }
 0x208   :  { %v4901_v13 = vpop.f32.mrf.mxu2  ;;  %v4903_v21 = vpop.f32.mrf.mxu3  ;;  %6954 = vst [vmem:[#allocation20_spill] sm:$0xff] %v4909_v36  ;;  %v4923_v63 = vadd.f32 %v1401_v35, %v4777_v0  ;;  %v1407_v11 = vadd.f32 %v4696_v43, %v4694_v14  ;;  %v1690_v26 = vadd.f32 %v1640_v32, %v1638_v27  ;;  %v1670_v5 = vadd.f32 %v1669_v17, %v1641_v40  ;;  %v6961_v0 = vld [vmem:[#allocation114_spill] sm:$0xff]  ;;  %v6962_v35 = vld [vmem:[#allocation115_spill] sm:$0xff]  ;;  %v6963_v40 = vld [vmem:[#allocation57_spill] sm:$0xff] }
 0x209   :  { %v1356_v47 = vpop.f32.mrf.mxu0  ;;  %v1421_v53 = vpop.f32.mrf.mxu1  ;;  %v1644_v57 = vmul.f32 %v4897_v22, %v4897_v22  ;;  %v4930_v62 = vadd.f32 %v1528_v33, %v6960_v12  ;;  %v1617_v31 = vadd.f32 %v1616_v6, %v4878_v51  ;;  %v1645_v54 = vmul.f32 %v4909_v36, %v4909_v36  ;;  %v6964_v6 = vld [vmem:[#allocation110_spill] sm:$0xff]  ;;  %v6965_v12 = vld [vmem:[#allocation111_spill] sm:$0xff] }
 0x20a   :  { %6959 = vst [vmem:[#allocation21_spill] sm:$0xff] %v4923_v63  ;;  %v4936_v1 = vadd.f32 %v1404_v8, %v4781_v18  ;;  %v1410_v55 = vadd.f32 %v6962_v35, %v6961_v0  ;;  %v1691_v14 = vadd.f32 %v1690_v26, %v1642_v23  ;;  %v1597_v43 = vadd.f32 %v1596_v45, %v4880_v7  ;;  %v6966_v45 = vld [vmem:[#allocation118_spill] sm:$0xff] }
 0x20b   :  { %v1671_v32 = vadd.f32 %v1670_v5, %v1643_v48  ;;  %v4942_v27 = vadd.f32 %v1531_v50, %v6963_v40  ;;  %v1618_v33 = vadd.f32 %v1617_v31, %v4897_v22  ;;  %v1647_v17 = vmul.f32 %v4923_v63, %v4923_v63  ;;  %v6967_v50 = vld [vmem:[#allocation119_spill] sm:$0xff]  ;;  %v6968_v40 = vld [vmem:[#allocation112_spill] sm:$0xff] }
 0x20c   :  { %v1534_v51 = vadd.f32 %v6965_v12, %v6964_v6  ;;  %v4950_v18 = vadd.f32 %v1407_v11, %v4784_v59  ;;  %v1692_v8 = vadd.f32 %v1691_v14, %v1644_v57  ;;  %v1598_v23 = vadd.f32 %v1597_v43, %v4909_v36  ;;  %v6969_v6 = vld [vmem:[#allocation113_spill] sm:$0xff] }
 0x20d   :  { %v1646_v48 = vmul.f32 %v4930_v62, %v4930_v62  ;;  %v1413_v26 = vadd.f32 %v6967_v50, %v6966_v45  ;;  %v1672_v0 = vadd.f32 %v1671_v32, %v1645_v54  ;;  %v1649_v35 = vmul.f32 %v4936_v1, %v4936_v1  ;;  %v6970_v50 = vld [vmem:[#allocation59_spill] sm:$0xff] }
 0x20e   :  { %v1537_v12 = vadd.f32 %v6969_v6, %v6968_v40  ;;  %v4962_v59 = vadd.f32 %v1410_v55, %v4787_v2  ;;  %v1619_v14 = vadd.f32 %v1618_v33, %v4930_v62  ;;  %v1599_v43 = vadd.f32 %v1598_v23, %v4923_v63  ;;  %v6971_v55 = vld [vmem:[#allocation116_spill] sm:$0xff]  ;;  %v6972_v40 = vld [vmem:[#allocation117_spill] sm:$0xff] }
 0x20f   :  { %v1648_v45 = vmul.f32 %v4942_v27, %v4942_v27  ;;  %v1416_v54 = vadd.f32 %v4761_v49, %v4759_v3  ;;  %v1673_v32 = vadd.f32 %v1672_v0, %v1647_v17  ;;  %v4971_v36 = vadd.f32 %v1534_v51, %v6970_v50  ;;  %v6973_v51 = vld [vmem:[#allocation62_spill] sm:$0xff] }
 0x210   :  { %v1486_v5 = vpop.f32.mrf.mxu2  ;;  %v1551_v31 = vpop.f32.mrf.mxu3  ;;  %v1651_v2 = vmul.f32 %v4950_v18, %v4950_v18  ;;  %v1540_v6 = vadd.f32 %v6972_v40, %v6971_v55  ;;  %v1693_v22 = vadd.f32 %v1692_v8, %v1646_v48  ;;  %v1600_v33 = vadd.f32 %v1599_v43, %v4936_v1 }
 0x211   :  { %v1359_v11 = vpop.f32.mrf.mxu0  ;;  %v1424_v57 = vpop.f32.mrf.mxu1  ;;  %v4979_v23 = vadd.f32 %v1413_v26, %v4795_v60  ;;  %v1419_v63 = vadd.f32 %v4834_v9, %v4832_v42  ;;  %v1620_v3 = vadd.f32 %v1619_v14, %v4942_v27  ;;  %v1674_v49 = vadd.f32 %v1673_v32, %v1649_v35 }
 0x212   :  { %v4985_v17 = vadd.f32 %v1537_v12, %v6973_v51  ;;  %v1653_v0 = vmul.f32 %v4962_v59, %v4962_v59  ;;  %v1694_v50 = vadd.f32 %v1693_v22, %v1648_v45  ;;  %v1601_v8 = vadd.f32 %v1600_v33, %v4950_v18 }
 0x213   :  { %v4991_v48 = vadd.f32 %v1416_v54, %v4803_v56  ;;  %v1422_v60 = vadd.f32 %v1421_v53, %v1356_v47  ;;  %v1650_v26 = vmul.f32 %v4971_v36, %v4971_v36  ;;  %v1675_v42 = vadd.f32 %v1674_v49, %v1651_v2 }
 0x214   :  { %v4996_v9 = vadd.f32 %v1540_v6, %v4792_v19  ;;  %v1543_v35 = vadd.f32 %v4752_v24, %v4750_v30  ;;  %v1602_v12 = vadd.f32 %v1601_v8, %v4962_v59  ;;  %v1655_v22 = vmul.f32 %v4979_v23, %v4979_v23 }
 0x215   :  { %v5004_v14 = vadd.f32 %v1419_v63, %v4812_v10  ;;  %v1425_v56 = vadd.f32 %v1424_v57, %v1359_v11  ;;  %v1621_v43 = vadd.f32 %v1620_v3, %v4971_v36  ;;  %v1652_v19 = vmul.f32 %v4985_v17, %v4985_v17 }
 0x216   :  { %v1676_v45 = vadd.f32 %v1675_v42, %v1653_v0  ;;  %v1546_v30 = vadd.f32 %v4822_v28, %v4820_v52  ;;  %v1603_v32 = vadd.f32 %v1602_v12, %v4979_v23  ;;  %v1657_v10 = vmul.f32 %v4991_v48, %v4991_v48 }
 0x217   :  { %v5015_v63 = vadd.f32 %v1422_v60, %v4844_v16  ;;  %v1695_v57 = vadd.f32 %v1694_v50, %v1650_v26  ;;  %v1654_v2 = vmul.f32 %v4996_v9, %v4996_v9  ;;  %v5020_v55 = vadd.f32 %v1543_v35, %v4798_v61 }
 0x218   :  { %v1489_v47 = vpop.f32.mrf.mxu2  ;;  %v1554_v53 = vpop.f32.mrf.mxu3  ;;  %v1549_v52 = vadd.f32 %v4903_v21, %v4901_v13  ;;  %v1677_v28 = vadd.f32 %v1676_v45, %v1655_v22  ;;  %v1604_v40 = vadd.f32 %v1603_v32, %v4991_v48  ;;  %v1659_v6 = vmul.f32 %v5004_v14, %v5004_v14 }
 0x219   :  { %v1362_v24 = vpop.f32.mrf.mxu0  ;;  %v1427_v54 = vpop.f32.mrf.mxu1  ;;  %v5028_v16 = vadd.f32 %v1425_v56, %v4862_v37  ;;  %v1622_v33 = vadd.f32 %v1621_v43, %v4985_v17  ;;  %v1696_v3 = vadd.f32 %v1695_v57, %v1652_v19  ;;  %v5032_v49 = vadd.f32 %v1546_v30, %v4806_v34 }
 0x21a   :  { %v1428_v11 = vadd.f32 %v1427_v54, %v1362_v24  ;;  %v1552_v61 = vadd.f32 %v1551_v31, %v1486_v5  ;;  %v1678_v51 = vadd.f32 %v1677_v28, %v1657_v10  ;;  %v1605_v0 = vadd.f32 %v1604_v40, %v5004_v14  ;;  %v6975_v10 = vld [vmem:[#allocation90_spill] sm:$0xff] }
 0x21b   :  { %v1661_v13 = vmul.f32 %v5015_v63, %v5015_v63  ;;  %v1623_v50 = vadd.f32 %v1622_v33, %v4996_v9  ;;  %v1656_v37 = vmul.f32 %v5020_v55, %v5020_v55  ;;  %v5044_v8 = vadd.f32 %v1549_v52, %v4825_v20 }
 0x21c   :  { %v5038_v21 = vadd.f32 %v1428_v11, %v4873_v58  ;;  %v1555_v34 = vadd.f32 %v1554_v53, %v1489_v47  ;;  %v1697_v60 = vadd.f32 %v1696_v3, %v1654_v2  ;;  %v1679_v5 = vadd.f32 %v1678_v51, %v1659_v6 }
 0x21d   :  { %v1606_v31 = vadd.f32 %v1605_v0, %v5015_v63  ;;  %v1663_v26 = vmul.f32 %v5028_v16, %v5028_v16  ;;  %v1624_v58 = vadd.f32 %v1623_v50, %v5020_v55  ;;  %v1658_v12 = vmul.f32 %v5032_v49, %v5032_v49 }
 0x21e   :  { %v5053_v22 = vadd.f32 %v1552_v61, %v4852_v25  ;;  %v1680_v53 = vadd.f32 %v1679_v5, %v1661_v13  ;;  %v1665_v19 = vmul.f32 %v5038_v21, %v5038_v21  ;;  %v1698_v30 = vadd.f32 %v1697_v60, %v1656_v37  ;;  %v6974_v25 = vld [vmem:[#allocation44_spill] sm:$0xff]  ;;  %v6976_v13 = vld [vmem:[#allocation91_spill] sm:$0xff] }
 0x21f   :  { %v1607_v43 = vadd.f32 %v1606_v31, %v5028_v16  ;;  %v1625_v24 = vadd.f32 %v1624_v58, %v5032_v49  ;;  %v1660_v54 = vmul.f32 %v5044_v8, %v5044_v8  ;;  %v5062_v32 = vadd.f32 %v1555_v34, %v4865_v39 }
 0x220   :  { %v1492_v42 = vpop.f32.mrf.mxu2  ;;  %v1557_v35 = vpop.f32.mrf.mxu3  ;;  %v1171_v11 = vadd.f32 %v6975_v10, %v6974_v25  ;;  %v1681_v57 = vadd.f32 %v1680_v53, %v1663_v26  ;;  %v1699_v28 = vadd.f32 %v1698_v30, %v1658_v12  ;;  %v1662_v6 = vmul.f32 %v5053_v22, %v5053_v22 }
 0x221   :  { %v1558_v20 = vadd.f32 %v1557_v35, %v1492_v42  ;;  %v1365_v56 = vpop.f32.mrf.mxu0  ;;  %v1430_v47 = vpop.f32.mrf.mxu1  ;;  %v1608_v2 = vadd.f32 %v1607_v43, %v5038_v21  ;;  %v1626_v40 = vadd.f32 %v1625_v24, %v5044_v8 }
 0x222   :  { %v1431_v45 = vadd.f32 %v1430_v47, %v1365_v56  ;;  %v1682_v39 = vadd.f32 %v1681_v57, %v1665_v19  ;;  %v1700_v51 = vadd.f32 %v1699_v28, %v1660_v54  ;;  %v1236_v50 = vadd.f32 %v6976_v13, %v1171_v11 }
 0x223   :  { %v5074_v33 = vadd.f32 %v1558_v20, %v4883_v38  ;;  %v1627_v0 = vadd.f32 %v1626_v40, %v5053_v22 }
 0x224   :  { %v5068_v52 = vadd.f32 %v1431_v45, %v4886_v46  ;;  %v1664_v46 = vmul.f32 %v5062_v32, %v5062_v32  ;;  %v1701_v38 = vadd.f32 %v1700_v51, %v1662_v6 }
 0x225   :  { %v1628_v31 = vadd.f32 %v1627_v0, %v5062_v32  ;;  %v1666_v26 = vmul.f32 %v5074_v33, %v5074_v33 }
 0x226   :  { %v1609_v3 = vadd.f32 %v1608_v2, %v5068_v52  ;;  %v1667_v61 = vmul.f32 %v5068_v52, %v5068_v52  ;;  %v1702_v12 = vadd.f32 %v1701_v38, %v1664_v46  ;;  %v2194_v38 = vld [vmem:[#allocation4 + $0x3f0] sm:$0xff] }
 0x227   :  { %v1629_v20 = vadd.f32 %v1628_v31, %v5074_v33  ;;  %v2163_v31 = vld [vmem:[#allocation4 + $0x2f8] sm:$0xff]  ;;  %2261 = vmatpush.msrb.mxu1 %v2194_v38 }
 0x228   :  { %v1610_v37 = vrot.slane %v1609_v3, 4  ;;  %v1683_v34 = vadd.f32 %v1682_v39, %v1667_v61  ;;  %v1495_v60 = vpop.f32.mrf.mxu2  ;;  %v1560_v5 = vpop.f32.mrf.mxu3  ;;  %v1703_v43 = vadd.f32 %v1702_v12, %v1666_v26  ;;  %v2195_v26 = vld [vmem:[#allocation4 + $0x3f8] sm:$0xff]  ;;  %2326 = vmatpush.msrb.mxu2 %v2163_v31  ;;  %v2193_v12 = vld [vmem:[#allocation4 + $0x3e8] sm:$0xff] }
 0x229   :  { %v1561_v42 = vadd.f32 %v1560_v5, %v1495_v60  ;;  %v2162_v5 = vld [vmem:[#allocation4 + $0x2f0] sm:$0xff]  ;;  %2391 = vmatpush.msrb.mxu3 %v2195_v26 }
 0x22a   :  { %v1611_v35 = vadd.f32 %v1610_v37, %v1609_v3  ;;  %v1684_v58 = vrot.slane %v1683_v34, 4  ;;  %2196 = vmatpush.msrb.mxu0 %v2162_v5 }
 0x22b   :  { %v5087_v56 = vadd.f32 %v1561_v42, %v1236_v50  ;;  %v2160_v42 = vld [vmem:[#allocation4 + $0x2e0] sm:$0xff]  ;;  %2392 = vmatpush.msrb.mxu3 %v2193_v12  ;;  %v2178_v12 = vld [vmem:[#allocation4 + $0x370] sm:$0xff] }
 0x22c   :  { %v1612_v47 = vrot.slane %v1611_v35, 2  ;;  %v1685_v53 = vadd.f32 %v1684_v58, %v1683_v34  ;;  %v2161_v58 = vld [vmem:[#allocation4 + $0x2e8] sm:$0xff]  ;;  %2197 = vmatpush.msrb.mxu0 %v2160_v42 }
 0x22d   :  { %v1630_v19 = vadd.f32 %v1629_v20, %v5087_v56  ;;  %v1668_v45 = vmul.f32 %v5087_v56, %v5087_v56  ;;  %v2158_v20 = vld [vmem:[#allocation4 + $0x2d0] sm:$0xff]  ;;  %2327 = vmatpush.msrb.mxu2 %v2161_v58 }
 0x22e   :  { %v1613_v30 = vadd.f32 %v1612_v47, %v1611_v35  ;;  %v1686_v24 = vrot.slane %v1685_v53, 2  ;;  %v2192_v35 = vld [vmem:[#allocation4 + $0x3e0] sm:$0xff]  ;;  %v2190_v47 = vld [vmem:[#allocation4 + $0x3d0] sm:$0xff]  ;;  %2198 = vmatpush.msrb.mxu0 %v2158_v20  ;;  %v2147_v20 = vld [vmem:[#allocation4 + $0x278] sm:$0xff] }
 0x22f   :  { %v1631_v54 = vrot.slane %v1630_v19, 4  ;;  %v1704_v25 = vadd.f32 %v1703_v43, %v1668_v45  ;;  %2262 = vmatpush.msrb.mxu1 %v2192_v35  ;;  %v2191_v43 = vld [vmem:[#allocation4 + $0x3d8] sm:$0xff]  ;;  %v2188_v45 = vld [vmem:[#allocation4 + $0x3c0] sm:$0xff]  ;;  %v2146_v58 = vld [vmem:[#allocation4 + $0x270] sm:$0xff] }
 0x230   :  { %v1614_v10 = vrot.slane %v1613_v30, 1  ;;  %v1687_v11 = vadd.f32 %v1686_v24, %v1685_v53  ;;  %v2159_v53 = vld [vmem:[#allocation4 + $0x2d8] sm:$0xff]  ;;  %v2189_v24 = vld [vmem:[#allocation4 + $0x3c8] sm:$0xff]  ;;  %2393 = vmatpush.msrb.mxu3 %v2191_v43 }
 0x231   :  { %v1632_v57 = vadd.f32 %v1631_v54, %v1630_v19  ;;  %v1705_v2 = vrot.slane %v1704_v25, 4  ;;  %v2156_v19 = vld [vmem:[#allocation4 + $0x2c0] sm:$0xff]  ;;  %2263 = vmatpush.msrb.mxu1 %v2190_v47  ;;  %2328 = vmatpush.msrb.mxu2 %v2159_v53  ;;  %v2154_v54 = vld [vmem:[#allocation4 + $0x2b0] sm:$0xff]  ;;  %v2179_v47 = vld [vmem:[#allocation4 + $0x378] sm:$0xff] }
 0x232   :  { %v1688_v28 = vrot.slane %v1687_v11, 1  ;;  %v1615_v39 = vadd.f32 %v1614_v10, %v1613_v30  ;;  %v2157_v30 = vld [vmem:[#allocation4 + $0x2c8] sm:$0xff]  ;;  %2199 = vmatpush.msrb.mxu0 %v2156_v19  ;;  %v2155_v10 = vld [vmem:[#allocation4 + $0x2b8] sm:$0xff]  ;;  %2394 = vmatpush.msrb.mxu3 %v2189_v24 }
 0x233   :  { %v1633_v40 = vrot.slane %v1632_v57, 2  ;;  %v1706_v6 = vadd.f32 %v1705_v2, %v1704_v25  ;;  %v2186_v25 = vld [vmem:[#allocation4 + $0x3b0] sm:$0xff]  ;;  %2264 = vmatpush.msrb.mxu1 %v2188_v45  ;;  %2329 = vmatpush.msrb.mxu2 %v2157_v30  ;;  %v2184_v2 = vld [vmem:[#allocation4 + $0x3a0] sm:$0xff] }
 0x234   :  { %v1689_v3 = vadd.f32 %v1688_v28, %v1687_v11  ;;  %v2187_v11 = vld [vmem:[#allocation4 + $0x3b8] sm:$0xff]  ;;  %2200 = vmatpush.msrb.mxu0 %v2154_v54  ;;  %v2153_v28 = vld [vmem:[#allocation4 + $0x2a8] sm:$0xff] }
 0x235   :  { %v1634_v61 = vadd.f32 %v1633_v40, %v1632_v57  ;;  %v1707_v51 = vrot.slane %v1706_v6, 2  ;;  %v2152_v57 = vld [vmem:[#allocation4 + $0x2a0] sm:$0xff]  ;;  %2265 = vmatpush.msrb.mxu1 %v2186_v25  ;;  %v2185_v40 = vld [vmem:[#allocation4 + $0x3a8] sm:$0xff]  ;;  %2330 = vmatpush.msrb.mxu2 %v2155_v10 }
 0x236   :  { %v5093_v0 = vsel %vm1711_vm5, %v1615_v39, %v1689_v3  ;;  %2395 = vmatpush.msrb.mxu3 %v2187_v11  ;;  %v2182_v39 = vld [vmem:[#allocation4 + $0x390] sm:$0xff]  ;;  %2201 = vmatpush.msrb.mxu0 %v2152_v57  ;;  %v2151_v3 = vld [vmem:[#allocation4 + $0x298] sm:$0xff]  ;;  %v2144_v57 = vld [vmem:[#allocation4 + $0x260] sm:$0xff] }
 0x237   :  { %1714 = vrot.lane.b32.xlu0 %v5093_v0, %s3582_s14  ;;  %v1708_v46 = vadd.f32 %v1707_v51, %v1706_v6  ;;  %v1635_v13 = vrot.slane %v1634_v61, 1  ;;  %v2150_v6 = vld [vmem:[#allocation4 + $0x290] sm:$0xff]  ;;  %2266 = vmatpush.msrb.mxu1 %v2184_v2  ;;  %v2176_v2 = vld [vmem:[#allocation4 + $0x360] sm:$0xff] }
 0x238   :  { %2331 = vmatpush.msrb.mxu2 %v2153_v28  ;;  %2396 = vmatpush.msrb.mxu3 %v2185_v40  ;;  %v2145_v28 = vld [vmem:[#allocation4 + $0x268] sm:$0xff] }
 0x239   :  { %v1709_v50 = vrot.slane %v1708_v46, 1  ;;  %v1636_v34 = vadd.f32 %v1635_v13, %v1634_v61  ;;  %v2183_v61 = vld [vmem:[#allocation4 + $0x398] sm:$0xff]  ;;  %v2180_v13 = vld [vmem:[#allocation4 + $0x380] sm:$0xff]  ;;  %2202 = vmatpush.msrb.mxu0 %v2150_v6  ;;  %2267 = vmatpush.msrb.mxu1 %v2182_v39  ;;  %v2177_v40 = vld [vmem:[#allocation4 + $0x368] sm:$0xff] }
 0x23a   :  { %2332 = vmatpush.msrb.mxu2 %v2151_v3  ;;  %2397 = vmatpush.msrb.mxu3 %v2183_v61  ;;  %v2142_v6 = vld [vmem:[#allocation4 + $0x250] sm:$0xff]  ;;  %v2143_v3 = vld [vmem:[#allocation4 + $0x258] sm:$0xff] }
 0x23b   :  { %v1710_v37 = vadd.f32 %v1709_v50, %v1708_v46  ;;  %v2148_v46 = vld [vmem:[#allocation4 + $0x280] sm:$0xff]  ;;  %v2149_v50 = vld [vmem:[#allocation4 + $0x288] sm:$0xff]  ;;  %2268 = vmatpush.msrb.mxu1 %v2180_v13  ;;  %v2174_v39 = vld [vmem:[#allocation4 + $0x350] sm:$0xff] }
 0x23c   :  { %2203 = vmatpush.msrb.mxu0 %v2148_v46  ;;  %2333 = vmatpush.msrb.mxu2 %v2149_v50  ;;  %v2175_v61 = vld [vmem:[#allocation4 + $0x358] sm:$0xff]  ;;  %v2172_v46 = vld [vmem:[#allocation4 + $0x340] sm:$0xff]  ;;  %v2141_v13 = vld [vmem:[#allocation4 + $0x248] sm:$0xff] }
 0x23d   :  { %v5098_v60 = vsel %vm1711_vm5, %v1636_v34, %v1710_v37  ;;  %v2181_v37 = vld [vmem:[#allocation4 + $0x388] sm:$0xff]  ;;  %v6977_v34 = vlaneseq  ;;  %2269 = vmatpush.msrb.mxu1 %v2178_v12 }
 0x23e   :  { %2398 = vmatpush.msrb.mxu3 %v2181_v37  ;;  %2204 = vmatpush.msrb.mxu0 %v2146_v58  ;;  %v2173_v50 = vld [vmem:[#allocation4 + $0x348] sm:$0xff]  ;;  %v2138_v37 = vld [vmem:[#allocation4 + $0x230] sm:$0xff] }
 0x23f   :  { %1716 = vrot.lane.b32.xlu0 %v5098_v60, %s3582_s14  ;;  %v5103_v5 = vand.u32 127, %v6977_v34  ;;  %2334 = vmatpush.msrb.mxu2 %v2147_v20  ;;  %v2170_v34 = vld [vmem:[#allocation4 + $0x330] sm:$0xff]  ;;  %v2137_v58 = vld [vmem:[#allocation4 + $0x228] sm:$0xff] }
 0x240   :  { %2399 = vmatpush.msrb.mxu3 %v2179_v47  ;;  %2205 = vmatpush.msrb.mxu0 %v2144_v57  ;;  %v2169_v20 = vld [vmem:[#allocation4 + $0x328] sm:$0xff]  ;;  %v2134_v47 = vld [vmem:[#allocation4 + $0x210] sm:$0xff] }
 0x241   :  { %6978 = vst [vmem:[#allocation24_spill] sm:$0xff] %v5103_v5  ;;  %vm1720_vm6 = vcmp.lt.s32.totalorder %v5103_v5, 32  ;;  %vm1729_vm7 = vcmp.lt.s32.totalorder %v5103_v5, 64  ;;  %2270 = vmatpush.msrb.mxu1 %v2176_v2  ;;  %2335 = vmatpush.msrb.mxu2 %v2145_v28  ;;  %v2097_v57 = vld [vmem:[#allocation4 + $0xf0] sm:$0xff]  ;;  %v2098_v28 = vld [vmem:[#allocation4 + $0xf8] sm:$0xff] }
 0x242   :  { %2400 = vmatpush.msrb.mxu3 %v2177_v40  ;;  %2206 = vmatpush.msrb.mxu0 %v2142_v6  ;;  %v2129_v2 = vld [vmem:[#allocation4 + $0x1f0] sm:$0xff]  ;;  %v2130_v40 = vld [vmem:[#allocation4 + $0x1f8] sm:$0xff] }
 0x243   :  { %2271 = vmatpush.msrb.mxu1 %v2174_v39  ;;  %2336 = vmatpush.msrb.mxu2 %v2143_v3  ;;  %v2095_v3 = vld [vmem:[#allocation4 + $0xe0] sm:$0xff] }
 0x244   :  { %2401 = vmatpush.msrb.mxu3 %v2175_v61  ;;  %v2127_v61 = vld [vmem:[#allocation4 + $0x1e0] sm:$0xff] }
 0x245   :  { %2272 = vmatpush.msrb.mxu1 %v2172_v46  ;;  %2337 = vmatpush.msrb.mxu2 %v2141_v13  ;;  %v2128_v46 = vld [vmem:[#allocation4 + $0x1e8] sm:$0xff]  ;;  %v1741_v13 = vld [vmem:[%s6648_s3] sm:$0x3] }
 0x246   :  { %2402 = vmatpush.msrb.mxu3 %v2173_v50 }
 0x247   :  { %2273 = vmatpush.msrb.mxu1 %v2170_v34 }
 0x2a9   :  { %v1715_v51 = vpop.permute.xlu0 %1714 }
 0x2b1   :  { %v1717_v38 = vpop.permute.xlu0 %1716 }
 0x2b2   :  { %v1722_v31 = vsel %vm1720_vm6, %v1717_v38, %v1715_v51  ;;  %v1721_v42 = vsel %vm1720_vm6, %v1715_v51, %v1717_v38  ;;  %v2140_v51 = vld [vmem:[#allocation4 + $0x240] sm:$0xff]  ;;  %v2139_v38 = vld [vmem:[#allocation4 + $0x238] sm:$0xff] }
 0x2b3   :  { %v1723_v26 = vadd.f32 %v1722_v31, %v5093_v0  ;;  %v1724_v35 = vadd.f32 %v1721_v42, %v5098_v60  ;;  %2207 = vmatpush.msrb.mxu0 %v2140_v51  ;;  %v2171_v31 = vld [vmem:[#allocation4 + $0x338] sm:$0xff]  ;;  %2338 = vmatpush.msrb.mxu2 %v2139_v38  ;;  %v2136_v42 = vld [vmem:[#allocation4 + $0x220] sm:$0xff]  ;;  %v2096_v51 = vld [vmem:[#allocation4 + $0xe8] sm:$0xff] }
 0x2b4   :  { %2403 = vmatpush.msrb.mxu3 %v2171_v31  ;;  %v2093_v38 = vld [vmem:[#allocation4 + $0xd0] sm:$0xff] }
 0x2b5   :  { %1725 = vrot.lane.b32.xlu1 %v1723_v26, %s3583_s15  ;;  %2208 = vmatpush.msrb.mxu0 %v2138_v37  ;;  %v2125_v31 = vld [vmem:[#allocation4 + $0x1d0] sm:$0xff] }
 0x2b6   :  { %2339 = vmatpush.msrb.mxu2 %v2137_v58  ;;  %2404 = vmatpush.msrb.mxu3 %v2169_v20  ;;  %v1797_v58 = vld [vmem:[%s6649_s4] sm:$0x3] }
 0x2b7   :  { %2209 = vmatpush.msrb.mxu0 %v2136_v42  ;;  %v2126_v42 = vld [vmem:[#allocation4 + $0x1d8] sm:$0xff] }
 0x2b9   :  { %2210 = vmatpush.msrb.mxu0 %v2134_v47 }
 0x2bd   :  { %1727 = vrot.lane.b32.xlu1 %v1724_v35, %s3583_s15 }
 0x327   :  { %v1726_v53 = vpop.permute.xlu1 %1725 }
 0x32f   :  { %v1728_v0 = vpop.permute.xlu1 %1727 }
 0x330   :  { %v1730_v43 = vsel %vm1729_vm7, %v1726_v53, %v1728_v0  ;;  %v1731_v60 = vsel %vm1729_vm7, %v1728_v0, %v1726_v53  ;;  %v2166_v53 = vld [vmem:[#allocation4 + $0x310] sm:$0xff]  ;;  %v2135_v0 = vld [vmem:[#allocation4 + $0x218] sm:$0xff] }
 0x331   :  { %v1732_v19 = vadd.f32 %v1731_v60, %v1723_v26  ;;  %v1733_v45 = vadd.f32 %v1730_v43, %v1724_v35  ;;  %v2168_v35 = vld [vmem:[#allocation4 + $0x320] sm:$0xff]  ;;  %v2167_v43 = vld [vmem:[#allocation4 + $0x318] sm:$0xff]  ;;  %2340 = vmatpush.msrb.mxu2 %v2135_v0 }
 0x332   :  { %2274 = vmatpush.msrb.mxu1 %v2168_v35  ;;  %2405 = vmatpush.msrb.mxu3 %v2167_v43 }
 0x333   :  { %v1734_v30 = vadd.f32 %v1733_v45, %v1732_v19  ;;  %v2132_v19 = vld [vmem:[#allocation4 + $0x200] sm:$0xff] }
 0x334   :  { %2275 = vmatpush.msrb.mxu1 %v2166_v53  ;;  %v2164_v45 = vld [vmem:[#allocation4 + $0x300] sm:$0xff]  ;;  %2211 = vmatpush.msrb.mxu0 %v2132_v19 }
 0x335   :  { %v5119_v24 = vmul.f32 0.0009765625, %v1734_v30  ;;  %v2133_v30 = vld [vmem:[#allocation4 + $0x208] sm:$0xff] }
 0x336   :  { %2276 = vmatpush.msrb.mxu1 %v2164_v45  ;;  %2341 = vmatpush.msrb.mxu2 %v2133_v30  ;;  %v2091_v45 = vld [vmem:[#allocation4 + $0xc0] sm:$0xff] }
 0x337   :  { %v1736_v54 = vmul.f32 %v5119_v24, %v5119_v24  ;;  %2456 = vmatpush.msra.mxu0 %v2097_v57  ;;  %v2123_v30 = vld [vmem:[#allocation4 + $0x1c0] sm:$0xff] }
 0x338   :  { %2521 = vmatpush.msra.mxu1 %v2129_v2  ;;  %2586 = vmatpush.msra.mxu2 %v2098_v28  ;;  %v6981_v28 = vld [vmem:[#allocation20_spill] sm:$0xff] }
 0x339   :  { %v1738_v25 = vrot.slane %v1736_v54, 7  ;;  %v2165_v54 = vld [vmem:[#allocation4 + $0x308] sm:$0xff]  ;;  %2457 = vmatpush.msra.mxu0 %v2095_v3 }
 0x33a   :  { %2406 = vmatpush.msrb.mxu3 %v2165_v54  ;;  %2522 = vmatpush.msra.mxu1 %v2127_v61  ;;  %v2092_v54 = vld [vmem:[#allocation4 + $0xc8] sm:$0xff] }
 0x33b   :  { %v1740_v10 = vsub.f32 %v5119_v24, %v1738_v25  ;;  %2587 = vmatpush.msra.mxu2 %v2096_v51  ;;  %2458 = vmatpush.msra.mxu0 %v2093_v38  ;;  %v6982_v3 = vld [vmem:[#allocation21_spill] sm:$0xff] }
 0x33c   :  { %2651 = vmatpush.msra.mxu3 %v2130_v40  ;;  %2523 = vmatpush.msra.mxu1 %v2125_v31  ;;  %v2090_v31 = vld [vmem:[#allocation4 + $0xb8] sm:$0xff] }
 0x33d   :  { %v5124_v11 = vadd.f32 1e-05, %v1740_v10  ;;  %2459 = vmatpush.msra.mxu0 %v2091_v45 }
 0x33e   :  { %2652 = vmatpush.msra.mxu3 %v2128_v46  ;;  %2524 = vmatpush.msra.mxu1 %v2123_v30 }
 0x33f   :  { %3457 = vrsqrt.f32 %v5124_v11  ;;  %vm1749_vm9 = vweird.f32 %v5124_v11 }
 0x340   :  { %2653 = vmatpush.msra.mxu3 %v2126_v42 }
 0x345   :  { %v3458_v26 = vpop.eup %3457 }
 0x346   :  { %v1744_v12 = vmul.f32 %v3458_v26, %v5124_v11  ;;  %vm1750_vm8 = vweird.f32 %v3458_v26 }
 0x347   :  { %vm1751_vm10 = vmor %vm1749_vm9, %vm1750_vm8 }
 0x348   :  { %v1745_v60 = vmul.f32 %v3458_v26, %v1744_v12 }
 0x34a   :  { %v1746_v25 = vmul.f32 0.5, %v1745_v60 }
 0x34c   :  { %v1747_v10 = vsub.f32 1.5, %v1746_v25 }
 0x34e   :  { %v1748_v6 = vmul.f32 %v3458_v26, %v1747_v10 }
 0x350   :  { %v1752_v39 = vsel %vm1751_vm10, %v3458_v26, %v1748_v6  ;;  %v2094_v26 = vld [vmem:[#allocation4 + $0xd8] sm:$0xff] }
 0x351   :  { %1754 = vst [vmem:[#allocation1] sm:$0xff] %v1752_v39  ;;  %2588 = vmatpush.msra.mxu2 %v2094_v26 }
 0x352   :  { %1755 = vst [vmem:[#allocation1 + $0x9] sm:$0xff] %v1752_v39 }
 0x353   :  { %2589 = vmatpush.msra.mxu2 %v2092_v54 }
 0x355   :  { %2590 = vmatpush.msra.mxu2 %v2090_v31 }
 0x359   :  { %v1757_v50 = vld [vmem:[#allocation1 + $0x1] ss:$9 sm:$0xff] }
 0x35a   :  { %v1759_v11 = vmul.f32 %v1757_v50, %v1741_v13 }
 0x35c   :  { %v5132_v37 = vperm.slane %v1759_v11, 0  ;;  %v5134_v34 = vperm.slane %v1759_v11, 1 }
 0x35e   :  { %v1799_v35 = vmul.f32 %v5134_v34, %v5119_v24  ;;  %v1798_v12 = vmul.f32 %v5132_v37, %v5119_v24  ;;  %v1765_v0 = vmul.f32 %v5132_v37, %v4849_v4  ;;  %v1766_v43 = vmul.f32 %v5134_v34, %v4868_v44  ;;  %v6979_v4 = vld [vmem:[#allocation17_spill] sm:$0xff] }
 0x35f   :  { %v1767_v60 = vmul.f32 %v5132_v37, %v4837_v15  ;;  %v1768_v19 = vmul.f32 %v5134_v34, %v4855_v29  ;;  %v1769_v10 = vmul.f32 %v5132_v37, %v4857_v41  ;;  %v1770_v57 = vmul.f32 %v5134_v34, %v6979_v4  ;;  %v2124_v44 = vld [vmem:[#allocation4 + $0x1c8] sm:$0xff]  ;;  %v6980_v29 = vld [vmem:[#allocation18_spill] sm:$0xff] }
 0x360   :  { %v1802_v20 = vrot.slane %v1799_v35, 7  ;;  %v1771_v15 = vmul.f32 %v5132_v37, %v4880_v7  ;;  %v1772_v2 = vmul.f32 %v5134_v34, %v6980_v29  ;;  %2654 = vmatpush.msra.mxu3 %v2124_v44  ;;  %v1773_v40 = vmul.f32 %v5132_v37, %v6981_v28 }
 0x361   :  { %v1774_v39 = vmul.f32 %v5134_v34, %v4930_v62  ;;  %v1775_v61 = vmul.f32 %v5132_v37, %v6982_v3  ;;  %v1776_v7 = vmul.f32 %v5134_v34, %v4942_v27  ;;  %v5176_v51 = vmul.f32 %v5132_v37, %v4936_v1 }
 0x362   :  { %v1803_v47 = vsel %vm1711_vm5, %v1798_v12, %v1802_v20  ;;  %v5180_v46 = vmul.f32 %v5134_v34, %v4971_v36  ;;  %v5184_v13 = vmul.f32 %v5132_v37, %v4950_v18  ;;  %v5192_v11 = vmul.f32 %v5134_v34, %v4985_v17 }
 0x363   :  { %v1805_v53 = vsub.f32 %v1797_v58, %v1803_v47  ;;  %v1781_v1 = vmul.f32 %v5132_v37, %v4962_v59  ;;  %v1782_v27 = vmul.f32 %v5134_v34, %v4996_v9  ;;  %v1783_v36 = vmul.f32 %v5132_v37, %v4979_v23 }
 0x364   :  { %v1784_v18 = vmul.f32 %v5134_v34, %v5020_v55  ;;  %v1785_v38 = vmul.f32 %v5132_v37, %v4991_v48  ;;  %v1786_v59 = vmul.f32 %v5134_v34, %v5032_v49  ;;  %v1787_v9 = vmul.f32 %v5132_v37, %v5004_v14  ;;  %v2089_v55 = vld [vmem:[#allocation4 + $0xb0] sm:$0xff]  ;;  %v2122_v14 = vld [vmem:[#allocation4 + $0x1b8] sm:$0xff] }
 0x365   :  { %v5152_v24 = vperm.slane %v1805_v53, 0  ;;  %v5154_v25 = vperm.slane %v1805_v53, 1  ;;  %v2121_v48 = vld [vmem:[#allocation4 + $0x1b0] sm:$0xff]  ;;  %v1788_v26 = vmul.f32 %v5134_v34, %v5044_v8  ;;  %v1789_v42 = vmul.f32 %v5132_v37, %v5015_v63  ;;  %2460 = vmatpush.msra.mxu0 %v2089_v55  ;;  %2655 = vmatpush.msra.mxu3 %v2122_v14 }
 0x366   :  { %2525 = vmatpush.msra.mxu1 %v2121_v48  ;;  %v1790_v58 = vmul.f32 %v5134_v34, %v5053_v22  ;;  %v1791_v8 = vmul.f32 %v5132_v37, %v5028_v16  ;;  %v1792_v63 = vmul.f32 %v5134_v34, %v5062_v32 }
 0x367   :  { %v1811_v6 = vadd.f32 %v5152_v24, %v1765_v0  ;;  %v1812_v41 = vadd.f32 %v5154_v25, %v1766_v43  ;;  %v1813_v17 = vadd.f32 %v5152_v24, %v1767_v60  ;;  %v1814_v23 = vadd.f32 %v5154_v25, %v1768_v19 }
 0x368   :  { %v1815_v49 = vadd.f32 %v5152_v24, %v1769_v10  ;;  %v1816_v35 = vadd.f32 %v5154_v25, %v1770_v57  ;;  %v1817_v12 = vadd.f32 %v5152_v24, %v1771_v15  ;;  %v1818_v47 = vadd.f32 %v5154_v25, %v1772_v2 }
 0x369   :  { %v5186_v50 = vmax.f32 %v1811_v6, 0.0  ;;  %v5188_v62 = vmax.f32 %v1812_v41, 0.0  ;;  %v5227_v20 = vmax.f32 %v1813_v17, 0.0  ;;  %v5231_v53 = vadd.f32 %v5152_v24, %v1781_v1  ;;  %v2119_v6 = vld [vmem:[#allocation4 + $0x1a0] sm:$0xff]  ;;  %v2088_v41 = vld [vmem:[#allocation4 + $0xa8] sm:$0xff] }
 0x36a   :  { %v5234_v0 = vadd.f32 %v5154_v25, %v1782_v27  ;;  %v5236_v22 = vmax.f32 %v1814_v23, 0.0  ;;  %v5239_v43 = vadd.f32 %v5152_v24, %v1783_v36  ;;  %v5242_v16 = vadd.f32 %v5154_v25, %v1784_v18  ;;  %2526 = vmatpush.msra.mxu1 %v2119_v6  ;;  %2591 = vmatpush.msra.mxu2 %v2088_v41 }
 0x36b   :  { %6983 = vst [vmem:[#allocation27_spill] sm:$0xff] %v5186_v50  ;;  %2212 = vmatmul.f32.vlgmr.msrb.gmra.mxu0 %v5186_v50  ;;  %2277 = vmatmul.f32.vlgmr.msrb.gmra.mxu1 %v5188_v62  ;;  %v5245_v32 = vadd.f32 %v5152_v24, %v1785_v38  ;;  %v5247_v60 = vmax.f32 %v1815_v49, 0.0  ;;  %v5249_v19 = vmax.f32 %v1816_v35, 0.0  ;;  %v5252_v45 = vadd.f32 %v5154_v25, %v1786_v59 }
 0x36c   :  { %6984 = vst [vmem:[#allocation30_spill] sm:$0xff] %v5188_v62  ;;  %2342 = vmatmul.f32.vlgmr.msrb.gmra.mxu2 %v5186_v50  ;;  %2407 = vmatmul.f32.vlgmr.msrb.gmra.mxu3 %v5188_v62  ;;  %v5255_v30 = vadd.f32 %v5152_v24, %v1787_v9  ;;  %v1819_v54 = vadd.f32 %v5152_v24, %v1773_v40  ;;  %v5265_v44 = vmax.f32 %v1817_v12, 0.0  ;;  %v5276_v28 = vmax.f32 %v1818_v47, 0.0  ;;  %v2087_v40 = vld [vmem:[#allocation4 + $0xa0] sm:$0xff]  ;;  %v2086_v12 = vld [vmem:[#allocation4 + $0x98] sm:$0xff] }
 0x36d   :  { %v1820_v10 = vadd.f32 %v5154_v25, %v1774_v39  ;;  %v1821_v4 = vadd.f32 %v5152_v24, %v1775_v61  ;;  %v5261_v57 = vadd.f32 %v5154_v25, %v1788_v26  ;;  %v1822_v15 = vadd.f32 %v5154_v25, %v1776_v7  ;;  %2461 = vmatpush.msra.mxu0 %v2087_v40  ;;  %v2120_v7 = vld [vmem:[#allocation4 + $0x1a8] sm:$0xff]  ;;  %v2118_v47 = vld [vmem:[#allocation4 + $0x198] sm:$0xff] }
 0x36e   :  { %v5269_v29 = vadd.f32 %v5152_v24, %v1789_v42  ;;  %v5272_v2 = vadd.f32 %v5154_v25, %v1790_v58  ;;  %v5279_v39 = vadd.f32 %v5152_v24, %v1791_v8  ;;  %v5282_v3 = vadd.f32 %v5154_v25, %v1792_v63  ;;  %2656 = vmatpush.msra.mxu3 %v2120_v7  ;;  %v2117_v58 = vld [vmem:[#allocation4 + $0x190] sm:$0xff] }
 0x36f   :  { %v1793_v61 = vmul.f32 %v5132_v37, %v5038_v21  ;;  %v1823_v1 = vadd.f32 %v5152_v24, %v5176_v51  ;;  %v1794_v27 = vmul.f32 %v5134_v34, %v5074_v33  ;;  %v1795_v36 = vmul.f32 %v5132_v37, %v5068_v52  ;;  %2527 = vmatpush.msra.mxu1 %v2117_v58  ;;  %v2115_v58 = vld [vmem:[#allocation4 + $0x180] sm:$0xff] }
 0x370   :  { %v6746_v18 = vrot.slane %v5186_v50, 7  ;;  %v5293_v38 = vmax.f32 %v1819_v54, 0.0  ;;  %v5295_v17 = vmax.f32 %v1820_v10, 0.0  ;;  %v1796_v51 = vmul.f32 %v5134_v34, %v5087_v56  ;;  %2592 = vmatpush.msra.mxu2 %v2086_v12  ;;  %2657 = vmatpush.msra.mxu3 %v2118_v47  ;;  %v2084_v12 = vld [vmem:[#allocation4 + $0x88] sm:$0xff] }
 0x371   :  { %v5298_v21 = vadd.f32 %v5152_v24, %v1793_v61  ;;  %v5303_v59 = vadd.f32 %v5154_v25, %v1794_v27  ;;  %v5306_v33 = vadd.f32 %v5152_v24, %v1795_v36  ;;  %v6745_v52 = vrot.slane %v5188_v62, 7  ;;  %2528 = vmatpush.msra.mxu1 %v2115_v58 }
 0x372   :  { %v1877_v37 = vrot.slane %v5227_v20, 7  ;;  %v1824_v9 = vadd.f32 %v5154_v25, %v5180_v46  ;;  %v5313_v23 = vadd.f32 %v5154_v25, %v1796_v51  ;;  %v1878_v55 = vrot.slane %v5236_v22, 7  ;;  %2593 = vmatpush.msra.mxu2 %v2084_v12 }
 0x373   :  { %2215 = vmatmul.f32.gmra.mxu0 %v5227_v20  ;;  %2280 = vmatmul.f32.gmra.mxu1 %v5236_v22  ;;  %v1879_v56 = vrot.slane %v5247_v60, 7  ;;  %v5317_v34 = vmax.f32 %v1821_v4, 0.0  ;;  %v1825_v48 = vadd.f32 %v5152_v24, %v5184_v13  ;;  %v1880_v46 = vrot.slane %v5249_v19, 7 }
 0x374   :  { %2345 = vmatmul.f32.gmra.mxu2 %v5227_v20  ;;  %2410 = vmatmul.f32.gmra.mxu3 %v5236_v22  ;;  %v5325_v26 = vsel %vm427_vm1, %v6746_v18, %v1877_v37  ;;  %v5328_v42 = vmax.f32 %v1822_v15, 0.0  ;;  %v1826_v49 = vadd.f32 %v5154_v25, %v5192_v11  ;;  %v5336_v35 = vsel %vm427_vm1, %v6745_v52, %v1878_v55  ;;  %v2085_v11 = vld [vmem:[#allocation4 + $0x90] sm:$0xff] }
 0x375   :  { %v5340_v24 = vsel %vm427_vm1, %v1877_v37, %v1879_v56  ;;  %v5344_v13 = vmax.f32 %v1823_v1, 0.0  ;;  %v5348_v14 = vsel %vm427_vm1, %v1878_v55, %v1880_v46  ;;  %v5352_v25 = vmax.f32 %v1824_v9, 0.0  ;;  %2462 = vmatpush.msra.mxu0 %v2085_v11  ;;  %v2083_v11 = vld [vmem:[#allocation4 + $0x80] sm:$0xff] }
 0x376   :  { %v1881_v8 = vrot.slane %v5265_v44, 7  ;;  %v1882_v63 = vrot.slane %v5276_v28, 7  ;;  %v5356_v54 = vmax.f32 %v1825_v48, 0.0  ;;  %v1883_v10 = vrot.slane %v5293_v38, 7 }
 0x377   :  { %v1884_v4 = vrot.slane %v5295_v17, 7  ;;  %v1885_v15 = vrot.slane %v5317_v34, 7  ;;  %v5361_v40 = vmax.f32 %v1826_v49, 0.0  ;;  %v5364_v6 = vmax.f32 %v5231_v53, 0.0  ;;  %2463 = vmatpush.msra.mxu0 %v2083_v11 }
 0x378   :  { %v5368_v41 = vsel %vm427_vm1, %v1879_v56, %v1881_v8  ;;  %v1886_v61 = vrot.slane %v5328_v42, 7  ;;  %v5372_v7 = vmax.f32 %v5234_v0, 0.0  ;;  %v5375_v1 = vmax.f32 %v5239_v43, 0.0 }
 0x379   :  { %v5379_v27 = vsel %vm427_vm1, %v1880_v46, %v1882_v63  ;;  %v5383_v53 = vsel %vm427_vm1, %v1881_v8, %v1883_v10  ;;  %v5386_v36 = vmax.f32 %v5242_v16, 0.0  ;;  %v5390_v51 = vsel %vm427_vm1, %v1882_v63, %v1884_v4 }
 0x37a   :  { %v5394_v0 = vsel %vm427_vm1, %v1883_v10, %v1885_v15  ;;  %v5397_v43 = vmax.f32 %v5245_v32, 0.0  ;;  %v5401_v37 = vsel %vm427_vm1, %v1884_v4, %v1886_v61  ;;  %v1887_v9 = vrot.slane %v5344_v13, 7  ;;  %v2116_v10 = vld [vmem:[#allocation4 + $0x188] sm:$0xff] }
 0x37b   :  { %2218 = vmatmul.f32.gmra.mxu0 %v5247_v60  ;;  %2283 = vmatmul.f32.gmra.mxu1 %v5249_v19  ;;  %v5405_v16 = vmax.f32 %v5252_v45, 0.0  ;;  %v1888_v55 = vrot.slane %v5352_v25, 7  ;;  %v1889_v56 = vrot.slane %v5356_v54, 7  ;;  %v1890_v48 = vrot.slane %v5361_v40, 7 }
 0x37c   :  { %2348 = vmatmul.f32.gmra.mxu2 %v5247_v60  ;;  %2413 = vmatmul.f32.gmra.mxu3 %v5249_v19  ;;  %v5414_v32 = vsel %vm427_vm1, %v1885_v15, %v1887_v9  ;;  %v1891_v46 = vrot.slane %v5364_v6, 7  ;;  %v1892_v49 = vrot.slane %v5372_v7, 7  ;;  %v1893_v45 = vrot.slane %v5375_v1, 7 }
 0x37d   :  { %v5423_v8 = vsel %vm427_vm1, %v1886_v61, %v1888_v55  ;;  %v5427_v63 = vsel %vm427_vm1, %v1887_v9, %v1889_v56  ;;  %v1894_v47 = vrot.slane %v5386_v36, 7  ;;  %v5431_v4 = vmax.f32 %v5255_v30, 0.0  ;;  %2658 = vmatpush.msra.mxu3 %v2116_v10  ;;  %v2082_v10 = vld [vmem:[#allocation4 + $0x78] sm:$0xff] }
 0x37e   :  { %v5434_v15 = vmax.f32 %v5261_v57, 0.0  ;;  %v5438_v52 = vsel %vm427_vm1, %v1888_v55, %v1890_v48  ;;  %v1895_v61 = vrot.slane %v5397_v43, 7  ;;  %v5443_v9 = vsel %vm427_vm1, %v1889_v56, %v1891_v46  ;;  %2594 = vmatpush.msra.mxu2 %v2082_v10 }
 0x37f   :  { %v5447_v11 = vsel %vm427_vm1, %v1890_v48, %v1892_v49  ;;  %v1896_v30 = vrot.slane %v5405_v16, 7  ;;  %v5452_v57 = vsel %vm427_vm1, %v1891_v46, %v1893_v45  ;;  %v5456_v55 = vsel %vm427_vm1, %v1892_v49, %v1894_v47 }
 0x380   :  { %v5460_v58 = vsel %vm427_vm1, %v1893_v45, %v1895_v61  ;;  %v6749_v48 = vrot.slane %v5431_v4, 7  ;;  %v6750_v12 = vrot.slane %v5434_v15, 7  ;;  %v2081_v45 = vld [vmem:[#allocation4 + $0x70] sm:$0xff]  ;;  %v1973_v18 = vrot.slane %v5227_v20, 1 }
 0x381   :  { %v5464_v56 = vsel %vm427_vm1, %v1894_v47, %v1896_v30  ;;  %v2113_v47 = vld [vmem:[#allocation4 + $0x170] sm:$0xff]  ;;  %v1974_v5 = vrot.slane %v5236_v22, 1  ;;  %2464 = vmatpush.msra.mxu0 %v2081_v45  ;;  %v1976_v45 = vrot.slane %v5249_v19, 1  ;;  %v1979_v10 = vrot.slane %v5293_v38, 1 }
 0x382   :  { %v5474_v46 = vsel %vm427_vm1, %v1895_v61, %v6749_v48  ;;  %v5480_v49 = vsel %vm427_vm1, %v1896_v30, %v6750_v12  ;;  %2529 = vmatpush.msra.mxu1 %v2113_v47  ;;  %v2114_v61 = vld [vmem:[#allocation4 + $0x178] sm:$0xff]  ;;  %v6752_v48 = vrot.slane %v5186_v50, 1  ;;  %v1975_v30 = vrot.slane %v5247_v60, 1 }
 0x383   :  { %2221 = vmatmul.f32.gmra.mxu0 %v5265_v44  ;;  %2286 = vmatmul.f32.gmra.mxu1 %v5276_v28  ;;  %6986 = vst [vmem:[#allocation37_spill] sm:$0xff] %v5474_v46  ;;  %v6751_v46 = vrot.slane %v5188_v62, 1  ;;  %v1977_v60 = vrot.slane %v5265_v44, 1  ;;  %v1978_v47 = vrot.slane %v5276_v28, 1  ;;  %v5516_v19 = vsel %vm524_vm3, %v1974_v5, %v1976_v45 }
 0x384   :  { %2351 = vmatmul.f32.gmra.mxu2 %v5265_v44  ;;  %2416 = vmatmul.f32.gmra.mxu3 %v5276_v28  ;;  %v5493_v12 = vsel %vm524_vm3, %v6752_v48, %v1973_v18  ;;  %v5503_v22 = vsel %vm524_vm3, %v1973_v18, %v1975_v30  ;;  %v2079_v18 = vld [vmem:[#allocation4 + $0x60] sm:$0xff]  ;;  %v2080_v48 = vld [vmem:[#allocation4 + $0x68] sm:$0xff]  ;;  %v1982_v44 = vrot.slane %v5328_v42, 1  ;;  %v1983_v28 = vrot.slane %v5344_v13, 1 }
 0x385   :  { %2659 = vmatpush.msra.mxu3 %v2114_v61  ;;  %v5499_v20 = vsel %vm524_vm3, %v6751_v46, %v1974_v5  ;;  %6988 = vst [vmem:[#allocation41_spill] sm:$0xff] %v5503_v22  ;;  %v1980_v61 = vrot.slane %v5295_v17, 1  ;;  %v2111_v46 = vld [vmem:[#allocation4 + $0x160] sm:$0xff]  ;;  %v1981_v22 = vrot.slane %v5317_v34, 1  ;;  %2465 = vmatpush.msra.mxu0 %v2079_v18  ;;  %v1984_v5 = vrot.slane %v5352_v25, 1 }
 0x386   :  { %6987 = vst [vmem:[#allocation38_spill] sm:$0xff] %v5499_v20  ;;  %2530 = vmatpush.msra.mxu1 %v2111_v46  ;;  %v5527_v20 = vsel %vm524_vm3, %v1976_v45, %v1978_v47  ;;  %2595 = vmatpush.msra.mxu2 %v2080_v48  ;;  %v1986_v18 = vrot.slane %v5361_v40, 1 }
 0x387   :  { %v5537_v46 = vsel %vm524_vm3, %v1978_v47, %v1980_v61  ;;  %v5545_v45 = vsel %vm524_vm3, %v1980_v61, %v1982_v44  ;;  %v5549_v48 = vsel %vm524_vm3, %v1981_v22, %v1983_v28  ;;  %v1989_v61 = vrot.slane %v5375_v1, 1 }
 0x388   :  { %6990 = vst [vmem:[#allocation45_spill] sm:$0xff] %v5545_v45 }
 0x389   :  { %6991 = vst [vmem:[#allocation23_spill] sm:$0xff] %v5549_v48  ;;  %v2078_v48 = vld [vmem:[#allocation4 + $0x58] sm:$0xff] }
 0x38a   :  { %2596 = vmatpush.msra.mxu2 %v2078_v48 }
 0x38b   :  { %2224 = vmatmul.f32.gmra.mxu0 %v5293_v38  ;;  %2289 = vmatmul.f32.gmra.mxu1 %v5295_v17 }
 0x38c   :  { %2354 = vmatmul.f32.gmra.mxu2 %v5293_v38  ;;  %2419 = vmatmul.f32.gmra.mxu3 %v5295_v17  ;;  %v2112_v38 = vld [vmem:[#allocation4 + $0x168] sm:$0xff]  ;;  %v5523_v17 = vsel %vm524_vm3, %v1975_v30, %v1977_v60  ;;  %v5541_v30 = vsel %vm524_vm3, %v1979_v10, %v1981_v22  ;;  %v5566_v22 = vsel %vm524_vm3, %v1984_v5, %v1986_v18 }
 0x38d   :  { %2660 = vmatpush.msra.mxu3 %v2112_v38  ;;  %6989 = vst [vmem:[#allocation42_spill] sm:$0xff] %v5541_v30  ;;  %v1988_v38 = vrot.slane %v5372_v7, 1  ;;  %v2110_v30 = vld [vmem:[#allocation4 + $0x158] sm:$0xff] }
 0x38e   :  { %6994 = vst [vmem:[#allocation61_spill] sm:$0xff] %v5566_v22  ;;  %v1992_v22 = vrot.slane %v5405_v16, 1 }
 0x38f   :  { %2661 = vmatpush.msra.mxu3 %v2110_v30 }
 0x393   :  { %2227 = vmatmul.f32.gmra.mxu0 %v5317_v34  ;;  %2292 = vmatmul.f32.gmra.mxu1 %v5328_v42 }
 0x394   :  { %2357 = vmatmul.f32.gmra.mxu2 %v5317_v34  ;;  %2422 = vmatmul.f32.gmra.mxu3 %v5328_v42  ;;  %v5532_v34 = vsel %vm524_vm3, %v1977_v60, %v1979_v10  ;;  %v1985_v42 = vrot.slane %v5356_v54, 1  ;;  %v5553_v60 = vsel %vm524_vm3, %v1982_v44, %v1984_v5  ;;  %v1987_v10 = vrot.slane %v5364_v6, 1 }
 0x395   :  { %6992 = vst [vmem:[#allocation26_spill] sm:$0xff] %v5553_v60  ;;  %v1990_v44 = vrot.slane %v5386_v36, 1  ;;  %v2109_v60 = vld [vmem:[#allocation4 + $0x150] sm:$0xff]  ;;  %v5579_v5 = vsel %vm524_vm3, %v1986_v18, %v1988_v38 }
 0x396   :  { %v5557_v47 = vsel %vm524_vm3, %v1983_v28, %v1985_v42  ;;  %v1991_v28 = vrot.slane %v5397_v43, 1  ;;  %v5575_v45 = vsel %vm524_vm3, %v1985_v42, %v1987_v10  ;;  %2531 = vmatpush.msra.mxu1 %v2109_v60 }
 0x397   :  { %6993 = vst [vmem:[#allocation29_spill] sm:$0xff] %v5557_v47  ;;  %v2077_v47 = vld [vmem:[#allocation4 + $0x50] sm:$0xff]  ;;  %v5589_v42 = vsel %vm524_vm3, %v1988_v38, %v1990_v44  ;;  %v5598_v60 = vsel %vm524_vm3, %v1990_v44, %v1992_v22  ;;  %v2107_v38 = vld [vmem:[#allocation4 + $0x140] sm:$0xff]  ;;  %v2108_v44 = vld [vmem:[#allocation4 + $0x148] sm:$0xff] }
 0x398   :  { %2466 = vmatpush.msra.mxu0 %v2077_v47  ;;  %v5593_v18 = vsel %vm524_vm3, %v1989_v61, %v1991_v28  ;;  %v6753_v47 = vrot.slane %v5434_v15, 1  ;;  %2532 = vmatpush.msra.mxu1 %v2107_v38  ;;  %v2072_v38 = vld [vmem:[#allocation4 + $0x28] sm:$0xff] }
 0x399   :  { %2662 = vmatpush.msra.mxu3 %v2108_v44  ;;  %v2070_v44 = vld [vmem:[#allocation4 + $0x18] sm:$0xff] }
 0x39a   :  { %v5610_v30 = vsel %vm524_vm3, %v1992_v22, %v6753_v47  ;;  %v2073_v22 = vld [vmem:[#allocation4 + $0x30] sm:$0xff]  ;;  %v2740_v47 = vld [vmem:[#allocation4 + $0x4b8] sm:$0xff] }
 0x39b   :  { %2230 = vmatmul.f32.gmra.mxu0 %v5344_v13  ;;  %2295 = vmatmul.f32.gmra.mxu1 %v5352_v25 }
 0x39c   :  { %2360 = vmatmul.f32.gmra.mxu2 %v5344_v13  ;;  %2425 = vmatmul.f32.gmra.mxu3 %v5352_v25  ;;  %v5584_v13 = vsel %vm524_vm3, %v1987_v10, %v1989_v61  ;;  %v6754_v25 = vrot.slane %v5431_v4, 1  ;;  %v2075_v10 = vld [vmem:[#allocation4 + $0x40] sm:$0xff]  ;;  %v2076_v61 = vld [vmem:[#allocation4 + $0x48] sm:$0xff] }
 0x39d   :  { %2467 = vmatpush.msra.mxu0 %v2075_v10  ;;  %2597 = vmatpush.msra.mxu2 %v2076_v61  ;;  %v2071_v10 = vld [vmem:[#allocation4 + $0x20] sm:$0xff]  ;;  %v2069_v61 = vld [vmem:[#allocation4 + $0x10] sm:$0xff] }
 0x39e   :  { %v5604_v48 = vsel %vm524_vm3, %v1991_v28, %v6754_v25  ;;  %v2074_v28 = vld [vmem:[#allocation4 + $0x38] sm:$0xff] }
 0x39f   :  { %2468 = vmatpush.msra.mxu0 %v2073_v22  ;;  %2598 = vmatpush.msra.mxu2 %v2074_v28  ;;  %v2067_v22 = vld [vmem:[#allocation4] sm:$0xff]  ;;  %v5633_v28 = vmax.f32 %v5269_v29, 0.0  ;;  %v5643_v29 = vmax.f32 %v5279_v39, 0.0  ;;  %v5653_v39 = vmax.f32 %v5298_v21, 0.0  ;;  %v5663_v21 = vmax.f32 %v5306_v33, 0.0 }
 0x3a0   :  { %v2773_v33 = vld [vmem:[#allocation4 + $0x5c0] sm:$0xff] }
 0x3a1   :  { %2469 = vmatpush.msra.mxu0 %v2071_v10  ;;  %2599 = vmatpush.msra.mxu2 %v2072_v38  ;;  %v2747_v10 = vld [vmem:[#allocation4 + $0x4f0] sm:$0xff]  ;;  %v2748_v38 = vld [vmem:[#allocation4 + $0x4f8] sm:$0xff] }
 0x3a3   :  { %2233 = vmatmul.f32.gmra.mxu0 %v5356_v54  ;;  %2298 = vmatmul.f32.gmra.mxu1 %v5361_v40 }
 0x3a4   :  { %2363 = vmatmul.f32.gmra.mxu2 %v5356_v54  ;;  %2428 = vmatmul.f32.gmra.mxu3 %v5361_v40  ;;  %v2105_v54 = vld [vmem:[#allocation4 + $0x130] sm:$0xff]  ;;  %v2106_v40 = vld [vmem:[#allocation4 + $0x138] sm:$0xff] }
 0x3a5   :  { %2533 = vmatpush.msra.mxu1 %v2105_v54  ;;  %2663 = vmatpush.msra.mxu3 %v2106_v40  ;;  %v2068_v54 = vld [vmem:[#allocation4 + $0x8] sm:$0xff]  ;;  %v5636_v40 = vmax.f32 %v5272_v2, 0.0  ;;  %v5646_v2 = vmax.f32 %v5282_v3, 0.0  ;;  %v5656_v3 = vmax.f32 %v5303_v59, 0.0  ;;  %v5666_v59 = vmax.f32 %v5313_v23, 0.0 }
 0x3a6   :  { %2470 = vmatpush.msra.mxu0 %v2069_v61  ;;  %2600 = vmatpush.msra.mxu2 %v2070_v44  ;;  %v2745_v61 = vld [vmem:[#allocation4 + $0x4e0] sm:$0xff]  ;;  %v2746_v44 = vld [vmem:[#allocation4 + $0x4e8] sm:$0xff] }
 0x3a7   :  { %v2774_v23 = vld [vmem:[#allocation4 + $0x5c8] sm:$0xff] }
 0x3a8   :  { %2471 = vmatpush.msra.mxu0 %v2067_v22  ;;  %2601 = vmatpush.msra.mxu2 %v2068_v54  ;;  %v2743_v22 = vld [vmem:[#allocation4 + $0x4d0] sm:$0xff]  ;;  %v2744_v54 = vld [vmem:[#allocation4 + $0x4d8] sm:$0xff] }
 0x3aa   :  { %2781 = vmatpush.msrb.mxu0 %v2747_v10  ;;  %2911 = vmatpush.msrb.mxu2 %v2748_v38  ;;  %v6756_v10 = vrot.slane %v5663_v21, 7  ;;  %v2741_v38 = vld [vmem:[#allocation4 + $0x4c0] sm:$0xff] }
 0x3ab   :  { %2236 = vmatmul.f32.gmra.mxu0 %v5364_v6  ;;  %2301 = vmatmul.f32.gmra.mxu1 %v5372_v7 }
 0x3ac   :  { %2366 = vmatmul.f32.gmra.mxu2 %v5364_v6  ;;  %2431 = vmatmul.f32.gmra.mxu3 %v5372_v7  ;;  %v2103_v6 = vld [vmem:[#allocation4 + $0x120] sm:$0xff]  ;;  %v2104_v7 = vld [vmem:[#allocation4 + $0x128] sm:$0xff] }
 0x3ad   :  { %2534 = vmatpush.msra.mxu1 %v2103_v6  ;;  %2664 = vmatpush.msra.mxu3 %v2104_v7  ;;  %v2779_v6 = vld [vmem:[#allocation4 + $0x5f0] sm:$0xff]  ;;  %v2780_v7 = vld [vmem:[#allocation4 + $0x5f8] sm:$0xff] }
 0x3ae   :  { %2782 = vmatpush.msrb.mxu0 %v2745_v61  ;;  %2912 = vmatpush.msrb.mxu2 %v2746_v44  ;;  %v6995_v61 = vrot.slane %v5186_v50, 7  ;;  %v6996_v44 = vrot.slane %v5188_v62, 7 }
 0x3b0   :  { %2783 = vmatpush.msrb.mxu0 %v2743_v22  ;;  %2913 = vmatpush.msrb.mxu2 %v2744_v54  ;;  %v6999_v54 = vld [vmem:[#allocation9_spill] sm:$0xff] }
 0x3b2   :  { %2784 = vmatpush.msrb.mxu0 %v2741_v38 }
 0x3b3   :  { %2239 = vmatmul.f32.gmra.mxu0 %v5375_v1  ;;  %2304 = vmatmul.f32.gmra.mxu1 %v5386_v36 }
 0x3b4   :  { %2369 = vmatmul.f32.gmra.mxu2 %v5375_v1  ;;  %2434 = vmatmul.f32.gmra.mxu3 %v5386_v36  ;;  %v2101_v1 = vld [vmem:[#allocation4 + $0x110] sm:$0xff]  ;;  %v2102_v36 = vld [vmem:[#allocation4 + $0x118] sm:$0xff] }
 0x3b5   :  { %2535 = vmatpush.msra.mxu1 %v2101_v1  ;;  %2665 = vmatpush.msra.mxu3 %v2102_v36  ;;  %v2777_v1 = vld [vmem:[#allocation4 + $0x5e0] sm:$0xff]  ;;  %v2778_v36 = vld [vmem:[#allocation4 + $0x5e8] sm:$0xff] }
 0x3bb   :  { %2242 = vmatmul.f32.gmra.mxu0 %v5397_v43  ;;  %2307 = vmatmul.f32.gmra.mxu1 %v5405_v16 }
 0x3bc   :  { %2372 = vmatmul.f32.gmra.mxu2 %v5397_v43  ;;  %2437 = vmatmul.f32.gmra.mxu3 %v5405_v16  ;;  %v2099_v43 = vld [vmem:[#allocation4 + $0x100] sm:$0xff]  ;;  %v2100_v16 = vld [vmem:[#allocation4 + $0x108] sm:$0xff] }
 0x3bd   :  { %2536 = vmatpush.msra.mxu1 %v2099_v43  ;;  %2666 = vmatpush.msra.mxu3 %v2100_v16  ;;  %v2775_v43 = vld [vmem:[#allocation4 + $0x5d0] sm:$0xff]  ;;  %v2776_v16 = vld [vmem:[#allocation4 + $0x5d8] sm:$0xff] }
 0x3bf   :  { %2846 = vmatpush.msrb.mxu1 %v2779_v6  ;;  %2976 = vmatpush.msrb.mxu3 %v2780_v7  ;;  %v6755_v6 = vrot.slane %v5666_v59, 7  ;;  %v2742_v7 = vld [vmem:[#allocation4 + $0x4c8] sm:$0xff] }
 0x3c0   :  { %2914 = vmatpush.msrb.mxu2 %v2742_v7 }
 0x3c1   :  { %2847 = vmatpush.msrb.mxu1 %v2777_v1  ;;  %2977 = vmatpush.msrb.mxu3 %v2778_v36  ;;  %v1937_v1 = vsel %vm427_vm1, %v6756_v10, %v6995_v61  ;;  %v1938_v36 = vsel %vm427_vm1, %v6755_v6, %v6996_v44  ;;  %v2771_v61 = vld [vmem:[#allocation4 + $0x5b0] sm:$0xff]  ;;  %v2772_v44 = vld [vmem:[#allocation4 + $0x5b8] sm:$0xff] }
 0x3c2   :  { %v1940_v38 = vmul.f32 %v6999_v54, %v1938_v36  ;;  %2915 = vmatpush.msrb.mxu2 %v2740_v47  ;;  %v7002_v36 = vld [vmem:[#allocation10_spill] sm:$0xff]  ;;  %v2737_v47 = vld [vmem:[#allocation4 + $0x4a0] sm:$0xff] }
 0x3c3   :  { %2245 = vmatmul.f32.gmra.mxu0 %v5431_v4  ;;  %2310 = vmatmul.f32.gmra.mxu1 %v5434_v15 }
 0x3c4   :  { %2375 = vmatmul.f32.gmra.mxu2 %v5431_v4  ;;  %2440 = vmatmul.f32.gmra.mxu3 %v5434_v15 }
 0x3c5   :  { %2848 = vmatpush.msrb.mxu1 %v2775_v43  ;;  %2978 = vmatpush.msrb.mxu3 %v2776_v16  ;;  %v1939_v16 = vmul.f32 %v6999_v54, %v1937_v1  ;;  %v1941_v54 = vmul.f32 %v7002_v36, %v5325_v26 }
 0x3c7   :  { %2849 = vmatpush.msrb.mxu1 %v2773_v33  ;;  %2979 = vmatpush.msrb.mxu3 %v2774_v23  ;;  %v2739_v33 = vld [vmem:[#allocation4 + $0x4b0] sm:$0xff] }
 0x3c8   :  { %2785 = vmatpush.msrb.mxu0 %v2739_v33  ;;  %v2738_v33 = vld [vmem:[#allocation4 + $0x4a8] sm:$0xff] }
 0x3c9   :  { %2850 = vmatpush.msrb.mxu1 %v2771_v61  ;;  %2980 = vmatpush.msrb.mxu3 %v2772_v44  ;;  %v2770_v61 = vld [vmem:[#allocation4 + $0x5a8] sm:$0xff] }
 0x3ca   :  { %2786 = vmatpush.msrb.mxu0 %v2737_v47  ;;  %2916 = vmatpush.msrb.mxu2 %v2738_v33  ;;  %v2767_v47 = vld [vmem:[#allocation4 + $0x590] sm:$0xff]  ;;  %v2768_v33 = vld [vmem:[#allocation4 + $0x598] sm:$0xff] }
 0x3cb   :  { %2248 = vmatmul.f32.gmra.mxu0 %v5633_v28  ;;  %2313 = vmatmul.f32.gmra.mxu1 %v5636_v40 }
 0x3cc   :  { %2378 = vmatmul.f32.gmra.mxu2 %v5633_v28  ;;  %2443 = vmatmul.f32.gmra.mxu3 %v5636_v40 }
 0x3cd   :  { %2981 = vmatpush.msrb.mxu3 %v2770_v61 }
 0x3cf   :  { %2982 = vmatpush.msrb.mxu3 %v2768_v33 }
 0x3d3   :  { %2251 = vmatmul.f32.gmra.mxu0 %v5643_v29  ;;  %2316 = vmatmul.f32.gmra.mxu1 %v5646_v2 }
 0x3d4   :  { %2381 = vmatmul.f32.gmra.mxu2 %v5643_v29  ;;  %2446 = vmatmul.f32.gmra.mxu3 %v5646_v2 }
 0x3db   :  { %2254 = vmatmul.f32.gmra.mxu0 %v5653_v39  ;;  %2319 = vmatmul.f32.gmra.mxu1 %v5656_v3 }
 0x3dc   :  { %2384 = vmatmul.f32.gmra.mxu2 %v5653_v39  ;;  %2449 = vmatmul.f32.gmra.mxu3 %v5656_v3 }
 0x3e3   :  { %2257 = vmatmul.f32.gmra.mxu0 %v5663_v21  ;;  %2322 = vmatmul.f32.gmra.mxu1 %v5666_v59 }
 0x3e4   :  { %2387 = vmatmul.f32.gmra.mxu2 %v5663_v21  ;;  %2452 = vmatmul.f32.gmra.mxu3 %v5666_v59 }
 0x3e8   :  { %v5686_v22 = vpop.f32.mrf.mxu0  ;;  %v5688_v43 = vpop.f32.mrf.mxu1 }
 0x3e9   :  { %6997 = vst [vmem:[#allocation32_spill] sm:$0xff] %v5686_v22 }
 0x3ea   :  { %6998 = vst [vmem:[#allocation73_spill] sm:$0xff] %v5688_v43  ;;  %v1902_v43 = vrot.slane %v5646_v2, 7 }
 0x3eb   :  { %2472 = vmatmul.f32.vlgmr.msra.gmra.mxu0 %v1939_v16  ;;  %2537 = vmatmul.f32.vlgmr.msra.gmra.mxu1 %v1940_v38 }
 0x3ec   :  { %2602 = vmatmul.f32.vlgmr.msra.gmra.mxu2 %v1939_v16  ;;  %2667 = vmatmul.f32.vlgmr.msra.gmra.mxu3 %v1940_v38  ;;  %v1942_v16 = vmul.f32 %v7002_v36, %v5336_v35  ;;  %v2769_v38 = vld [vmem:[#allocation4 + $0x5a0] sm:$0xff]  ;;  %v7005_v35 = vld [vmem:[#allocation11_spill] sm:$0xff] }
 0x3ed   :  { %2851 = vmatpush.msrb.mxu1 %v2769_v38  ;;  %v1943_v36 = vmul.f32 %v7005_v35, %v5340_v24  ;;  %v2736_v38 = vld [vmem:[#allocation4 + $0x498] sm:$0xff] }
 0x3ee   :  { %2917 = vmatpush.msrb.mxu2 %v2736_v38  ;;  %v2766_v38 = vld [vmem:[#allocation4 + $0x588] sm:$0xff] }
 0x3ef   :  { %v2343_v7 = vpop.f32.mrf.mxu2  ;;  %v2408_v23 = vpop.f32.mrf.mxu3  ;;  %2852 = vmatpush.msrb.mxu1 %v2767_v47  ;;  %v2734_v47 = vld [vmem:[#allocation4 + $0x488] sm:$0xff]  ;;  %2983 = vmatpush.msrb.mxu3 %v2766_v38 }
 0x3f0   :  { %v5692_v25 = vadd.f32 %v2408_v23, %v2343_v7  ;;  %v5694_v6 = vpop.f32.mrf.mxu0  ;;  %v5696_v1 = vpop.f32.mrf.mxu1  ;;  %2918 = vmatpush.msrb.mxu2 %v2734_v47  ;;  %v2764_v47 = vld [vmem:[#allocation4 + $0x578] sm:$0xff] }
 0x3f1   :  { %7000 = vst [vmem:[#allocation64_spill] sm:$0xff] %v5694_v6  ;;  %2984 = vmatpush.msrb.mxu3 %v2764_v47 }
 0x3f2   :  { %7001 = vst [vmem:[#allocation65_spill] sm:$0xff] %v5696_v1 }
 0x3f3   :  { %2475 = vmatmul.f32.gmra.mxu0 %v1941_v54  ;;  %2540 = vmatmul.f32.gmra.mxu1 %v1942_v16 }
 0x3f4   :  { %2605 = vmatmul.f32.gmra.mxu2 %v1941_v54  ;;  %2670 = vmatmul.f32.gmra.mxu3 %v1942_v16  ;;  %v1944_v54 = vmul.f32 %v7005_v35, %v5348_v14  ;;  %v2735_v16 = vld [vmem:[#allocation4 + $0x490] sm:$0xff]  ;;  %v7008_v14 = vld [vmem:[#allocation12_spill] sm:$0xff] }
 0x3f5   :  { %2787 = vmatpush.msrb.mxu0 %v2735_v16  ;;  %v1945_v35 = vmul.f32 %v7008_v14, %v5368_v41  ;;  %v2765_v16 = vld [vmem:[#allocation4 + $0x580] sm:$0xff] }
 0x3f6   :  { %2853 = vmatpush.msrb.mxu1 %v2765_v16  ;;  %v2732_v16 = vld [vmem:[#allocation4 + $0x478] sm:$0xff] }
 0x3f7   :  { %v2346_v44 = vpop.f32.mrf.mxu2  ;;  %v2411_v7 = vpop.f32.mrf.mxu3  ;;  %2919 = vmatpush.msrb.mxu2 %v2732_v16  ;;  %v2762_v16 = vld [vmem:[#allocation4 + $0x568] sm:$0xff] }
 0x3f8   :  { %v5702_v23 = vadd.f32 %v2411_v7, %v2346_v44  ;;  %v5704_v26 = vpop.f32.mrf.mxu0  ;;  %v5706_v10 = vpop.f32.mrf.mxu1  ;;  %2985 = vmatpush.msrb.mxu3 %v2762_v16 }
 0x3f9   :  { %7003 = vst [vmem:[#allocation67_spill] sm:$0xff] %v5704_v26 }
 0x3fa   :  { %7004 = vst [vmem:[#allocation68_spill] sm:$0xff] %v5706_v10 }
 0x3fb   :  { %2478 = vmatmul.f32.gmra.mxu0 %v1943_v36  ;;  %2543 = vmatmul.f32.gmra.mxu1 %v1944_v54 }
 0x3fc   :  { %2608 = vmatmul.f32.gmra.mxu2 %v1943_v36  ;;  %2673 = vmatmul.f32.gmra.mxu3 %v1944_v54  ;;  %v1946_v36 = vmul.f32 %v7008_v14, %v5379_v27  ;;  %v2733_v54 = vld [vmem:[#allocation4 + $0x480] sm:$0xff]  ;;  %v7011_v27 = vld [vmem:[#allocation13_spill] sm:$0xff] }
 0x3fd   :  { %2788 = vmatpush.msrb.mxu0 %v2733_v54  ;;  %v1947_v14 = vmul.f32 %v7011_v27, %v5383_v53  ;;  %v2763_v54 = vld [vmem:[#allocation4 + $0x570] sm:$0xff] }
 0x3fe   :  { %2854 = vmatpush.msrb.mxu1 %v2763_v54  ;;  %v2730_v54 = vld [vmem:[#allocation4 + $0x468] sm:$0xff] }
 0x3ff   :  { %v2349_v61 = vpop.f32.mrf.mxu2  ;;  %v2414_v44 = vpop.f32.mrf.mxu3  ;;  %2920 = vmatpush.msrb.mxu2 %v2730_v54  ;;  %v2760_v54 = vld [vmem:[#allocation4 + $0x558] sm:$0xff] }
 0x400   :  { %v5712_v7 = vadd.f32 %v2414_v44, %v2349_v61  ;;  %v5714_v24 = vpop.f32.mrf.mxu0  ;;  %v5716_v10 = vpop.f32.mrf.mxu1  ;;  %2986 = vmatpush.msrb.mxu3 %v2760_v54 }
 0x401   :  { %7006 = vst [vmem:[#allocation70_spill] sm:$0xff] %v5714_v24 }
 0x402   :  { %7007 = vst [vmem:[#allocation71_spill] sm:$0xff] %v5716_v10 }
 0x403   :  { %2481 = vmatmul.f32.gmra.mxu0 %v1945_v35  ;;  %2546 = vmatmul.f32.gmra.mxu1 %v1946_v36 }
 0x404   :  { %2611 = vmatmul.f32.gmra.mxu2 %v1945_v35  ;;  %2676 = vmatmul.f32.gmra.mxu3 %v1946_v36  ;;  %v1948_v35 = vmul.f32 %v7011_v27, %v5390_v51  ;;  %v2731_v36 = vld [vmem:[#allocation4 + $0x470] sm:$0xff] }
 0x405   :  { %2789 = vmatpush.msrb.mxu0 %v2731_v36  ;;  %v7014_v51 = vld [vmem:[#allocation14_spill] sm:$0xff]  ;;  %v2761_v36 = vld [vmem:[#allocation4 + $0x560] sm:$0xff] }
 0x406   :  { %v1949_v27 = vmul.f32 %v7014_v51, %v5394_v0  ;;  %2855 = vmatpush.msrb.mxu1 %v2761_v36  ;;  %v2728_v36 = vld [vmem:[#allocation4 + $0x458] sm:$0xff] }
 0x407   :  { %v2352_v33 = vpop.f32.mrf.mxu2  ;;  %v2417_v61 = vpop.f32.mrf.mxu3  ;;  %2921 = vmatpush.msrb.mxu2 %v2728_v36  ;;  %v2758_v36 = vld [vmem:[#allocation4 + $0x548] sm:$0xff] }
 0x408   :  { %v5722_v44 = vadd.f32 %v2417_v61, %v2352_v33  ;;  %v5724_v41 = vpop.f32.mrf.mxu0  ;;  %v5726_v10 = vpop.f32.mrf.mxu1  ;;  %2987 = vmatpush.msrb.mxu3 %v2758_v36 }
 0x409   :  { %7009 = vst [vmem:[#allocation34_spill] sm:$0xff] %v5724_v41  ;;  %v7026_v41 = vrot.slane %v5431_v4, 7 }
 0x40a   :  { %7010 = vst [vmem:[#allocation77_spill] sm:$0xff] %v5726_v10 }
 0x40b   :  { %2484 = vmatmul.f32.gmra.mxu0 %v1947_v14  ;;  %2549 = vmatmul.f32.gmra.mxu1 %v1948_v35 }
 0x40c   :  { %2614 = vmatmul.f32.gmra.mxu2 %v1947_v14  ;;  %2679 = vmatmul.f32.gmra.mxu3 %v1948_v35  ;;  %v1950_v14 = vmul.f32 %v7014_v51, %v5401_v37  ;;  %v2729_v35 = vld [vmem:[#allocation4 + $0x460] sm:$0xff]  ;;  %v7017_v37 = vld [vmem:[#allocation15_spill] sm:$0xff] }
 0x40d   :  { %2790 = vmatpush.msrb.mxu0 %v2729_v35  ;;  %v1951_v51 = vmul.f32 %v7017_v37, %v5414_v32  ;;  %v2759_v35 = vld [vmem:[#allocation4 + $0x550] sm:$0xff] }
 0x40e   :  { %2856 = vmatpush.msrb.mxu1 %v2759_v35  ;;  %v2726_v35 = vld [vmem:[#allocation4 + $0x448] sm:$0xff] }
 0x40f   :  { %v2355_v38 = vpop.f32.mrf.mxu2  ;;  %v2420_v33 = vpop.f32.mrf.mxu3  ;;  %2922 = vmatpush.msrb.mxu2 %v2726_v35  ;;  %v2756_v35 = vld [vmem:[#allocation4 + $0x538] sm:$0xff] }
 0x410   :  { %v5732_v61 = vadd.f32 %v2420_v33, %v2355_v38  ;;  %v5734_v53 = vpop.f32.mrf.mxu0  ;;  %v5736_v10 = vpop.f32.mrf.mxu1  ;;  %2988 = vmatpush.msrb.mxu3 %v2756_v35 }
 0x411   :  { %7012 = vst [vmem:[#allocation74_spill] sm:$0xff] %v5734_v53 }
 0x412   :  { %7013 = vst [vmem:[#allocation36_spill] sm:$0xff] %v5736_v10 }
 0x413   :  { %2487 = vmatmul.f32.gmra.mxu0 %v1949_v27  ;;  %2552 = vmatmul.f32.gmra.mxu1 %v1950_v14 }
 0x414   :  { %2617 = vmatmul.f32.gmra.mxu2 %v1949_v27  ;;  %2682 = vmatmul.f32.gmra.mxu3 %v1950_v14  ;;  %v1952_v27 = vmul.f32 %v7017_v37, %v5423_v8  ;;  %v2727_v14 = vld [vmem:[#allocation4 + $0x450] sm:$0xff]  ;;  %v7020_v8 = vld [vmem:[#allocation16_spill] sm:$0xff] }
 0x415   :  { %2791 = vmatpush.msrb.mxu0 %v2727_v14  ;;  %v1953_v37 = vmul.f32 %v7020_v8, %v5427_v63  ;;  %v2757_v14 = vld [vmem:[#allocation4 + $0x540] sm:$0xff] }
 0x416   :  { %2857 = vmatpush.msrb.mxu1 %v2757_v14  ;;  %v2724_v14 = vld [vmem:[#allocation4 + $0x438] sm:$0xff] }
 0x417   :  { %v2358_v47 = vpop.f32.mrf.mxu2  ;;  %v2423_v38 = vpop.f32.mrf.mxu3  ;;  %2923 = vmatpush.msrb.mxu2 %v2724_v14  ;;  %v2754_v14 = vld [vmem:[#allocation4 + $0x528] sm:$0xff] }
 0x418   :  { %v5742_v33 = vadd.f32 %v2423_v38, %v2358_v47  ;;  %v5744_v0 = vpop.f32.mrf.mxu0  ;;  %v5746_v10 = vpop.f32.mrf.mxu1  ;;  %2989 = vmatpush.msrb.mxu3 %v2754_v14 }
 0x419   :  { %7015 = vst [vmem:[#allocation81_spill] sm:$0xff] %v5744_v0 }
 0x41a   :  { %7016 = vst [vmem:[#allocation92_spill] sm:$0xff] %v5746_v10 }
 0x41b   :  { %2490 = vmatmul.f32.gmra.mxu0 %v1951_v51  ;;  %2555 = vmatmul.f32.gmra.mxu1 %v1952_v27 }
 0x41c   :  { %2620 = vmatmul.f32.gmra.mxu2 %v1951_v51  ;;  %2685 = vmatmul.f32.gmra.mxu3 %v1952_v27  ;;  %v1954_v51 = vmul.f32 %v7020_v8, %v5438_v52  ;;  %v2725_v27 = vld [vmem:[#allocation4 + $0x440] sm:$0xff]  ;;  %v7021_v52 = vld [vmem:[#allocation19_spill] sm:$0xff] }
 0x41d   :  { %2792 = vmatpush.msrb.mxu0 %v2725_v27  ;;  %v1955_v8 = vmul.f32 %v7021_v52, %v5443_v9  ;;  %v2755_v27 = vld [vmem:[#allocation4 + $0x530] sm:$0xff] }
 0x41e   :  { %2858 = vmatpush.msrb.mxu1 %v2755_v27  ;;  %v2722_v27 = vld [vmem:[#allocation4 + $0x428] sm:$0xff] }
 0x41f   :  { %v2361_v16 = vpop.f32.mrf.mxu2  ;;  %v2426_v47 = vpop.f32.mrf.mxu3  ;;  %2924 = vmatpush.msrb.mxu2 %v2722_v27  ;;  %v2752_v27 = vld [vmem:[#allocation4 + $0x518] sm:$0xff] }
 0x420   :  { %v5752_v38 = vadd.f32 %v2426_v47, %v2361_v16  ;;  %v5754_v32 = vpop.f32.mrf.mxu0  ;;  %v5756_v10 = vpop.f32.mrf.mxu1  ;;  %2990 = vmatpush.msrb.mxu3 %v2752_v27  ;;  %v2749_v27 = vld [vmem:[#allocation4 + $0x500] sm:$0xff] }
 0x421   :  { %7018 = vst [vmem:[#allocation93_spill] sm:$0xff] %v5754_v32 }
 0x422   :  { %7019 = vst [vmem:[#allocation83_spill] sm:$0xff] %v5756_v10 }
 0x423   :  { %2493 = vmatmul.f32.gmra.mxu0 %v1953_v37  ;;  %2558 = vmatmul.f32.gmra.mxu1 %v1954_v51 }
 0x424   :  { %2623 = vmatmul.f32.gmra.mxu2 %v1953_v37  ;;  %2688 = vmatmul.f32.gmra.mxu3 %v1954_v51  ;;  %v1956_v37 = vmul.f32 %v7021_v52, %v5447_v11  ;;  %v2723_v51 = vld [vmem:[#allocation4 + $0x430] sm:$0xff] }
 0x425   :  { %2793 = vmatpush.msrb.mxu0 %v2723_v51  ;;  %v7022_v11 = vld [vmem:[#allocation22_spill] sm:$0xff]  ;;  %v2753_v51 = vld [vmem:[#allocation4 + $0x520] sm:$0xff] }
 0x426   :  { %v1957_v52 = vmul.f32 %v7022_v11, %v5452_v57  ;;  %2859 = vmatpush.msrb.mxu1 %v2753_v51  ;;  %v2720_v51 = vld [vmem:[#allocation4 + $0x418] sm:$0xff] }
 0x427   :  { %v2364_v54 = vpop.f32.mrf.mxu2  ;;  %v2429_v16 = vpop.f32.mrf.mxu3  ;;  %2925 = vmatpush.msrb.mxu2 %v2720_v51  ;;  %v2717_v51 = vld [vmem:[#allocation4 + $0x400] sm:$0xff] }
 0x428   :  { %v5762_v47 = vadd.f32 %v2429_v16, %v2364_v54  ;;  %v5764_v63 = vpop.f32.mrf.mxu0  ;;  %v5766_v10 = vpop.f32.mrf.mxu1 }
 0x42b   :  { %2496 = vmatmul.f32.gmra.mxu0 %v1955_v8  ;;  %2561 = vmatmul.f32.gmra.mxu1 %v1956_v37 }
 0x42c   :  { %2626 = vmatmul.f32.gmra.mxu2 %v1955_v8  ;;  %2691 = vmatmul.f32.gmra.mxu3 %v1956_v37  ;;  %v1958_v8 = vmul.f32 %v7022_v11, %v5456_v55  ;;  %v2721_v37 = vld [vmem:[#allocation4 + $0x420] sm:$0xff]  ;;  %v7023_v55 = vld [vmem:[#allocation25_spill] sm:$0xff] }
 0x42d   :  { %2794 = vmatpush.msrb.mxu0 %v2721_v37  ;;  %v1959_v11 = vmul.f32 %v7023_v55, %v5460_v58  ;;  %v2751_v37 = vld [vmem:[#allocation4 + $0x510] sm:$0xff] }
 0x42e   :  { %2860 = vmatpush.msrb.mxu1 %v2751_v37  ;;  %v1900_v37 = vrot.slane %v5636_v40, 7 }
 0x42f   :  { %v2367_v36 = vpop.f32.mrf.mxu2  ;;  %v2432_v54 = vpop.f32.mrf.mxu3 }
 0x430   :  { %v5772_v16 = vadd.f32 %v2432_v54, %v2367_v36  ;;  %v5774_v9 = vpop.f32.mrf.mxu0  ;;  %v5776_v32 = vpop.f32.mrf.mxu1  ;;  %2861 = vmatpush.msrb.mxu1 %v2749_v27  ;;  %v7028_v27 = vld [vmem:[#allocation31_spill] sm:$0xff] }
 0x433   :  { %2499 = vmatmul.f32.gmra.mxu0 %v1957_v52  ;;  %2564 = vmatmul.f32.gmra.mxu1 %v1958_v8 }
 0x434   :  { %2629 = vmatmul.f32.gmra.mxu2 %v1957_v52  ;;  %2694 = vmatmul.f32.gmra.mxu3 %v1958_v8  ;;  %v1960_v52 = vmul.f32 %v7023_v55, %v5464_v56  ;;  %v2719_v8 = vld [vmem:[#allocation4 + $0x410] sm:$0xff]  ;;  %v7024_v56 = vld [vmem:[#allocation37_spill] sm:$0xff]  ;;  %v7025_v55 = vld [vmem:[#allocation28_spill] sm:$0xff] }
 0x435   :  { %2795 = vmatpush.msrb.mxu0 %v2719_v8  ;;  %v1899_v8 = vrot.slane %v5633_v28, 7 }
 0x437   :  { %v2370_v35 = vpop.f32.mrf.mxu2  ;;  %v2435_v36 = vpop.f32.mrf.mxu3  ;;  %2796 = vmatpush.msrb.mxu0 %v2717_v51 }
 0x438   :  { %v5782_v54 = vadd.f32 %v2435_v36, %v2370_v35  ;;  %v5784_v57 = vpop.f32.mrf.mxu0  ;;  %v5786_v0 = vpop.f32.mrf.mxu1 }
 0x43b   :  { %2502 = vmatmul.f32.gmra.mxu0 %v1959_v11  ;;  %2567 = vmatmul.f32.gmra.mxu1 %v1960_v52 }
 0x43c   :  { %2632 = vmatmul.f32.gmra.mxu2 %v1959_v11  ;;  %2697 = vmatmul.f32.gmra.mxu3 %v1960_v52  ;;  %v1961_v11 = vmul.f32 %v7025_v55, %v7024_v56  ;;  %v1962_v52 = vmul.f32 %v7025_v55, %v5480_v49  ;;  %v1913_v56 = vsel %vm427_vm1, %v7026_v41, %v1899_v8  ;;  %v7027_v49 = vrot.slane %v5434_v15, 7 }
 0x43d   :  { %v1963_v1 = vmul.f32 %v7028_v27, %v1913_v56  ;;  %v1901_v41 = vrot.slane %v5643_v29, 7 }
 0x43e   :  { %v1914_v55 = vsel %vm427_vm1, %v7027_v49, %v1900_v37 }
 0x43f   :  { %v2373_v14 = vpop.f32.mrf.mxu2  ;;  %v2438_v35 = vpop.f32.mrf.mxu3  ;;  %v1964_v6 = vmul.f32 %v7028_v27, %v1914_v55  ;;  %v7031_v27 = vld [vmem:[#allocation33_spill] sm:$0xff] }
 0x440   :  { %v5792_v36 = vadd.f32 %v2438_v35, %v2373_v14  ;;  %v5794_v58 = vpop.f32.mrf.mxu0  ;;  %v5796_v53 = vpop.f32.mrf.mxu1  ;;  %v2718_v14 = vld [vmem:[#allocation4 + $0x408] sm:$0xff] }
 0x441   :  { %v2750_v35 = vld [vmem:[#allocation4 + $0x508] sm:$0xff]  ;;  %2926 = vmatpush.msrb.mxu2 %v2718_v14  ;;  %v1911_v14 = vsel %vm427_vm1, %v1899_v8, %v1901_v41 }
 0x442   :  { %2991 = vmatpush.msrb.mxu3 %v2750_v35  ;;  %v1912_v35 = vsel %vm427_vm1, %v1900_v37, %v1902_v43  ;;  %v1965_v22 = vmul.f32 %v7031_v27, %v1911_v14 }
 0x443   :  { %2505 = vmatmul.f32.gmra.mxu0 %v1961_v11  ;;  %2570 = vmatmul.f32.gmra.mxu1 %v1962_v52  ;;  %v1966_v62 = vmul.f32 %v7031_v27, %v1912_v35  ;;  %v7034_v27 = vld [vmem:[#allocation35_spill] sm:$0xff] }
 0x444   :  { %2635 = vmatmul.f32.gmra.mxu2 %v1961_v11  ;;  %2700 = vmatmul.f32.gmra.mxu3 %v1962_v52 }
 0x447   :  { %v2376_v11 = vpop.f32.mrf.mxu2  ;;  %v2441_v52 = vpop.f32.mrf.mxu3 }
 0x448   :  { %v5812_v24 = vadd.f32 %v2441_v52, %v2376_v11  ;;  %v5814_v26 = vpop.f32.mrf.mxu0  ;;  %v5816_v51 = vpop.f32.mrf.mxu1 }
 0x44b   :  { %2508 = vmatmul.f32.gmra.mxu0 %v1963_v1  ;;  %2573 = vmatmul.f32.gmra.mxu1 %v1964_v6 }
 0x44c   :  { %2638 = vmatmul.f32.gmra.mxu2 %v1963_v1  ;;  %2703 = vmatmul.f32.gmra.mxu3 %v1964_v6  ;;  %v1903_v6 = vrot.slane %v5653_v39, 7  ;;  %v1904_v1 = vrot.slane %v5656_v3, 7 }
 0x44e   :  { %v1909_v8 = vsel %vm427_vm1, %v1901_v41, %v1903_v6  ;;  %v1910_v37 = vsel %vm427_vm1, %v1902_v43, %v1904_v1  ;;  %v7036_v43 = vrot.slane %v5666_v59, 7 }
 0x44f   :  { %v2379_v49 = vpop.f32.mrf.mxu2  ;;  %v2444_v11 = vpop.f32.mrf.mxu3 }
 0x450   :  { %v5826_v52 = vadd.f32 %v2444_v11, %v2379_v49  ;;  %v5828_v56 = vpop.f32.mrf.mxu0  ;;  %v5830_v55 = vpop.f32.mrf.mxu1  ;;  %v1908_v41 = vsel %vm427_vm1, %v1904_v1, %v7036_v43 }
 0x451   :  { %7030 = vst [vmem:[#allocation95_spill] sm:$0xff] %v5830_v55  ;;  %v1968_v55 = vmul.f32 %v7034_v27, %v1910_v37 }
 0x452   :  { %7029 = vst [vmem:[#allocation94_spill] sm:$0xff] %v5826_v52  ;;  %v1967_v52 = vmul.f32 %v7034_v27, %v1909_v8 }
 0x453   :  { %2511 = vmatmul.f32.gmra.mxu0 %v1965_v22  ;;  %2576 = vmatmul.f32.gmra.mxu1 %v1966_v62 }
 0x454   :  { %2641 = vmatmul.f32.gmra.mxu2 %v1965_v22  ;;  %2706 = vmatmul.f32.gmra.mxu3 %v1966_v62  ;;  %v7035_v62 = vrot.slane %v5663_v21, 7 }
 0x456   :  { %v1907_v22 = vsel %vm427_vm1, %v1903_v6, %v7035_v62 }
 0x457   :  { %v2382_v49 = vpop.f32.mrf.mxu2  ;;  %v2447_v11 = vpop.f32.mrf.mxu3 }
 0x458   :  { %v5840_v50 = vadd.f32 %v2447_v11, %v2382_v49  ;;  %v5842_v14 = vpop.f32.mrf.mxu0  ;;  %v5844_v35 = vpop.f32.mrf.mxu1 }
 0x459   :  { %7033 = vst [vmem:[#allocation97_spill] sm:$0xff] %v5844_v35 }
 0x45a   :  { %7032 = vst [vmem:[#allocation96_spill] sm:$0xff] %v5840_v50 }
 0x45b   :  { %2514 = vmatmul.f32.gmra.mxu0 %v1967_v52  ;;  %2579 = vmatmul.f32.gmra.mxu1 %v1968_v55 }
 0x45c   :  { %2644 = vmatmul.f32.gmra.mxu2 %v1967_v52  ;;  %2709 = vmatmul.f32.gmra.mxu3 %v1968_v55  ;;  %v7038_v52 = vld [vmem:[#allocation39_spill] sm:$0xff] }
 0x45d   :  { %v1969_v55 = vmul.f32 %v7038_v52, %v1907_v22  ;;  %v1970_v27 = vmul.f32 %v7038_v52, %v1908_v41 }
 0x45f   :  { %v2385_v49 = vpop.f32.mrf.mxu2  ;;  %v2450_v11 = vpop.f32.mrf.mxu3 }
 0x460   :  { %v5856_v50 = vadd.f32 %v2450_v11, %v2385_v49  ;;  %v5858_v8 = vpop.f32.mrf.mxu0  ;;  %v5860_v37 = vpop.f32.mrf.mxu1  ;;  %v7042_v49 = vld [vmem:[#allocation43_spill] sm:$0xff] }
 0x461   :  { %v2035_v11 = vmul.f32 %v7042_v49, %v5493_v12 }
 0x462   :  { %7037 = vst [vmem:[#allocation75_spill] sm:$0xff] %v5856_v50  ;;  %v7043_v50 = vld [vmem:[#allocation38_spill] sm:$0xff] }
 0x463   :  { %2517 = vmatmul.f32.gmra.mxu0 %v1969_v55  ;;  %2582 = vmatmul.f32.gmra.mxu1 %v1970_v27  ;;  %v2036_v22 = vmul.f32 %v7042_v49, %v7043_v50 }
 0x464   :  { %2647 = vmatmul.f32.gmra.mxu2 %v1969_v55  ;;  %2712 = vmatmul.f32.gmra.mxu3 %v1970_v27 }
 0x467   :  { %v2388_v6 = vpop.f32.mrf.mxu2  ;;  %v2453_v62 = vpop.f32.mrf.mxu3 }
 0x468   :  { %v5864_v35 = vadd.f32 %v2453_v62, %v2388_v6  ;;  %v5866_v1 = vpop.f32.mrf.mxu0  ;;  %v5868_v43 = vpop.f32.mrf.mxu1  ;;  %v7044_v62 = vld [vmem:[#allocation41_spill] sm:$0xff] }
 0x469   :  { %7040 = vst [vmem:[#allocation86_spill] sm:$0xff] %v5866_v1 }
 0x46a   :  { %7039 = vst [vmem:[#allocation40_spill] sm:$0xff] %v5864_v35 }
 0x46b   :  { %7041 = vst [vmem:[#allocation88_spill] sm:$0xff] %v5868_v43  ;;  %2797 = vmatmul.f32.vlgmr.msrb.gmra.mxu0 %v2035_v11  ;;  %2862 = vmatmul.f32.vlgmr.msrb.gmra.mxu1 %v2036_v22  ;;  %v7045_v43 = vld [vmem:[#allocation46_spill] sm:$0xff] }
 0x46c   :  { %2927 = vmatmul.f32.vlgmr.msrb.gmra.mxu2 %v2035_v11  ;;  %2992 = vmatmul.f32.vlgmr.msrb.gmra.mxu3 %v2036_v22  ;;  %v2037_v35 = vmul.f32 %v7045_v43, %v7044_v62  ;;  %v2038_v12 = vmul.f32 %v7045_v43, %v5516_v19 }
 0x46f   :  { %v2603_v41 = vpop.f32.mrf.mxu2  ;;  %v2668_v52 = vpop.f32.mrf.mxu3 }
 0x470   :  { %v2604_v55 = vadd.f32 %v2603_v41, %v5692_v25  ;;  %v5875_v27 = vpop.f32.mrf.mxu0  ;;  %v5877_v6 = vpop.f32.mrf.mxu1  ;;  %v7046_v41 = vld [vmem:[#allocation48_spill] sm:$0xff] }
 0x471   :  { %v2039_v62 = vmul.f32 %v7046_v41, %v5523_v17  ;;  %v2040_v19 = vmul.f32 %v7046_v41, %v5527_v20 }
 0x472   :  { %v5883_v1 = vadd.f32 %v2668_v52, %v2604_v55 }
 0x473   :  { %2800 = vmatmul.f32.gmra.mxu0 %v2037_v35  ;;  %2865 = vmatmul.f32.gmra.mxu1 %v2038_v12 }
 0x474   :  { %2930 = vmatmul.f32.gmra.mxu2 %v2037_v35  ;;  %2995 = vmatmul.f32.gmra.mxu3 %v2038_v12 }
 0x477   :  { %v2606_v50 = vpop.f32.mrf.mxu2  ;;  %v2671_v49 = vpop.f32.mrf.mxu3 }
 0x478   :  { %v2607_v25 = vadd.f32 %v2606_v50, %v5702_v23  ;;  %v5886_v11 = vpop.f32.mrf.mxu0  ;;  %v5888_v22 = vpop.f32.mrf.mxu1  ;;  %v7049_v50 = vld [vmem:[#allocation50_spill] sm:$0xff] }
 0x479   :  { %v2041_v17 = vmul.f32 %v7049_v50, %v5532_v34  ;;  %v2042_v20 = vmul.f32 %v7049_v50, %v5537_v46 }
 0x47a   :  { %v5894_v43 = vadd.f32 %v2671_v49, %v2607_v25 }
 0x47b   :  { %2803 = vmatmul.f32.gmra.mxu0 %v2039_v62  ;;  %2868 = vmatmul.f32.gmra.mxu1 %v2040_v19 }
 0x47c   :  { %2933 = vmatmul.f32.gmra.mxu2 %v2039_v62  ;;  %2998 = vmatmul.f32.gmra.mxu3 %v2040_v19 }
 0x47f   :  { %v2609_v35 = vpop.f32.mrf.mxu2  ;;  %v2674_v52 = vpop.f32.mrf.mxu3 }
 0x480   :  { %v2610_v23 = vadd.f32 %v2609_v35, %v5712_v7  ;;  %v5897_v55 = vpop.f32.mrf.mxu0  ;;  %v5899_v12 = vpop.f32.mrf.mxu1  ;;  %v7052_v35 = vld [vmem:[#allocation42_spill] sm:$0xff] }
 0x481   :  { %7047 = vst [vmem:[#allocation78_spill] sm:$0xff] %v5897_v55  ;;  %v7054_v55 = vld [vmem:[#allocation45_spill] sm:$0xff] }
 0x482   :  { %7048 = vst [vmem:[#allocation49_spill] sm:$0xff] %v5899_v12  ;;  %v5905_v49 = vadd.f32 %v2674_v52, %v2610_v23  ;;  %v7053_v12 = vld [vmem:[#allocation52_spill] sm:$0xff] }
 0x483   :  { %2806 = vmatmul.f32.gmra.mxu0 %v2041_v17  ;;  %2871 = vmatmul.f32.gmra.mxu1 %v2042_v20  ;;  %v2043_v34 = vmul.f32 %v7053_v12, %v7052_v35  ;;  %v2044_v46 = vmul.f32 %v7053_v12, %v7054_v55 }
 0x484   :  { %2936 = vmatmul.f32.gmra.mxu2 %v2041_v17  ;;  %3001 = vmatmul.f32.gmra.mxu3 %v2042_v20 }
 0x487   :  { %v2612_v25 = vpop.f32.mrf.mxu2  ;;  %v2677_v41 = vpop.f32.mrf.mxu3 }
 0x488   :  { %v2613_v7 = vadd.f32 %v2612_v25, %v5722_v44  ;;  %v5908_v62 = vpop.f32.mrf.mxu0  ;;  %v5910_v19 = vpop.f32.mrf.mxu1  ;;  %v7057_v25 = vld [vmem:[#allocation23_spill] sm:$0xff] }
 0x489   :  { %7050 = vst [vmem:[#allocation98_spill] sm:$0xff] %v5908_v62  ;;  %v7059_v62 = vld [vmem:[#allocation26_spill] sm:$0xff] }
 0x48a   :  { %7051 = vst [vmem:[#allocation99_spill] sm:$0xff] %v5910_v19  ;;  %v5916_v52 = vadd.f32 %v2677_v41, %v2613_v7  ;;  %v7058_v19 = vld [vmem:[#allocation54_spill] sm:$0xff] }
 0x48b   :  { %2809 = vmatmul.f32.gmra.mxu0 %v2043_v34  ;;  %2874 = vmatmul.f32.gmra.mxu1 %v2044_v46  ;;  %v2045_v35 = vmul.f32 %v7058_v19, %v7057_v25  ;;  %v2046_v55 = vmul.f32 %v7058_v19, %v7059_v62 }
 0x48c   :  { %2939 = vmatmul.f32.gmra.mxu2 %v2043_v34  ;;  %3004 = vmatmul.f32.gmra.mxu3 %v2044_v46 }
 0x48f   :  { %v2615_v23 = vpop.f32.mrf.mxu2  ;;  %v2680_v50 = vpop.f32.mrf.mxu3 }
 0x490   :  { %v2616_v44 = vadd.f32 %v2615_v23, %v5732_v61  ;;  %v5919_v17 = vpop.f32.mrf.mxu0  ;;  %v5921_v20 = vpop.f32.mrf.mxu1  ;;  %v7060_v23 = vld [vmem:[#allocation29_spill] sm:$0xff] }
 0x491   :  { %7055 = vst [vmem:[#allocation79_spill] sm:$0xff] %v5919_v17  ;;  %v7062_v17 = vld [vmem:[#allocation61_spill] sm:$0xff] }
 0x492   :  { %7056 = vst [vmem:[#allocation82_spill] sm:$0xff] %v5921_v20  ;;  %v5927_v12 = vadd.f32 %v2680_v50, %v2616_v44  ;;  %v7061_v20 = vld [vmem:[#allocation56_spill] sm:$0xff] }
 0x493   :  { %2812 = vmatmul.f32.gmra.mxu0 %v2045_v35  ;;  %2877 = vmatmul.f32.gmra.mxu1 %v2046_v55  ;;  %v2047_v25 = vmul.f32 %v7061_v20, %v7060_v23  ;;  %v2048_v62 = vmul.f32 %v7061_v20, %v7062_v17 }
 0x494   :  { %2942 = vmatmul.f32.gmra.mxu2 %v2045_v35  ;;  %3007 = vmatmul.f32.gmra.mxu3 %v2046_v55 }
 0x497   :  { %v2618_v41 = vpop.f32.mrf.mxu2  ;;  %v2683_v7 = vpop.f32.mrf.mxu3 }
 0x498   :  { %v2619_v61 = vadd.f32 %v2618_v41, %v5742_v33  ;;  %v5930_v34 = vpop.f32.mrf.mxu0  ;;  %v5932_v46 = vpop.f32.mrf.mxu1  ;;  %v7065_v41 = vld [vmem:[#allocation58_spill] sm:$0xff] }
 0x499   :  { %v2049_v23 = vmul.f32 %v7065_v41, %v5575_v45  ;;  %v2050_v17 = vmul.f32 %v7065_v41, %v5579_v5  ;;  %v7066_v45 = vld [vmem:[#allocation60_spill] sm:$0xff] }
 0x49a   :  { %v5938_v19 = vadd.f32 %v2683_v7, %v2619_v61  ;;  %v2303_v7 = vadd.f32 %v5766_v10, %v5764_v63  ;;  %v2052_v5 = vmul.f32 %v7066_v45, %v5589_v42  ;;  %v2306_v10 = vadd.f32 %v5776_v32, %v5774_v9  ;;  %v7067_v42 = vld [vmem:[#allocation63_spill] sm:$0xff] }
 0x49b   :  { %2815 = vmatmul.f32.gmra.mxu0 %v2047_v25  ;;  %2880 = vmatmul.f32.gmra.mxu1 %v2048_v62  ;;  %v2309_v32 = vadd.f32 %v5786_v0, %v5784_v57  ;;  %v7071_v57 = vrot.slane %v5434_v15, 1  ;;  %v1997_v15 = vrot.slane %v5643_v29, 1 }
 0x49c   :  { %7063 = vst [vmem:[#allocation47_spill] sm:$0xff] %v5938_v19  ;;  %2945 = vmatmul.f32.gmra.mxu2 %v2047_v25  ;;  %3010 = vmatmul.f32.gmra.mxu3 %v2048_v62 }
 0x49f   :  { %v2621_v50 = vpop.f32.mrf.mxu2  ;;  %v2686_v44 = vpop.f32.mrf.mxu3 }
 0x4a0   :  { %v2622_v33 = vadd.f32 %v2621_v50, %v5752_v38  ;;  %v5941_v35 = vpop.f32.mrf.mxu0  ;;  %v5943_v55 = vpop.f32.mrf.mxu1 }
 0x4a1   :  { %7064 = vst [vmem:[#allocation100_spill] sm:$0xff] %v5943_v55  ;;  %v2051_v55 = vmul.f32 %v7066_v45, %v5584_v13 }
 0x4a2   :  { %v5949_v20 = vadd.f32 %v2686_v44, %v2622_v33 }
 0x4a3   :  { %2818 = vmatmul.f32.gmra.mxu0 %v2049_v23  ;;  %2883 = vmatmul.f32.gmra.mxu1 %v2050_v17 }
 0x4a4   :  { %2948 = vmatmul.f32.gmra.mxu2 %v2049_v23  ;;  %3013 = vmatmul.f32.gmra.mxu3 %v2050_v17 }
 0x4a7   :  { %v2624_v38 = vpop.f32.mrf.mxu2  ;;  %v2689_v61 = vpop.f32.mrf.mxu3 }
 0x4a8   :  { %v2625_v25 = vadd.f32 %v2624_v38, %v5762_v47  ;;  %v2497_v62 = vpop.f32.mrf.mxu0  ;;  %v2562_v50 = vpop.f32.mrf.mxu1 }
 0x4a9   :  { %v2498_v19 = vadd.f32 %v2497_v62, %v2303_v7  ;;  %v2053_v7 = vmul.f32 %v7067_v42, %v5593_v18 }
 0x4aa   :  { %v5958_v44 = vadd.f32 %v2689_v61, %v2625_v25 }
 0x4ab   :  { %v5960_v33 = vadd.f32 %v2562_v50, %v2498_v19  ;;  %2821 = vmatmul.f32.gmra.mxu0 %v2051_v55  ;;  %2886 = vmatmul.f32.gmra.mxu1 %v2052_v5  ;;  %v2054_v19 = vmul.f32 %v7067_v42, %v5598_v60  ;;  %v7068_v60 = vld [vmem:[#allocation66_spill] sm:$0xff]  ;;  %v7072_v42 = vld [vmem:[#allocation69_spill] sm:$0xff] }
 0x4ac   :  { %2951 = vmatmul.f32.gmra.mxu2 %v2051_v55  ;;  %3016 = vmatmul.f32.gmra.mxu3 %v2052_v5  ;;  %v2055_v50 = vmul.f32 %v7068_v60, %v5604_v48  ;;  %v2056_v45 = vmul.f32 %v7068_v60, %v5610_v30 }
 0x4af   :  { %v2627_v47 = vpop.f32.mrf.mxu2  ;;  %v2692_v63 = vpop.f32.mrf.mxu3 }
 0x4b0   :  { %v2628_v41 = vadd.f32 %v2627_v47, %v5772_v16  ;;  %v2500_v23 = vpop.f32.mrf.mxu0  ;;  %v2565_v13 = vpop.f32.mrf.mxu1  ;;  %v1996_v47 = vrot.slane %v5636_v40, 1 }
 0x4b1   :  { %v2501_v17 = vadd.f32 %v2500_v23, %v2306_v10  ;;  %v1995_v10 = vrot.slane %v5633_v28, 1  ;;  %v2312_v28 = vadd.f32 %v5796_v53, %v5794_v58  ;;  %v2315_v58 = vadd.f32 %v5816_v51, %v5814_v26  ;;  %v7076_v51 = vld [vmem:[#allocation95_spill] sm:$0xff] }
 0x4b2   :  { %v5969_v38 = vadd.f32 %v2692_v63, %v2628_v41  ;;  %v2010_v30 = vsel %vm524_vm3, %v7071_v57, %v1996_v47 }
 0x4b3   :  { %v5971_v55 = vadd.f32 %v2565_v13, %v2501_v17  ;;  %2824 = vmatmul.f32.gmra.mxu0 %v2053_v7  ;;  %2889 = vmatmul.f32.gmra.mxu1 %v2054_v19  ;;  %v2007_v53 = vsel %vm524_vm3, %v1995_v10, %v1997_v15 }
 0x4b4   :  { %2954 = vmatmul.f32.gmra.mxu2 %v2053_v7  ;;  %3019 = vmatmul.f32.gmra.mxu3 %v2054_v19  ;;  %v2058_v7 = vmul.f32 %v7072_v42, %v2010_v30 }
 0x4b7   :  { %v2630_v16 = vpop.f32.mrf.mxu2  ;;  %v2695_v9 = vpop.f32.mrf.mxu3 }
 0x4b8   :  { %v2631_v61 = vadd.f32 %v2630_v16, %v5782_v54  ;;  %v2503_v25 = vpop.f32.mrf.mxu0  ;;  %v2568_v18 = vpop.f32.mrf.mxu1  ;;  %v7070_v54 = vrot.slane %v5431_v4, 1 }
 0x4b9   :  { %v2504_v62 = vadd.f32 %v2503_v25, %v2309_v32  ;;  %v1998_v32 = vrot.slane %v5646_v2, 1 }
 0x4ba   :  { %v5980_v5 = vadd.f32 %v2695_v9, %v2631_v61  ;;  %v2009_v48 = vsel %vm524_vm3, %v7070_v54, %v1995_v10  ;;  %v1999_v10 = vrot.slane %v5653_v39, 1  ;;  %v7077_v39 = vld [vmem:[#allocation94_spill] sm:$0xff] }
 0x4bb   :  { %v5984_v0 = vadd.f32 %v2568_v18, %v2504_v62  ;;  %2827 = vmatmul.f32.gmra.mxu0 %v2055_v50  ;;  %2892 = vmatmul.f32.gmra.mxu1 %v2056_v45  ;;  %v2057_v4 = vmul.f32 %v7072_v42, %v2009_v48  ;;  %v7074_v62 = vld [vmem:[#allocation72_spill] sm:$0xff]  ;;  %v2318_v48 = vadd.f32 %v7076_v51, %v5828_v56  ;;  %v2001_v42 = vrot.slane %v5663_v21, 1 }
 0x4bc   :  { %7069 = vst [vmem:[#allocation101_spill] sm:$0xff] %v5980_v5  ;;  %2957 = vmatmul.f32.gmra.mxu2 %v2055_v50  ;;  %3022 = vmatmul.f32.gmra.mxu3 %v2056_v45  ;;  %v2059_v60 = vmul.f32 %v7074_v62, %v2007_v53  ;;  %v2005_v26 = vsel %vm524_vm3, %v1997_v15, %v1999_v10  ;;  %v7082_v21 = vld [vmem:[#allocation96_spill] sm:$0xff] }
 0x4bd   :  { %v2003_v56 = vsel %vm524_vm3, %v1999_v10, %v2001_v42  ;;  %v2324_v51 = vadd.f32 %v5860_v37, %v5858_v8  ;;  %v7096_v8 = vld [vmem:[#allocation86_spill] sm:$0xff] }
 0x4bf   :  { %v2633_v40 = vpop.f32.mrf.mxu2  ;;  %v2698_v63 = vpop.f32.mrf.mxu3 }
 0x4c0   :  { %v2634_v41 = vadd.f32 %v2633_v40, %v5792_v36  ;;  %v2506_v23 = vpop.f32.mrf.mxu0  ;;  %v2571_v13 = vpop.f32.mrf.mxu1  ;;  %v2008_v36 = vsel %vm524_vm3, %v1996_v47, %v1998_v32  ;;  %v2000_v47 = vrot.slane %v5656_v3, 1 }
 0x4c1   :  { %v2507_v17 = vadd.f32 %v2506_v23, %v2312_v28  ;;  %v2060_v50 = vmul.f32 %v7074_v62, %v2008_v36 }
 0x4c2   :  { %v5999_v19 = vadd.f32 %v2698_v63, %v2634_v41  ;;  %v7078_v41 = vld [vmem:[#allocation76_spill] sm:$0xff] }
 0x4c3   :  { %v6003_v16 = vadd.f32 %v2571_v13, %v2507_v17  ;;  %2830 = vmatmul.f32.gmra.mxu0 %v2057_v4  ;;  %2895 = vmatmul.f32.gmra.mxu1 %v2058_v7  ;;  %v2061_v23 = vmul.f32 %v7078_v41, %v2005_v26 }
 0x4c4   :  { %7073 = vst [vmem:[#allocation84_spill] sm:$0xff] %v5999_v19  ;;  %2960 = vmatmul.f32.gmra.mxu2 %v2057_v4  ;;  %3025 = vmatmul.f32.gmra.mxu3 %v2058_v7  ;;  %v2002_v4 = vrot.slane %v5666_v59, 1 }
 0x4c6   :  { %v2004_v15 = vsel %vm524_vm3, %v2000_v47, %v2002_v4 }
 0x4c7   :  { %v2636_v9 = vpop.f32.mrf.mxu2  ;;  %v2701_v61 = vpop.f32.mrf.mxu3 }
 0x4c8   :  { %v2637_v29 = vadd.f32 %v2636_v9, %v5812_v24  ;;  %v2509_v2 = vpop.f32.mrf.mxu0  ;;  %v2574_v25 = vpop.f32.mrf.mxu1  ;;  %v2006_v24 = vsel %vm524_vm3, %v1998_v32, %v2000_v47  ;;  %v7081_v32 = vld [vmem:[#allocation97_spill] sm:$0xff]  ;;  %v7088_v47 = vld [vmem:[#allocation30_spill] sm:$0xff] }
 0x4c9   :  { %v2510_v18 = vadd.f32 %v2509_v2, %v2315_v58  ;;  %v2062_v13 = vmul.f32 %v7078_v41, %v2006_v24  ;;  %v2321_v53 = vadd.f32 %v7081_v32, %v5842_v14  ;;  %v7083_v2 = vld [vmem:[#allocation80_spill] sm:$0xff]  ;;  %v7086_v14 = vld [vmem:[#allocation27_spill] sm:$0xff]  ;;  %v7089_v26 = vrot.slane %v7088_v47, 1 }
 0x4ca   :  { %v6014_v45 = vadd.f32 %v2701_v61, %v2637_v29 }
 0x4cb   :  { %v6018_v54 = vadd.f32 %v2574_v25, %v2510_v18  ;;  %2833 = vmatmul.f32.gmra.mxu0 %v2059_v60  ;;  %2898 = vmatmul.f32.gmra.mxu1 %v2060_v50  ;;  %v2063_v25 = vmul.f32 %v7083_v2, %v2003_v56  ;;  %v2064_v18 = vmul.f32 %v7083_v2, %v2004_v15  ;;  %v7094_v56 = vld [vmem:[#allocation73_spill] sm:$0xff]  ;;  %v7100_v2 = vld [vmem:[#allocation64_spill] sm:$0xff] }
 0x4cc   :  { %7075 = vst [vmem:[#allocation51_spill] sm:$0xff] %v6014_v45  ;;  %2963 = vmatmul.f32.gmra.mxu2 %v2059_v60  ;;  %3028 = vmatmul.f32.gmra.mxu3 %v2060_v50  ;;  %v7087_v50 = vrot.slane %v7086_v14, 1  ;;  %v2034_v24 = vsel %vm524_vm3, %v2002_v4, %v7089_v26 }
 0x4ce   :  { %v2033_v10 = vsel %vm524_vm3, %v2001_v42, %v7087_v50  ;;  %v7093_v42 = vld [vmem:[#allocation32_spill] sm:$0xff] }
 0x4cf   :  { %v2639_v57 = vpop.f32.mrf.mxu2  ;;  %v2704_v30 = vpop.f32.mrf.mxu3  ;;  %v2279_v31 = vadd.f32 %v7094_v56, %v7093_v42 }
 0x4d0   :  { %v2640_v28 = vadd.f32 %v2639_v57, %v7077_v39  ;;  %v2512_v3 = vpop.f32.mrf.mxu0  ;;  %v2577_v40 = vpop.f32.mrf.mxu1 }
 0x4d1   :  { %v2513_v63 = vadd.f32 %v2512_v3, %v2318_v48  ;;  %v2474_v37 = vadd.f32 %v7096_v8, %v2279_v31 }
 0x4d2   :  { %v6029_v17 = vadd.f32 %v2704_v30, %v2640_v28  ;;  %v7090_v30 = vld [vmem:[#allocation75_spill] sm:$0xff] }
 0x4d3   :  { %v6033_v7 = vadd.f32 %v2577_v40, %v2513_v63  ;;  %2836 = vmatmul.f32.gmra.mxu0 %v2061_v23  ;;  %2901 = vmatmul.f32.gmra.mxu1 %v2062_v13  ;;  %v7091_v63 = vld [vmem:[#allocation85_spill] sm:$0xff] }
 0x4d4   :  { %7079 = vst [vmem:[#allocation87_spill] sm:$0xff] %v6029_v17  ;;  %2966 = vmatmul.f32.gmra.mxu2 %v2061_v23  ;;  %3031 = vmatmul.f32.gmra.mxu3 %v2062_v13  ;;  %v2065_v41 = vmul.f32 %v7091_v63, %v2033_v10  ;;  %v2066_v23 = vmul.f32 %v7091_v63, %v2034_v24 }
 0x4d5   :  { %7080 = vst [vmem:[#allocation89_spill] sm:$0xff] %v6033_v7  ;;  %v7120_v7 = vld [vmem:[#allocation82_spill] sm:$0xff] }
 0x4d7   :  { %v2642_v36 = vpop.f32.mrf.mxu2  ;;  %v2707_v58 = vpop.f32.mrf.mxu3 }
 0x4d8   :  { %v2643_v9 = vadd.f32 %v2642_v36, %v7082_v21  ;;  %v2515_v59 = vpop.f32.mrf.mxu0  ;;  %v2580_v61 = vpop.f32.mrf.mxu1 }
 0x4d9   :  { %v2516_v29 = vadd.f32 %v2515_v59, %v2321_v53  ;;  %v7097_v53 = vld [vmem:[#allocation40_spill] sm:$0xff] }
 0x4da   :  { %v6044_v62 = vadd.f32 %v2707_v58, %v2643_v9  ;;  %v7098_v9 = vld [vmem:[#allocation88_spill] sm:$0xff] }
 0x4db   :  { %v6046_v60 = vadd.f32 %v2580_v61, %v2516_v29  ;;  %2839 = vmatmul.f32.gmra.mxu0 %v2063_v25  ;;  %2904 = vmatmul.f32.gmra.mxu1 %v2064_v18  ;;  %v2539_v59 = vadd.f32 %v7098_v9, %v2474_v37  ;;  %v7106_v37 = vld [vmem:[#allocation71_spill] sm:$0xff] }
 0x4dc   :  { %7084 = vst [vmem:[#allocation104_spill] sm:$0xff] %v6044_v62  ;;  %2969 = vmatmul.f32.gmra.mxu2 %v2063_v25  ;;  %3034 = vmatmul.f32.gmra.mxu3 %v2064_v18  ;;  %v7101_v25 = vld [vmem:[#allocation65_spill] sm:$0xff] }
 0x4dd   :  { %7085 = vst [vmem:[#allocation105_spill] sm:$0xff] %v6046_v60  ;;  %v2282_v18 = vadd.f32 %v7101_v25, %v7100_v2 }
 0x4df   :  { %v2645_v48 = vpop.f32.mrf.mxu2  ;;  %v2710_v57 = vpop.f32.mrf.mxu3  ;;  %v2477_v50 = vadd.f32 %v5875_v27, %v2282_v18  ;;  %v7110_v18 = vld [vmem:[#allocation77_spill] sm:$0xff] }
 0x4e0   :  { %v2646_v39 = vadd.f32 %v2645_v48, %v7090_v30  ;;  %v2518_v28 = vpop.f32.mrf.mxu0  ;;  %v2583_v3 = vpop.f32.mrf.mxu1 }
 0x4e1   :  { %v2519_v40 = vadd.f32 %v2518_v28, %v2324_v51  ;;  %v2542_v48 = vadd.f32 %v5877_v6, %v2477_v50  ;;  %v7103_v28 = vld [vmem:[#allocation68_spill] sm:$0xff] }
 0x4e2   :  { %v6061_v13 = vadd.f32 %v2710_v57, %v2646_v39  ;;  %v7102_v39 = vld [vmem:[#allocation67_spill] sm:$0xff] }
 0x4e3   :  { %v6065_v4 = vadd.f32 %v2583_v3, %v2519_v40  ;;  %2842 = vmatmul.f32.gmra.mxu0 %v2065_v41  ;;  %2907 = vmatmul.f32.gmra.mxu1 %v2066_v23  ;;  %v2285_v3 = vadd.f32 %v7103_v28, %v7102_v39  ;;  %v7112_v28 = vld [vmem:[#allocation99_spill] sm:$0xff] }
 0x4e4   :  { %7092 = vst [vmem:[#allocation53_spill] sm:$0xff] %v6061_v13  ;;  %2972 = vmatmul.f32.gmra.mxu2 %v2065_v41  ;;  %3037 = vmatmul.f32.gmra.mxu3 %v2066_v23  ;;  %v7118_v13 = vld [vmem:[#allocation93_spill] sm:$0xff] }
 0x4e5   :  { %7095 = vst [vmem:[#allocation102_spill] sm:$0xff] %v6065_v4  ;;  %v2480_v63 = vadd.f32 %v5886_v11, %v2285_v3  ;;  %v7119_v4 = vld [vmem:[#allocation83_spill] sm:$0xff] }
 0x4e6   :  { %v2300_v62 = vadd.f32 %v7119_v4, %v7118_v13 }
 0x4e7   :  { %v2648_v15 = vpop.f32.mrf.mxu2  ;;  %v2713_v32 = vpop.f32.mrf.mxu3  ;;  %v2545_v31 = vadd.f32 %v5888_v22, %v2480_v63 }
 0x4e8   :  { %v2649_v36 = vadd.f32 %v2648_v15, %v7097_v53  ;;  %v2798_v58 = vpop.f32.mrf.mxu0  ;;  %v2863_v21 = vpop.f32.mrf.mxu1  ;;  %v7107_v53 = vld [vmem:[#allocation78_spill] sm:$0xff]  ;;  %v2495_v60 = vadd.f32 %v5941_v35, %v2300_v62 }
 0x4e9   :  { %v2864_v61 = vadd.f32 %v2863_v21, %v2798_v58 }
 0x4ea   :  { %v6070_v29 = vadd.f32 %v2713_v32, %v2649_v36 }
 0x4eb   :  { %v6074_v14 = vadd.f32 %v2864_v61, %v2539_v59  ;;  %v7108_v61 = vld [vmem:[#allocation49_spill] sm:$0xff] }
 0x4ec   :  { %7099 = vst [vmem:[#allocation103_spill] sm:$0xff] %v6070_v29 }
 0x4ef   :  { %v2928_v10 = vpop.f32.mrf.mxu2  ;;  %v2993_v47 = vpop.f32.mrf.mxu3 }
 0x4f0   :  { %v2994_v26 = vadd.f32 %v2993_v47, %v2928_v10  ;;  %v2801_v24 = vpop.f32.mrf.mxu0  ;;  %v2866_v51 = vpop.f32.mrf.mxu1  ;;  %v7111_v47 = vld [vmem:[#allocation98_spill] sm:$0xff] }
 0x4f1   :  { %v2867_v57 = vadd.f32 %v2866_v51, %v2801_v24 }
 0x4f2   :  { %v6079_v30 = vadd.f32 %v2994_v26, %v5883_v1  ;;  %v7105_v1 = vld [vmem:[#allocation70_spill] sm:$0xff] }
 0x4f3   :  { %v6083_v40 = vadd.f32 %v2867_v57, %v2542_v48  ;;  %v2288_v15 = vadd.f32 %v7106_v37, %v7105_v1 }
 0x4f4   :  { %v3116_v35 = vmul.f32 %v6079_v30, %v6079_v30 }
 0x4f5   :  { %7104 = vst [vmem:[#allocation108_spill] sm:$0xff] %v6083_v40  ;;  %v2483_v36 = vadd.f32 %v7107_v53, %v2288_v15  ;;  %v3117_v45 = vmul.f32 %v6083_v40, %v6083_v40 }
 0x4f7   :  { %v2931_v41 = vpop.f32.mrf.mxu2  ;;  %v2996_v27 = vpop.f32.mrf.mxu3  ;;  %v2548_v2 = vadd.f32 %v7108_v61, %v2483_v36 }
 0x4f8   :  { %v2997_v23 = vadd.f32 %v2996_v27, %v2931_v41  ;;  %v2804_v42 = vpop.f32.mrf.mxu0  ;;  %v2869_v56 = vpop.f32.mrf.mxu1 }
 0x4f9   :  { %v2870_v8 = vadd.f32 %v2869_v56, %v2804_v42 }
 0x4fa   :  { %v6088_v6 = vadd.f32 %v2997_v23, %v5894_v43  ;;  %v7109_v43 = vld [vmem:[#allocation34_spill] sm:$0xff] }
 0x4fb   :  { %v6092_v32 = vadd.f32 %v2870_v8, %v2545_v31  ;;  %v2291_v50 = vadd.f32 %v7110_v18, %v7109_v43 }
 0x4fd   :  { %v2486_v26 = vadd.f32 %v7111_v47, %v2291_v50 }
 0x4ff   :  { %v2934_v58 = vpop.f32.mrf.mxu2  ;;  %v2999_v11 = vpop.f32.mrf.mxu3  ;;  %v2551_v3 = vadd.f32 %v7112_v28, %v2486_v26  ;;  %v7114_v28 = vld [vmem:[#allocation36_spill] sm:$0xff] }
 0x500   :  { %v3000_v21 = vadd.f32 %v2999_v11, %v2934_v58  ;;  %v2807_v9 = vpop.f32.mrf.mxu0  ;;  %v2872_v59 = vpop.f32.mrf.mxu1 }
 0x501   :  { %v2873_v25 = vadd.f32 %v2872_v59, %v2807_v9 }
 0x502   :  { %v6097_v22 = vadd.f32 %v3000_v21, %v5905_v49 }
 0x503   :  { %v6101_v10 = vadd.f32 %v2873_v25, %v2548_v2 }
 0x507   :  { %v2937_v24 = vpop.f32.mrf.mxu2  ;;  %v3002_v51 = vpop.f32.mrf.mxu3 }
 0x508   :  { %v3003_v48 = vadd.f32 %v3002_v51, %v2937_v24  ;;  %v2810_v57 = vpop.f32.mrf.mxu0  ;;  %v2875_v39 = vpop.f32.mrf.mxu1 }
 0x509   :  { %v2876_v63 = vadd.f32 %v2875_v39, %v2810_v57  ;;  %v7113_v39 = vld [vmem:[#allocation74_spill] sm:$0xff] }
 0x50a   :  { %v6106_v41 = vadd.f32 %v3003_v48, %v5916_v52 }
 0x50b   :  { %v6108_v49 = vadd.f32 %v2876_v63, %v2551_v3  ;;  %v2294_v3 = vadd.f32 %v7114_v28, %v7113_v39  ;;  %v7115_v63 = vld [vmem:[#allocation81_spill] sm:$0xff]  ;;  %v3115_v39 = vmul.f32 %v6074_v14, %v6074_v14  ;;  %v3118_v28 = vmul.f32 %v6088_v6, %v6088_v6 }
 0x50f   :  { %v2940_v27 = vpop.f32.mrf.mxu2  ;;  %v3005_v23 = vpop.f32.mrf.mxu3 }
 0x510   :  { %v3006_v42 = vadd.f32 %v3005_v23, %v2940_v27  ;;  %v2813_v56 = vpop.f32.mrf.mxu0  ;;  %v2878_v31 = vpop.f32.mrf.mxu1  ;;  %v7116_v27 = vld [vmem:[#allocation92_spill] sm:$0xff] }
 0x511   :  { %v2297_v23 = vadd.f32 %v7116_v27, %v7115_v63  ;;  %v2879_v19 = vadd.f32 %v2878_v31, %v2813_v56  ;;  %v3147_v31 = vadd.f32 %v3117_v45, %v3115_v39  ;;  %v3120_v63 = vmul.f32 %v6097_v22, %v6097_v22 }
 0x512   :  { %v6111_v8 = vadd.f32 %v3006_v42, %v5927_v12  ;;  %v7117_v42 = vld [vmem:[#allocation79_spill] sm:$0xff]  ;;  %v3121_v27 = vmul.f32 %v6101_v10, %v6101_v10  ;;  %v3122_v45 = vmul.f32 %v6106_v41, %v6106_v41 }
 0x513   :  { %v2489_v29 = vadd.f32 %v7117_v42, %v2294_v3  ;;  %v2492_v17 = vadd.f32 %v5930_v34, %v2297_v23  ;;  %v3119_v3 = vmul.f32 %v6092_v32, %v6092_v32  ;;  %v7123_v42 = vld [vmem:[#allocation100_spill] sm:$0xff] }
 0x515   :  { %v2554_v5 = vadd.f32 %v7120_v7, %v2489_v29  ;;  %v2557_v4 = vadd.f32 %v5932_v46, %v2492_v17  ;;  %v3073_v7 = vadd.f32 %v6083_v40, %v6074_v14  ;;  %v3094_v46 = vadd.f32 %v6088_v6, %v6079_v30 }
 0x516   :  { %v3168_v40 = vadd.f32 %v3118_v28, %v3116_v35 }
 0x517   :  { %v2943_v1 = vpop.f32.mrf.mxu2  ;;  %v3008_v37 = vpop.f32.mrf.mxu3  ;;  %v6171_v17 = vadd.f32 %v2879_v19, %v2554_v5  ;;  %v3095_v39 = vadd.f32 %v3094_v46, %v6097_v22 }
 0x518   :  { %v2816_v15 = vpop.f32.mrf.mxu0  ;;  %v2881_v53 = vpop.f32.mrf.mxu1  ;;  %v3009_v23 = vadd.f32 %v3008_v37, %v2943_v1  ;;  %v3123_v1 = vmul.f32 %v6108_v49, %v6108_v49 }
 0x519   :  { %v2882_v62 = vadd.f32 %v2881_v53, %v2816_v15  ;;  %v3074_v15 = vadd.f32 %v3073_v7, %v6092_v32  ;;  %v3148_v53 = vadd.f32 %v3147_v31, %v3119_v3  ;;  %v3096_v28 = vadd.f32 %v3095_v39, %v6106_v41 }
 0x51a   :  { %v3125_v3 = vmul.f32 %v6171_v17, %v6171_v17 }
 0x51b   :  { %v6179_v37 = vadd.f32 %v2882_v62, %v2557_v4  ;;  %v3075_v5 = vadd.f32 %v3074_v15, %v6101_v10  ;;  %v3149_v19 = vadd.f32 %v3148_v53, %v3121_v27 }
 0x51d   :  { %v3076_v4 = vadd.f32 %v3075_v5, %v6108_v49  ;;  %v3127_v27 = vmul.f32 %v6179_v37, %v6179_v37 }
 0x51f   :  { %v2946_v36 = vpop.f32.mrf.mxu2  ;;  %v3011_v58 = vpop.f32.mrf.mxu3  ;;  %v3077_v46 = vadd.f32 %v3076_v4, %v6171_v17 }
 0x520   :  { %v2819_v11 = vpop.f32.mrf.mxu0  ;;  %v2884_v21 = vpop.f32.mrf.mxu1  ;;  %v3012_v35 = vadd.f32 %v3011_v58, %v2946_v36 }
 0x522   :  { %v6207_v53 = vadd.f32 %v3012_v35, %v5949_v20 }
 0x524   :  { %v3128_v5 = vmul.f32 %v6207_v53, %v6207_v53 }
 0x527   :  { %v6113_v52 = vpop.f32.mrf.mxu2  ;;  %v6115_v9 = vpop.f32.mrf.mxu3 }
 0x528   :  { %v2822_v59 = vpop.f32.mrf.mxu0  ;;  %v2887_v61 = vpop.f32.mrf.mxu1 }
 0x52f   :  { %v6117_v2 = vpop.f32.mrf.mxu2  ;;  %v6119_v25 = vpop.f32.mrf.mxu3 }
 0x530   :  { %v2825_v12 = vpop.f32.mrf.mxu0  ;;  %v2890_v43 = vpop.f32.mrf.mxu1 }
 0x537   :  { %v6121_v18 = vpop.f32.mrf.mxu2  ;;  %v6123_v50 = vpop.f32.mrf.mxu3 }
 0x538   :  { %v6125_v47 = vpop.f32.mrf.mxu0  ;;  %v6127_v26 = vpop.f32.mrf.mxu1 }
 0x53f   :  { %v6129_v24 = vpop.f32.mrf.mxu2  ;;  %v6131_v51 = vpop.f32.mrf.mxu3 }
 0x540   :  { %v6133_v48 = vpop.f32.mrf.mxu0  ;;  %v6135_v57 = vpop.f32.mrf.mxu1 }
 0x547   :  { %v6155_v13 = vpop.f32.mrf.mxu2  ;;  %v6157_v34 = vpop.f32.mrf.mxu3 }
 0x548   :  { %7121 = vst [vmem:[#allocation109_spill] sm:$0xff] %v6155_v13  ;;  %v2834_v29 = vpop.f32.mrf.mxu0  ;;  %v2899_v56 = vpop.f32.mrf.mxu1  ;;  %v2885_v13 = vadd.f32 %v2884_v21, %v2819_v11  ;;  %v7124_v11 = vld [vmem:[#allocation47_spill] sm:$0xff] }
 0x549   :  { %7122 = vst [vmem:[#allocation106_spill] sm:$0xff] %v6157_v34  ;;  %v2560_v34 = vadd.f32 %v7123_v42, %v2495_v60  ;;  %v2888_v60 = vadd.f32 %v2887_v61, %v2822_v59  ;;  %v3169_v42 = vadd.f32 %v3168_v40, %v3120_v63  ;;  %v6183_v21 = vadd.f32 %v3009_v23, %v7124_v11 }
 0x54a   :  { %v3124_v40 = vmul.f32 %v6111_v8, %v6111_v8  ;;  %v2891_v59 = vadd.f32 %v2890_v43, %v2825_v12  ;;  %v3150_v63 = vadd.f32 %v3149_v19, %v3123_v1  ;;  %v3015_v23 = vadd.f32 %v6115_v9, %v6113_v52 }
 0x54b   :  { %v6188_v7 = vadd.f32 %v2885_v13, %v2560_v34  ;;  %v3170_v31 = vadd.f32 %v3169_v42, %v3122_v45  ;;  %v6198_v36 = vadd.f32 %v2888_v60, %v5960_v33  ;;  %v3097_v34 = vadd.f32 %v3096_v28, %v6111_v8 }
 0x54c   :  { %v3126_v12 = vmul.f32 %v6183_v21, %v6183_v21  ;;  %v2894_v43 = vadd.f32 %v6127_v26, %v6125_v47  ;;  %v3151_v15 = vadd.f32 %v3150_v63, %v3125_v3  ;;  %v3018_v52 = vadd.f32 %v6119_v25, %v6117_v2 }
 0x54d   :  { %v3129_v33 = vmul.f32 %v6188_v7, %v6188_v7  ;;  %v3171_v9 = vadd.f32 %v3170_v31, %v3124_v40  ;;  %v3078_v45 = vadd.f32 %v3077_v46, %v6179_v37  ;;  %v6215_v39 = vadd.f32 %v2891_v59, %v5971_v55 }
 0x54e   :  { %v2897_v1 = vadd.f32 %v6135_v57, %v6133_v48  ;;  %v3098_v47 = vadd.f32 %v3097_v34, %v6183_v21  ;;  %v3152_v26 = vadd.f32 %v3151_v15, %v3127_v27  ;;  %v6221_v20 = vadd.f32 %v3015_v23, %v5958_v44  ;;  %v7125_v23 = vld [vmem:[#allocation101_spill] sm:$0xff] }
 0x54f   :  { %v2964_v61 = vpop.f32.mrf.mxu2  ;;  %v3029_v62 = vpop.f32.mrf.mxu3  ;;  %v3131_v60 = vmul.f32 %v6198_v36, %v6198_v36  ;;  %v3172_v42 = vadd.f32 %v3171_v9, %v3126_v12  ;;  %v3079_v2 = vadd.f32 %v3078_v45, %v6188_v7  ;;  %v6227_v25 = vadd.f32 %v2894_v43, %v5984_v0  ;;  %v7128_v43 = vld [vmem:[#allocation89_spill] sm:$0xff] }
 0x550   :  { %v2837_v58 = vpop.f32.mrf.mxu0  ;;  %v2902_v13 = vpop.f32.mrf.mxu1  ;;  %v2900_v55 = vadd.f32 %v2899_v56, %v2834_v29  ;;  %v3153_v48 = vadd.f32 %v3152_v26, %v3129_v33  ;;  %v6232_v57 = vadd.f32 %v3018_v52, %v5969_v38  ;;  %v3021_v44 = vadd.f32 %v6123_v50, %v6121_v18  ;;  %v7129_v52 = vld [vmem:[#allocation84_spill] sm:$0xff] }
 0x551   :  { %v3080_v19 = vadd.f32 %v3079_v2, %v6198_v36  ;;  %v3133_v11 = vmul.f32 %v6215_v39, %v6215_v39  ;;  %v6240_v28 = vadd.f32 %v2897_v1, %v6003_v16  ;;  %v2903_v0 = vadd.f32 %v2902_v13, %v2837_v58  ;;  %v7126_v13 = vld [vmem:[#allocation109_spill] sm:$0xff] }
 0x552   :  { %v3099_v3 = vadd.f32 %v3098_v47, %v6207_v53  ;;  %v3130_v38 = vmul.f32 %v6221_v20, %v6221_v20  ;;  %v3154_v35 = vadd.f32 %v3153_v48, %v3131_v60  ;;  %v3024_v18 = vadd.f32 %v6131_v51, %v6129_v24  ;;  %v7127_v24 = vld [vmem:[#allocation106_spill] sm:$0xff]  ;;  %v7130_v60 = vld [vmem:[#allocation105_spill] sm:$0xff] }
 0x553   :  { %v3081_v4 = vadd.f32 %v3080_v19, %v6215_v39  ;;  %v3135_v16 = vmul.f32 %v6227_v25, %v6227_v25  ;;  %v6251_v40 = vadd.f32 %v2900_v55, %v6018_v54  ;;  %v3173_v63 = vadd.f32 %v3172_v42, %v3128_v5  ;;  %v7131_v5 = vld [vmem:[#allocation51_spill] sm:$0xff] }
 0x554   :  { %v3132_v27 = vmul.f32 %v6232_v57, %v6232_v57  ;;  %v6256_v58 = vadd.f32 %v3021_v44, %v7125_v23  ;;  %v3027_v51 = vadd.f32 %v7127_v24, %v7126_v13  ;;  %v3155_v34 = vadd.f32 %v3154_v35, %v3133_v11  ;;  %v7133_v24 = vld [vmem:[#allocation104_spill] sm:$0xff] }
 0x555   :  { %v3082_v46 = vadd.f32 %v3081_v4, %v6227_v25  ;;  %v3137_v12 = vmul.f32 %v6240_v28, %v6240_v28  ;;  %v6264_v54 = vadd.f32 %v2903_v0, %v7128_v43  ;;  %v3100_v15 = vadd.f32 %v3099_v3, %v6221_v20 }
 0x556   :  { %v3174_v33 = vadd.f32 %v3173_v63, %v3130_v38  ;;  %v6268_v9 = vadd.f32 %v3024_v18, %v7129_v52  ;;  %v3030_v45 = vadd.f32 %v3029_v62, %v2964_v61  ;;  %v3156_v1 = vadd.f32 %v3155_v34, %v3135_v16  ;;  %v7132_v18 = vld [vmem:[#allocation87_spill] sm:$0xff] }
 0x557   :  { %v2967_v29 = vpop.f32.mrf.mxu2  ;;  %v3032_v56 = vpop.f32.mrf.mxu3  ;;  %v3083_v47 = vadd.f32 %v3082_v46, %v6240_v28  ;;  %v3139_v26 = vmul.f32 %v6251_v40, %v6251_v40  ;;  %v3101_v2 = vadd.f32 %v3100_v15, %v6232_v57  ;;  %v3134_v55 = vmul.f32 %v6256_v58, %v6256_v58 }
 0x558   :  { %v2840_v50 = vpop.f32.mrf.mxu0  ;;  %v2905_v31 = vpop.f32.mrf.mxu1  ;;  %v6280_v48 = vadd.f32 %v3027_v51, %v7131_v5  ;;  %v3033_v44 = vadd.f32 %v3032_v56, %v2967_v29  ;;  %v3175_v19 = vadd.f32 %v3174_v33, %v3132_v27  ;;  %v3157_v61 = vadd.f32 %v3156_v1, %v3137_v12  ;;  %v7134_v12 = vld [vmem:[#allocation102_spill] sm:$0xff] }
 0x559   :  { %v2906_v59 = vadd.f32 %v2905_v31, %v2840_v50  ;;  %v3084_v62 = vadd.f32 %v3083_v47, %v6251_v40  ;;  %v3141_v11 = vmul.f32 %v6264_v54, %v6264_v54  ;;  %v3102_v38 = vadd.f32 %v3101_v2, %v6256_v58 }
 0x55a   :  { %v3136_v35 = vmul.f32 %v6268_v9, %v6268_v9  ;;  %v6289_v50 = vadd.f32 %v3030_v45, %v7132_v18  ;;  %v3158_v56 = vadd.f32 %v3157_v61, %v3139_v26  ;;  %v3176_v27 = vadd.f32 %v3175_v19, %v3134_v55  ;;  %v7135_v45 = vld [vmem:[#allocation53_spill] sm:$0xff] }
 0x55b   :  { %v6274_v42 = vadd.f32 %v2906_v59, %v7130_v60  ;;  %v3085_v16 = vadd.f32 %v3084_v62, %v6264_v54  ;;  %v3103_v23 = vadd.f32 %v3102_v38, %v6268_v9  ;;  %v3138_v13 = vmul.f32 %v6280_v48, %v6280_v48 }
 0x55c   :  { %v6298_v51 = vadd.f32 %v3033_v44, %v7133_v24  ;;  %v3159_v34 = vadd.f32 %v3158_v56, %v3141_v11  ;;  %v3177_v15 = vadd.f32 %v3176_v27, %v3136_v35  ;;  %v3140_v52 = vmul.f32 %v6289_v50, %v6289_v50 }
 0x55d   :  { %v3143_v59 = vmul.f32 %v6274_v42, %v6274_v42  ;;  %v3086_v46 = vadd.f32 %v3085_v16, %v6274_v42  ;;  %v3104_v33 = vadd.f32 %v3103_v23, %v6280_v48 }
 0x55e   :  { %v3178_v2 = vadd.f32 %v3177_v15, %v3138_v13  ;;  %v3142_v5 = vmul.f32 %v6298_v51, %v6298_v51 }
 0x55f   :  { %v2970_v0 = vpop.f32.mrf.mxu2  ;;  %v3035_v3 = vpop.f32.mrf.mxu3  ;;  %v3160_v47 = vadd.f32 %v3159_v34, %v3143_v59  ;;  %v3105_v55 = vadd.f32 %v3104_v33, %v6289_v50 }
 0x560   :  { %v3036_v31 = vadd.f32 %v3035_v3, %v2970_v0  ;;  %v2843_v4 = vpop.f32.mrf.mxu0  ;;  %v2908_v29 = vpop.f32.mrf.mxu1  ;;  %v3179_v11 = vadd.f32 %v3178_v2, %v3140_v52 }
 0x561   :  { %v2909_v63 = vadd.f32 %v2908_v29, %v2843_v4  ;;  %v3106_v0 = vadd.f32 %v3105_v55, %v6298_v51  ;;  %v7136_v29 = vld [vmem:[#allocation103_spill] sm:$0xff] }
 0x562   :  { %v6308_v1 = vadd.f32 %v3036_v31, %v7135_v45  ;;  %v3180_v31 = vadd.f32 %v3179_v11, %v3142_v5 }
 0x563   :  { %v6302_v43 = vadd.f32 %v2909_v63, %v7134_v12 }
 0x564   :  { %v3144_v3 = vmul.f32 %v6308_v1, %v6308_v1  ;;  %v3107_v4 = vadd.f32 %v3106_v0, %v6308_v1 }
 0x565   :  { %v3087_v26 = vadd.f32 %v3086_v46, %v6302_v43  ;;  %v3145_v60 = vmul.f32 %v6302_v43, %v6302_v43 }
 0x566   :  { %v3181_v63 = vadd.f32 %v3180_v31, %v3144_v3 }
 0x567   :  { %v3088_v44 = vrot.slane %v3087_v26, 4  ;;  %v3161_v19 = vadd.f32 %v3160_v47, %v3145_v60  ;;  %v2973_v61 = vpop.f32.mrf.mxu2  ;;  %v3038_v62 = vpop.f32.mrf.mxu3 }
 0x568   :  { %v3039_v38 = vadd.f32 %v3038_v62, %v2973_v61 }
 0x569   :  { %v3089_v35 = vadd.f32 %v3088_v44, %v3087_v26  ;;  %v3162_v18 = vrot.slane %v3161_v19, 4 }
 0x56a   :  { %v6321_v56 = vadd.f32 %v3039_v38, %v7136_v29 }
 0x56b   :  { %v3090_v16 = vrot.slane %v3089_v35, 2  ;;  %v3163_v59 = vadd.f32 %v3162_v18, %v3161_v19 }
 0x56c   :  { %v3108_v27 = vadd.f32 %v3107_v4, %v6321_v56  ;;  %v3146_v23 = vmul.f32 %v6321_v56, %v6321_v56 }
 0x56d   :  { %v3091_v13 = vadd.f32 %v3090_v16, %v3089_v35  ;;  %v3164_v24 = vrot.slane %v3163_v59, 2 }
 0x56e   :  { %v3109_v34 = vrot.slane %v3108_v27, 4  ;;  %v3182_v46 = vadd.f32 %v3181_v63, %v3146_v23 }
 0x56f   :  { %v3092_v12 = vrot.slane %v3091_v13, 1  ;;  %v3165_v15 = vadd.f32 %v3164_v24, %v3163_v59 }
 0x570   :  { %v3110_v33 = vadd.f32 %v3109_v34, %v3108_v27  ;;  %v3183_v52 = vrot.slane %v3182_v46, 4 }
 0x571   :  { %v3166_v45 = vrot.slane %v3165_v15, 1  ;;  %v3093_v60 = vadd.f32 %v3092_v12, %v3091_v13 }
 0x572   :  { %v3111_v47 = vrot.slane %v3110_v33, 2  ;;  %v3184_v26 = vadd.f32 %v3183_v52, %v3182_v46 }
 0x573   :  { %v3167_v2 = vadd.f32 %v3166_v45, %v3165_v15 }
 0x574   :  { %v3112_v55 = vadd.f32 %v3111_v47, %v3110_v33  ;;  %v3185_v5 = vrot.slane %v3184_v26, 2 }
 0x575   :  { %v3189_v44 = vsel %vm1711_vm5, %v3093_v60, %v3167_v2 }
 0x576   :  { %3191 = vrot.lane.b32.xlu2 %v3189_v44, %s3582_s14  ;;  %v3186_v19 = vadd.f32 %v3185_v5, %v3184_v26  ;;  %v3113_v61 = vrot.slane %v3112_v55, 1 }
 0x578   :  { %v3187_v62 = vrot.slane %v3186_v19, 1  ;;  %v3114_v0 = vadd.f32 %v3113_v61, %v3112_v55 }
 0x57a   :  { %v3188_v11 = vadd.f32 %v3187_v62, %v3186_v19 }
 0x57c   :  { %v3190_v3 = vsel %vm1711_vm5, %v3114_v0, %v3188_v11 }
 0x57e   :  { %3193 = vrot.lane.b32.xlu2 %v3190_v3, %s3582_s14 }
 0x5d0   :  { %v3192_v38 = vpop.permute.xlu2 %3191 }
 0x5d8   :  { %v3194_v35 = vpop.permute.xlu2 %3193 }
 0x5d9   :  { %v3195_v31 = vsel %vm1720_vm6, %v3192_v38, %v3194_v35  ;;  %v3196_v4 = vsel %vm1720_vm6, %v3194_v35, %v3192_v38  ;;  %v3270_v35 = vld [vmem:[%s6651_s6] sm:$0x3] }
 0x5da   :  { %v3197_v29 = vadd.f32 %v3196_v4, %v3189_v44  ;;  %v3198_v16 = vadd.f32 %v3195_v31, %v3190_v3  ;;  %v3214_v44 = vld [vmem:[%s6650_s5] sm:$0x3] }
 0x5dc   :  { %3199 = vrot.lane.b32.xlu0 %v3197_v29, %s3583_s15  ;;  %3201 = vrot.lane.b32.xlu1 %v3198_v16, %s3583_s15 }
 0x64e   :  { %v3200_v59 = vpop.permute.xlu0 %3199  ;;  %v3202_v63 = vpop.permute.xlu1 %3201 }
 0x64f   :  { %v3203_v27 = vsel %vm1729_vm7, %v3200_v59, %v3202_v63  ;;  %v3204_v23 = vsel %vm1729_vm7, %v3202_v63, %v3200_v59  ;;  %v7138_v63 = vld [vmem:[#allocation108_spill] sm:$0xff] }
 0x650   :  { %v3205_v13 = vadd.f32 %v3204_v23, %v3197_v29  ;;  %v3206_v24 = vadd.f32 %v3203_v27, %v3198_v16 }
 0x652   :  { %v3207_v34 = vadd.f32 %v3206_v24, %v3205_v13 }
 0x654   :  { %v3208_v46 = vmul.f32 0.0009765625, %v3207_v34 }
 0x656   :  { %v3209_v12 = vmul.f32 %v3208_v46, %v3208_v46 }
 0x658   :  { %v3211_v15 = vrot.slane %v3209_v12, 7 }
 0x65a   :  { %v3213_v33 = vsub.f32 %v3208_v46, %v3211_v15 }
 0x65c   :  { %v3215_v52 = vadd.f32 1e-05, %v3213_v33 }
 0x65e   :  { %3459 = vrsqrt.f32 %v3215_v52  ;;  %vm3222_vm3 = vweird.f32 %v3215_v52 }
 0x664   :  { %v3460_v45 = vpop.eup %3459 }
 0x665   :  { %v3217_v47 = vmul.f32 %v3460_v45, %v3215_v52  ;;  %vm3223_vm1 = vweird.f32 %v3460_v45 }
 0x666   :  { %vm3224_vm11 = vmor %vm3222_vm3, %vm3223_vm1 }
 0x667   :  { %v3218_v26 = vmul.f32 %v3460_v45, %v3217_v47 }
 0x669   :  { %v3219_v60 = vmul.f32 0.5, %v3218_v26 }
 0x66b   :  { %v3220_v2 = vsub.f32 1.5, %v3219_v60 }
 0x66d   :  { %v3221_v55 = vmul.f32 %v3460_v45, %v3220_v2 }
 0x66f   :  { %v3225_v5 = vsel %vm3224_vm11, %v3460_v45, %v3221_v55  ;;  %v3496_v55 = vld [vmem:[%s6645_s0 + $0x18] sm:$0xff] }
 0x670   :  { %3227 = vst [vmem:[#allocation1] sm:$0xff] %v3225_v5 }
 0x671   :  { %3228 = vst [vmem:[#allocation1 + $0x9] sm:$0xff] %v3225_v5 }
 0x678   :  { %v3230_v19 = vld [vmem:[#allocation1 + $0x1] ss:$9 sm:$0xff] }
 0x679   :  { %v3232_v61 = vmul.f32 %v3230_v19, %v3214_v44 }
 0x67b   :  { %v6343_v62 = vperm.slane %v3232_v61, 1  ;;  %v6345_v11 = vperm.slane %v3232_v61, 0  ;;  %v3497_v61 = vld [vmem:[%s6645_s0 + $0x20] sm:$0xff] }
 0x67d   :  { %v3272_v0 = vmul.f32 %v6343_v62, %v3208_v46  ;;  %v3271_v38 = vmul.f32 %v6345_v11, %v3208_v46  ;;  %v3238_v16 = vmul.f32 %v6345_v11, %v6074_v14  ;;  %v3239_v59 = vmul.f32 %v6343_v62, %v6079_v30 }
 0x67e   :  { %v3240_v27 = vmul.f32 %v6345_v11, %v7138_v63  ;;  %v3241_v23 = vmul.f32 %v6343_v62, %v6088_v6  ;;  %v3242_v13 = vmul.f32 %v6345_v11, %v6092_v32  ;;  %v3243_v14 = vmul.f32 %v6343_v62, %v6097_v22  ;;  %v3493_v22 = vld [vmem:[%s6645_s0] sm:$0xff] }
 0x67f   :  { %v3275_v3 = vrot.slane %v3272_v0, 7  ;;  %v3244_v12 = vmul.f32 %v6345_v11, %v6101_v10  ;;  %v3245_v6 = vmul.f32 %v6343_v62, %v6106_v41  ;;  %v3246_v32 = vmul.f32 %v6345_v11, %v6108_v49  ;;  %v3494_v10 = vld [vmem:[%s6645_s0 + $0x8] sm:$0xff]  ;;  %v3495_v41 = vld [vmem:[%s6645_s0 + $0x10] sm:$0xff] }
 0x680   :  { %v3247_v49 = vmul.f32 %v6343_v62, %v6111_v8  ;;  %v3248_v60 = vmul.f32 %v6345_v11, %v6171_v17  ;;  %v3249_v44 = vmul.f32 %v6343_v62, %v6183_v21  ;;  %v3250_v17 = vmul.f32 %v6345_v11, %v6179_v37  ;;  %v3499_v21 = vld [vmem:[%s6645_s0 + $0x30] sm:$0xff] }
 0x681   :  { %v3276_v18 = vsel %vm1711_vm5, %v3271_v38, %v3275_v3  ;;  %v3498_v38 = vld [vmem:[%s6645_s0 + $0x28] sm:$0xff]  ;;  %v3251_v37 = vmul.f32 %v6343_v62, %v6207_v53  ;;  %v3253_v53 = vmul.f32 %v6343_v62, %v6221_v20  ;;  %v3503_v20 = vld [vmem:[%s6645_s0 + $0x50] sm:$0xff] }
 0x682   :  { %v3278_v31 = vsub.f32 %v3270_v35, %v3276_v18 }
 0x684   :  { %v6353_v4 = vperm.slane %v3278_v31, 0  ;;  %v6355_v29 = vperm.slane %v3278_v31, 1 }
 0x686   :  { %v3284_v24 = vadd.f32 %v6353_v4, %v3238_v16  ;;  %v3285_v34 = vadd.f32 %v6355_v29, %v3239_v59  ;;  %v3286_v46 = vadd.f32 %v6353_v4, %v3240_v27  ;;  %v3287_v30 = vadd.f32 %v6355_v29, %v3241_v23  ;;  %v3500_v27 = vld [vmem:[%s6645_s0 + $0x38] sm:$0xff] }
 0x687   :  { %v3288_v15 = vadd.f32 %v6353_v4, %v3242_v13  ;;  %v3289_v33 = vadd.f32 %v6355_v29, %v3243_v14  ;;  %v3290_v52 = vadd.f32 %v6353_v4, %v3244_v12  ;;  %v3291_v2 = vadd.f32 %v6355_v29, %v3245_v6 }
 0x688   :  { %v3316_v45 = vadd.f32 %v3493_v22, %v3284_v24  ;;  %v3317_v47 = vadd.f32 %v3494_v10, %v3285_v34  ;;  %v3318_v26 = vadd.f32 %v3495_v41, %v3286_v46  ;;  %v3319_v5 = vadd.f32 %v3496_v55, %v3287_v30  ;;  %v3501_v46 = vld [vmem:[%s6645_s0 + $0x40] sm:$0xff] }
 0x689   :  { %v3292_v19 = vadd.f32 %v6353_v4, %v3246_v32  ;;  %v3320_v8 = vadd.f32 %v3497_v61, %v3288_v15  ;;  %v3293_v0 = vadd.f32 %v6355_v29, %v3247_v49  ;;  %v3294_v3 = vadd.f32 %v6353_v4, %v3248_v60 }
 0x68a   :  { %v3321_v35 = vadd.f32 %v3498_v38, %v3289_v33  ;;  %v3322_v18 = vadd.f32 %v3499_v21, %v3290_v52  ;;  %v3348_v31 = vmax.f32 %v3316_v45, 0.0  ;;  %v3349_v16 = vmax.f32 %v3317_v47, 0.0 }
 0x68b   :  { %v3350_v59 = vmax.f32 %v3318_v26, 0.0  ;;  %v3295_v63 = vadd.f32 %v6355_v29, %v3249_v44  ;;  %v3323_v23 = vadd.f32 %v3500_v27, %v3291_v2  ;;  %v3351_v13 = vmax.f32 %v3319_v5, 0.0 }
 0x68c   :  { %v3252_v24 = vmul.f32 %v6345_v11, %v6188_v7  ;;  %v3296_v34 = vadd.f32 %v6353_v4, %v3250_v17  ;;  %v3324_v14 = vadd.f32 %v3501_v46, %v3292_v19  ;;  %v3352_v30 = vmax.f32 %v3320_v8, 0.0  ;;  %3380 = vst [vmem:[%s6652_s7] sm:$0xff] %v3348_v31  ;;  %v3502_v7 = vld [vmem:[%s6645_s0 + $0x48] sm:$0xff] }
 0x68d   :  { %v3297_v12 = vadd.f32 %v6355_v29, %v3251_v37  ;;  %v3325_v15 = vadd.f32 %v3502_v7, %v3293_v0  ;;  %v3353_v6 = vmax.f32 %v3321_v35, 0.0  ;;  %3381 = vst [vmem:[%s6652_s7 + $0x8] sm:$0xff] %v3349_v16  ;;  %v3254_v32 = vmul.f32 %v6345_v11, %v6198_v36  ;;  %v3504_v36 = vld [vmem:[%s6645_s0 + $0x58] sm:$0xff] }
 0x68e   :  { %v3298_v33 = vadd.f32 %v6353_v4, %v3252_v24  ;;  %v3326_v52 = vadd.f32 %v3503_v20, %v3294_v3  ;;  %v3354_v22 = vmax.f32 %v3322_v18, 0.0  ;;  %3382 = vst [vmem:[%s6652_s7 + $0x10] sm:$0xff] %v3350_v59  ;;  %v3255_v45 = vmul.f32 %v6343_v62, %v6232_v57  ;;  %v3505_v57 = vld [vmem:[%s6645_s0 + $0x60] sm:$0xff] }
 0x68f   :  { %v3299_v10 = vadd.f32 %v6355_v29, %v3253_v53  ;;  %v3327_v47 = vadd.f32 %v3504_v36, %v3295_v63  ;;  %v3355_v41 = vmax.f32 %v3323_v23, 0.0  ;;  %3383 = vst [vmem:[%s6652_s7 + $0x18] sm:$0xff] %v3351_v13  ;;  %v3256_v26 = vmul.f32 %v6345_v11, %v6215_v39  ;;  %v3506_v39 = vld [vmem:[%s6645_s0 + $0x68] sm:$0xff] }
 0x690   :  { %v3300_v49 = vadd.f32 %v6353_v4, %v3254_v32  ;;  %v3328_v60 = vadd.f32 %v3505_v57, %v3296_v34  ;;  %v3356_v2 = vmax.f32 %v3324_v14, 0.0  ;;  %3384 = vst [vmem:[%s6652_s7 + $0x20] sm:$0xff] %v3352_v30  ;;  %v3257_v55 = vmul.f32 %v6343_v62, %v6256_v58  ;;  %v3507_v58 = vld [vmem:[%s6645_s0 + $0x70] sm:$0xff] }
 0x691   :  { %v3301_v5 = vadd.f32 %v6355_v29, %v3255_v45  ;;  %v3329_v44 = vadd.f32 %v3506_v39, %v3297_v12  ;;  %v3357_v19 = vmax.f32 %v3325_v15, 0.0  ;;  %3385 = vst [vmem:[%s6652_s7 + $0x28] sm:$0xff] %v3353_v6  ;;  %v3258_v61 = vmul.f32 %v6345_v11, %v6227_v25  ;;  %v3508_v25 = vld [vmem:[%s6645_s0 + $0x78] sm:$0xff] }
 0x692   :  { %v3302_v8 = vadd.f32 %v6353_v4, %v3256_v26  ;;  %v3330_v17 = vadd.f32 %v3507_v58, %v3298_v33  ;;  %v3358_v0 = vmax.f32 %v3326_v52, 0.0  ;;  %3386 = vst [vmem:[%s6652_s7 + $0x30] sm:$0xff] %v3354_v22  ;;  %v3259_v3 = vmul.f32 %v6343_v62, %v6268_v9  ;;  %v3509_v9 = vld [vmem:[%s6645_s0 + $0x80] sm:$0xff] }
 0x693   :  { %v3303_v38 = vadd.f32 %v6355_v29, %v3257_v55  ;;  %v3331_v35 = vadd.f32 %v3508_v25, %v3299_v10  ;;  %v3359_v21 = vmax.f32 %v3327_v47, 0.0  ;;  %3387 = vst [vmem:[%s6652_s7 + $0x38] sm:$0xff] %v3355_v41  ;;  %v3260_v18 = vmul.f32 %v6345_v11, %v6240_v28  ;;  %v3510_v28 = vld [vmem:[%s6645_s0 + $0x88] sm:$0xff] }
 0x694   :  { %v3304_v31 = vadd.f32 %v6353_v4, %v3258_v61  ;;  %v3332_v16 = vadd.f32 %v3509_v9, %v3300_v49  ;;  %v3360_v59 = vmax.f32 %v3328_v60, 0.0  ;;  %3388 = vst [vmem:[%s6652_s7 + $0x40] sm:$0xff] %v3356_v2  ;;  %v3261_v37 = vmul.f32 %v6343_v62, %v6280_v48  ;;  %v3511_v48 = vld [vmem:[%s6645_s0 + $0x90] sm:$0xff] }
 0x695   :  { %v3305_v63 = vadd.f32 %v6355_v29, %v3259_v3  ;;  %v3333_v27 = vadd.f32 %v3510_v28, %v3301_v5  ;;  %v3361_v23 = vmax.f32 %v3329_v44, 0.0  ;;  %3389 = vst [vmem:[%s6652_s7 + $0x48] sm:$0xff] %v3357_v19  ;;  %v3262_v13 = vmul.f32 %v6345_v11, %v6251_v40  ;;  %v3512_v40 = vld [vmem:[%s6645_s0 + $0x98] sm:$0xff] }
 0x696   :  { %v3306_v24 = vadd.f32 %v6353_v4, %v3260_v18  ;;  %v3334_v34 = vadd.f32 %v3511_v48, %v3302_v8  ;;  %v3362_v46 = vmax.f32 %v3330_v17, 0.0  ;;  %3390 = vst [vmem:[%s6652_s7 + $0x50] sm:$0xff] %v3358_v0  ;;  %v3263_v14 = vmul.f32 %v6343_v62, %v6289_v50  ;;  %v3513_v50 = vld [vmem:[%s6645_s0 + $0xa0] sm:$0xff]  ;;  %v3519_v8 = vld [vmem:[%s6645_s0 + $0xd0] sm:$0xff]  ;;  %v3520_v17 = vld [vmem:[%s6645_s0 + $0xd8] sm:$0xff] }
 0x697   :  { %v3307_v30 = vadd.f32 %v6355_v29, %v3261_v37  ;;  %v3335_v53 = vadd.f32 %v3512_v40, %v3303_v38  ;;  %v3363_v12 = vmax.f32 %v3331_v35, 0.0  ;;  %3391 = vst [vmem:[%s6652_s7 + $0x58] sm:$0xff] %v3359_v21  ;;  %v3264_v7 = vmul.f32 %v6345_v11, %v6264_v54  ;;  %v3514_v54 = vld [vmem:[%s6645_s0 + $0xa8] sm:$0xff]  ;;  %v3523_v18 = vld [vmem:[%s6645_s0 + $0xf0] sm:$0xff] }
 0x698   :  { %v3308_v15 = vadd.f32 %v6353_v4, %v3262_v13  ;;  %v3336_v6 = vadd.f32 %v3513_v50, %v3304_v31  ;;  %v3364_v32 = vmax.f32 %v3332_v16, 0.0  ;;  %3392 = vst [vmem:[%s6652_s7 + $0x60] sm:$0xff] %v3360_v59  ;;  %v3265_v33 = vmul.f32 %v6343_v62, %v6298_v51  ;;  %v3515_v51 = vld [vmem:[%s6645_s0 + $0xb0] sm:$0xff]  ;;  %v3524_v16 = vld [vmem:[%s6645_s0 + $0xf8] sm:$0xff] }
 0x699   :  { %v3309_v20 = vadd.f32 %v6355_v29, %v3263_v14  ;;  %v3337_v52 = vadd.f32 %v3514_v54, %v3305_v63  ;;  %v3365_v22 = vmax.f32 %v3333_v27, 0.0  ;;  %3393 = vst [vmem:[%s6652_s7 + $0x68] sm:$0xff] %v3361_v23  ;;  %v3266_v45 = vmul.f32 %v6345_v11, %v6274_v42  ;;  %v3516_v42 = vld [vmem:[%s6645_s0 + $0xb8] sm:$0xff] }
 0x69a   :  { %v3310_v10 = vadd.f32 %v6353_v4, %v3264_v7  ;;  %v3338_v36 = vadd.f32 %v3515_v51, %v3306_v24  ;;  %v3366_v47 = vmax.f32 %v3334_v34, 0.0  ;;  %3394 = vst [vmem:[%s6652_s7 + $0x70] sm:$0xff] %v3362_v46  ;;  %v3267_v41 = vmul.f32 %v6343_v62, %v6308_v1  ;;  %v3517_v1 = vld [vmem:[%s6645_s0 + $0xc0] sm:$0xff] }
 0x69b   :  { %v3311_v26 = vadd.f32 %v6355_v29, %v3265_v33  ;;  %v3339_v49 = vadd.f32 %v3516_v42, %v3307_v30  ;;  %v3367_v57 = vmax.f32 %v3335_v53, 0.0  ;;  %3395 = vst [vmem:[%s6652_s7 + $0x78] sm:$0xff] %v3363_v12  ;;  %v3268_v60 = vmul.f32 %v6345_v11, %v6302_v43  ;;  %v3518_v43 = vld [vmem:[%s6645_s0 + $0xc8] sm:$0xff] }
 0x69c   :  { %v3312_v2 = vadd.f32 %v6353_v4, %v3266_v45  ;;  %v3340_v55 = vadd.f32 %v3517_v1, %v3308_v15  ;;  %v3368_v5 = vmax.f32 %v3336_v6, 0.0  ;;  %3396 = vst [vmem:[%s6652_s7 + $0x80] sm:$0xff] %v3364_v32  ;;  %v3269_v39 = vmul.f32 %v6343_v62, %v6321_v56 }
 0x69d   :  { %v3313_v44 = vadd.f32 %v6355_v29, %v3267_v41  ;;  %v3341_v11 = vadd.f32 %v3518_v43, %v3309_v20  ;;  %v3369_v19 = vmax.f32 %v3337_v52, 0.0  ;;  %3397 = vst [vmem:[%s6652_s7 + $0x88] sm:$0xff] %v3365_v22  ;;  %v3314_v61 = vadd.f32 %v6353_v4, %v3268_v60  ;;  %v3521_v4 = vld [vmem:[%s6645_s0 + $0xe0] sm:$0xff] }
 0x69e   :  { %v3342_v58 = vadd.f32 %v3519_v8, %v3310_v10  ;;  %v3370_v56 = vmax.f32 %v3338_v36, 0.0  ;;  %3398 = vst [vmem:[%s6652_s7 + $0x90] sm:$0xff] %v3366_v47  ;;  %v3315_v62 = vadd.f32 %v6355_v29, %v3269_v39  ;;  %v3343_v0 = vadd.f32 %v3520_v17, %v3311_v26  ;;  %v3522_v29 = vld [vmem:[%s6645_s0 + $0xe8] sm:$0xff] }
 0x69f   :  { %v3371_v3 = vmax.f32 %v3339_v49, 0.0  ;;  %3399 = vst [vmem:[%s6652_s7 + $0x98] sm:$0xff] %v3367_v57  ;;  %v3344_v38 = vadd.f32 %v3521_v4, %v3312_v2  ;;  %v3372_v25 = vmax.f32 %v3340_v55, 0.0  ;;  %v3345_v35 = vadd.f32 %v3522_v29, %v3313_v44 }
 0x6a0   :  { %3400 = vst [vmem:[%s6652_s7 + $0xa0] sm:$0xff] %v3368_v5  ;;  %v3373_v21 = vmax.f32 %v3341_v11, 0.0  ;;  %v3346_v31 = vadd.f32 %v3523_v18, %v3314_v61  ;;  %v3374_v9 = vmax.f32 %v3342_v58, 0.0  ;;  %v3347_v59 = vadd.f32 %v3524_v16, %v3315_v62 }
 0x6a1   :  { %3401 = vst [vmem:[%s6652_s7 + $0xa8] sm:$0xff] %v3369_v19  ;;  %v3375_v37 = vmax.f32 %v3343_v0, 0.0  ;;  %v3376_v63 = vmax.f32 %v3344_v38, 0.0  ;;  %v3377_v28 = vmax.f32 %v3345_v35, 0.0 }
 0x6a2   :  { %3402 = vst [vmem:[%s6652_s7 + $0xb0] sm:$0xff] %v3370_v56  ;;  %v3378_v27 = vmax.f32 %v3346_v31, 0.0  ;;  %v3379_v23 = vmax.f32 %v3347_v59, 0.0 }
 0x6a3   :  { %3403 = vst [vmem:[%s6652_s7 + $0xb8] sm:$0xff] %v3371_v3 }
 0x6a4   :  { %3404 = vst [vmem:[%s6652_s7 + $0xc0] sm:$0xff] %v3372_v25 }
 0x6a5   :  { %3405 = vst [vmem:[%s6652_s7 + $0xc8] sm:$0xff] %v3373_v21 }
 0x6a6   :  { %3406 = vst [vmem:[%s6652_s7 + $0xd0] sm:$0xff] %v3374_v9 }
 0x6a7   :  { %3407 = vst [vmem:[%s6652_s7 + $0xd8] sm:$0xff] %v3375_v37 }
 0x6a8   :  { %3408 = vst [vmem:[%s6652_s7 + $0xe0] sm:$0xff] %v3376_v63 }
 0x6a9   :  { %3409 = vst [vmem:[%s6652_s7 + $0xe8] sm:$0xff] %v3377_v28 }
 0x6aa   :  { %3410 = vst [vmem:[%s6652_s7 + $0xf0] sm:$0xff] %v3378_v27 }
 0x6ab   :  { %3411 = vst [vmem:[%s6652_s7 + $0xf8] sm:$0xff] %v3379_v23 }
 0x6ac   :  { %3416 = vsyncpa [#allocation3], 1 }
 0x6ad   :  { %3417 = vsyncpa [#allocation5], 1 }

</bundles_post_ra>
